<compile_context>
chip_gen: v5e
topology: v5e:2x2
jax: 0.10.0
libtpu: 0.0.40
codegen_flags: <defaults>
</compile_context>

<pallas_src>
import jax
import jax.numpy as jnp
from jax.experimental import pallas as pl
from jax.experimental.pallas import tpu as pltpu

EPS = 1e-5


def _layernorm(h, g, be):
    mu = jnp.mean(h, axis=-1, keepdims=True)
    var = jnp.mean((h - mu) ** 2, axis=-1, keepdims=True)
    return (h - mu) * jax.lax.rsqrt(var + EPS) * g + be


def v2a_mapper_kernel(x_ref, w1_ref, w2_ref, wf_ref, vec_ref, o_ref):
    # x_ref: (TB, S, D) f32       w1_ref: (2, D, H) bf16   w2_ref: (2, H, D) bf16
    # wf_ref: (D, O) bf16         vec_ref: (11, W)  f32 packed small params
    D = w1_ref.shape[1]
    H = w1_ref.shape[2]
    O = wf_ref.shape[1]

    # Fused sequence-mean pooling (reduce over S happens in VMEM).
    h = jnp.mean(x_ref[...].astype(jnp.float32), axis=1)          # (TB, D)

    def block(h, idx, r):
        b1 = vec_ref[r + 0:r + 1, :H]                              # (1, H)
        b2 = vec_ref[r + 1:r + 2, :D]                              # (1, D)
        g = vec_ref[r + 2:r + 3, :D]
        be = vec_ref[r + 3:r + 4, :D]
        identity = h
        y = jnp.dot(h.astype(jnp.bfloat16), w1_ref[idx],
                    preferred_element_type=jnp.float32) + b1
        y = jnp.maximum(y, 0.0)
        # TODO(synk): nn.Dropout is identity at inference; training-mode dropout not modeled.
        y = jnp.dot(y.astype(jnp.bfloat16), w2_ref[idx],
                    preferred_element_type=jnp.float32) + b2
        return _layernorm(y + identity, g, be)

    h = block(h, 0, 0)      # V2ABlock A (rows 0..3 of the vec pack)
    h = block(h, 1, 4)      # V2ABlock B (rows 4..7)

    bf = vec_ref[8:9, :O]
    gf = vec_ref[9:10, :O]
    bef = vec_ref[10:11, :O]
    y = jnp.dot(h.astype(jnp.bfloat16), wf_ref[...],
                preferred_element_type=jnp.float32) + bf
    o_ref[...] = _layernorm(y, gf, bef).astype(o_ref.dtype)


def pack_params(p):
    """Stack big weights (bf16) and pack the 11 small vectors into one f32 slab."""
    D, H = p["w1a"].shape
    O = p["wf"].shape[1]
    W = ((max(H, D, O) + 127) // 128) * 128

    def row(v):
        v = jnp.asarray(v, jnp.float32).reshape(1, -1)
        return jnp.pad(v, ((0, 0), (0, W - v.shape[1])))

    vec = jnp.concatenate(
        [row(p[k]) for k in
         ("b1a", "b2a", "ga", "bea", "b1b", "b2b", "gb", "beb", "bf", "gf", "bef")],
        axis=0)                                                    # (11, W) f32

    return dict(
        w1=jnp.stack([p["w1a"], p["w1b"]]).astype(jnp.bfloat16),   # (2, D, H)
        w2=jnp.stack([p["w2a"], p["w2b"]]).astype(jnp.bfloat16),   # (2, H, D)
        wf=p["wf"].astype(jnp.bfloat16),                           # (D, O)
        vec=vec,
    )


def _pick_batch_tile(B, S, D, itemsize):
    # MXU-height-aligned tile (256 fills the v6e/v7x 256-wide MXU; also a
    # multiple of 128 for v5e).  The cdiv grid pads the ragged last tile.
    tb = min(B, 256)
    # Keep the double-buffered (TB, S, D) input tiles within ~16 MiB so the
    # budget also fits v7x's 64 MiB VMEM / v5e's smaller scoped limit.
    while tb > 8 and 2 * tb * S * D * itemsize > (16 << 20):
        tb //= 2
    return max(tb, 1)


def v2a_mapper_forward(x, packed, *, single_buffer_weights=True):
    B, S, D = x.shape
    H = packed["w1"].shape[2]
    O = packed["wf"].shape[1]
    vec_shape = packed["vec"].shape

    TB = _pick_batch_tile(B, S, D, x.dtype.itemsize)
    num_tiles = pl.cdiv(B, TB)
    grid = (num_tiles,)

    # VMEM budget: single-buffered resident weights + double-buffered tiles.
    weight_bytes = 2 * (packed["w1"].size + packed["w2"].size + packed["wf"].size) \
        + 4 * packed["vec"].size
    x_tile_bytes = TB * S * D * x.dtype.itemsize
    o_tile_bytes = TB * O * x.dtype.itemsize
    budget = weight_bytes + 2 * x_tile_bytes + 2 * o_tile_bytes + (4 << 20)
    vmem_limit = int(min(max(budget, 16 << 20), 100 << 20))

    # Advisory cost estimate so XLA overlaps this small call correctly.
    flops = B * (8 * D * H + 2 * D * O)
    bytes_accessed = x.size * x.dtype.itemsize + B * O * x.dtype.itemsize + weight_bytes
    cost = pl.CostEstimate(flops=flops, transcendentals=3 * B,
                           bytes_accessed=bytes_accessed)

    # Weight-HBM-bound with few tiles: keep the grid on one core so megacore
    # (v7x) does not duplicate the weight DMA; large batches get sharded.
    sem = ("parallel",) if num_tiles >= 4 else ("arbitrary",)
    cparams = pltpu.CompilerParams(dimension_semantics=sem,
                                   vmem_limit_bytes=vmem_limit)

    const3 = lambda i: (0, 0, 0)                 # weights: DMA once, stay resident
    const2 = lambda i: (0, 0)

    def call(resident_mode):
        def wspec(shape, imap):
            if resident_mode is None:
                return pl.BlockSpec(shape, imap)
            return pl.BlockSpec(shape, imap, pipeline_mode=resident_mode)

        in_specs = [
            pl.BlockSpec((TB, S, D), lambda i: (i, 0, 0)),
            wspec((2, D, H), const3),
            wspec((2, H, D), const3),
            wspec((D, O), const2),
            wspec(vec_shape, const2),
        ]
        return pl.pallas_call(
            v2a_mapper_kernel,
            out_shape=jax.ShapeDtypeStruct((B, O), x.dtype),
            grid=grid,
            in_specs=in_specs,
            out_specs=pl.BlockSpec((TB, O), lambda i: (i, 0)),
            compiler_params=cparams,
            cost_estimate=cost,
        )(x, packed["w1"], packed["w2"], packed["wf"], packed["vec"])

    if single_buffer_weights:
        try:
            # Constant-index weights never change -> one buffer is enough.
            return jax.block_until_ready(call(pl.Buffered(1)))
        except Exception:
            pass   # older JAX without BlockSpec pipeline_mode / Buffered(1)
    return call(None)


def make_params(key, input_dim, output_dim):
    hidden = input_dim * 2
    ks = jax.random.split(key, 6)
    f32 = jnp.float32

    def lin(k, din, dout):
        scale = 1.0 / jnp.sqrt(jnp.float32(din))
        kw, kb = jax.random.split(k)
        w = jax.random.uniform(kw, (din, dout), f32, -scale, scale)
        b = jax.random.uniform(kb, (1, dout), f32, -scale, scale)
        return w, b

    w1a, b1a = lin(ks[0], input_dim, hidden)
    w2a, b2a = lin(ks[1], hidden, input_dim)
    w1b, b1b = lin(ks[2], input_dim, hidden)
    w2b, b2b = lin(ks[3], hidden, input_dim)
    wf, bf = lin(ks[4], input_dim, output_dim)

    return dict(
        w1a=w1a, b1a=b1a, w2a=w2a, b2a=b2a,
        ga=jnp.ones((1, input_dim), f32), bea=jnp.zeros((1, input_dim), f32),
        w1b=w1b, b1b=b1b, w2b=w2b, b2b=b2b,
        gb=jnp.ones((1, input_dim), f32), beb=jnp.zeros((1, input_dim), f32),
        wf=wf, bf=bf,
        gf=jnp.ones((1, output_dim), f32), bef=jnp.zeros((1, output_dim), f32),
    )


def reference_forward(x, p, quantize_matmuls=False):
    """Pure-JAX reference. quantize_matmuls=True mirrors the kernel's bf16
    weight storage AND bf16 matmul inputs (what the kernel actually computes)."""
    pooled = jnp.mean(x, axis=1)

    def dot(a, w):
        if quantize_matmuls:
            return jnp.dot(a.astype(jnp.bfloat16), w.astype(jnp.bfloat16),
                           preferred_element_type=jnp.float32)
        return a @ w

    def ln(y, g, be):
        mu = jnp.mean(y, axis=-1, keepdims=True)
        var = jnp.mean((y - mu) ** 2, axis=-1, keepdims=True)
        return (y - mu) / jnp.sqrt(var + EPS) * g + be

    def block(h, w1, b1, w2, b2, g, be):
        y = jnp.maximum(dot(h, w1) + b1, 0.0)
        y = dot(y, w2) + b2 + h
        return ln(y, g, be)

    h = block(pooled, p["w1a"], p["b1a"], p["w2a"], p["b2a"], p["ga"], p["bea"])
    h = block(h, p["w1b"], p["b1b"], p["w2b"], p["b2b"], p["gb"], p["beb"])
    h = dot(h, p["wf"]) + p["bf"]
    return ln(h, p["gf"], p["bef"])


if __name__ == "__main__":
    B, S, D, O = 8, 8, 256, 256   # small shapes consistent with (batch, seq, input_dim)

    key = jax.random.PRNGKey(0)
    kx, kp = jax.random.split(key)
    x = jax.random.normal(kx, (B, S, D), jnp.float32)
    params = make_params(kp, D, O)
    packed = pack_params(params)

    out = v2a_mapper_forward(x, packed)
    out = jax.block_until_ready(out)
    assert out.shape == (B, O)

    # Reference quantized exactly like the kernel (bf16 weights + bf16 matmul
    # inputs) -> tight check; full-f32 reference -> loose check.
    ref_q = reference_forward(x, params, quantize_matmuls=True)
    ref_f = reference_forward(x, params, quantize_matmuls=False)

    assert jnp.allclose(out, ref_q, atol=2e-2, rtol=2e-2), "mismatch vs matched bf16 reference"
    assert jnp.allclose(out, ref_f, atol=7e-2, rtol=7e-2), "mismatch vs f32 reference"

    print("KERNEL_OK")
</pallas_src>

<mosaic_0001>
module attributes {stable_mosaic.version = 11 : i64} {
  func.func @v2a_mapper_kernel(%arg0: i32, %arg1: memref<8x8x256xf32, #tpu.memory_space<vmem>>, %arg2: memref<2x256x512xbf16, #tpu.memory_space<vmem>>, %arg3: memref<2x512x256xbf16, #tpu.memory_space<vmem>>, %arg4: memref<256x256xbf16, #tpu.memory_space<vmem>>, %arg5: memref<11x512xf32, #tpu.memory_space<vmem>>, %arg6: memref<8x256xf32, #tpu.memory_space<vmem>>) attributes {dimension_semantics = [#tpu.dimension_semantics<arbitrary>], iteration_bounds = array<i64: 1>, scalar_prefetch = 0 : i64, scratch_operands = 0 : i64, tpu.core_type = #tpu.core_type<tc>, window_params = [{transform_indices = @transform_0, window_bounds = array<i64: 8, 8, 256>}, {pipeline_mode = #tpu.pipeline_mode<synchronous>, transform_indices = @transform_1, window_bounds = array<i64: 2, 256, 512>}, {pipeline_mode = #tpu.pipeline_mode<synchronous>, transform_indices = @transform_2, window_bounds = array<i64: 2, 512, 256>}, {pipeline_mode = #tpu.pipeline_mode<synchronous>, transform_indices = @transform_3, window_bounds = array<i64: 256, 256>}, {pipeline_mode = #tpu.pipeline_mode<synchronous>, transform_indices = @transform_4, window_bounds = array<i64: 11, 512>}, {transform_indices = @transform_5, window_bounds = array<i64: 8, 256>}]} {
    %c0 = arith.constant 0 : index
    %c0_0 = arith.constant 0 : index
    %c0_1 = arith.constant 0 : index
    %0 = vector.load %arg1[%c0, %c0_0, %c0_1] : memref<8x8x256xf32, #tpu.memory_space<vmem>>, vector<8x8x256xf32>
    %cst = arith.constant dense<0.000000e+00> : vector<8x256xf32>
    %1 = vector.multi_reduction <add>, %0, %cst [1] : vector<8x8x256xf32> to vector<8x256xf32>
    %cst_2 = arith.constant 8.000000e+00 : f32
    %2 = vector.broadcast %cst_2 : f32 to vector<8x256xf32>
    %3 = arith.divf %1, %2 : vector<8x256xf32>
    %c0_3 = arith.constant 0 : index
    %c0_4 = arith.constant 0 : index
    %4 = vector.load %arg5[%c0_3, %c0_4] : memref<11x512xf32, #tpu.memory_space<vmem>>, vector<1x512xf32>
    %c1 = arith.constant 1 : index
    %c0_5 = arith.constant 0 : index
    %5 = vector.load %arg5[%c1, %c0_5] : memref<11x512xf32, #tpu.memory_space<vmem>>, vector<1x256xf32>
    %c2 = arith.constant 2 : index
    %c0_6 = arith.constant 0 : index
    %6 = vector.load %arg5[%c2, %c0_6] : memref<11x512xf32, #tpu.memory_space<vmem>>, vector<1x256xf32>
    %c3 = arith.constant 3 : index
    %c0_7 = arith.constant 0 : index
    %7 = vector.load %arg5[%c3, %c0_7] : memref<11x512xf32, #tpu.memory_space<vmem>>, vector<1x256xf32>
    %8 = arith.truncf %3 : vector<8x256xf32> to vector<8x256xbf16>
    %c0_8 = arith.constant 0 : index
    %c0_9 = arith.constant 0 : index
    %c0_10 = arith.constant 0 : index
    %9 = vector.load %arg2[%c0_8, %c0_9, %c0_10] : memref<2x256x512xbf16, #tpu.memory_space<vmem>>, vector<1x256x512xbf16>
    %10 = vector.shape_cast %9 : vector<1x256x512xbf16> to vector<256x512xbf16>
    %cst_11 = arith.constant dense<0.000000e+00> : vector<8x512xf32>
    %11 = tpu.matmul %8, %10, %cst_11 {dimension_numbers = #tpu.dot_dimension_numbers<[1], [0], [0], [1], [0, 0, 1, 1], [], []>} : vector<8x256xbf16>, vector<256x512xbf16>, vector<8x512xf32> -> vector<8x512xf32>
    %12 = vector.broadcast %4 : vector<1x512xf32> to vector<8x512xf32>
    %13 = arith.addf %11, %12 : vector<8x512xf32>
    %cst_12 = arith.constant 0.000000e+00 : f32
    %14 = vector.broadcast %cst_12 : f32 to vector<8x512xf32>
    %15 = arith.maximumf %13, %14 : vector<8x512xf32>
    %16 = arith.truncf %15 : vector<8x512xf32> to vector<8x512xbf16>
    %c0_13 = arith.constant 0 : index
    %c0_14 = arith.constant 0 : index
    %c0_15 = arith.constant 0 : index
    %17 = vector.load %arg3[%c0_13, %c0_14, %c0_15] : memref<2x512x256xbf16, #tpu.memory_space<vmem>>, vector<1x512x256xbf16>
    %18 = vector.shape_cast %17 : vector<1x512x256xbf16> to vector<512x256xbf16>
    %cst_16 = arith.constant dense<0.000000e+00> : vector<8x256xf32>
    %19 = tpu.matmul %16, %18, %cst_16 {dimension_numbers = #tpu.dot_dimension_numbers<[1], [0], [0], [1], [0, 0, 1, 1], [], []>} : vector<8x512xbf16>, vector<512x256xbf16>, vector<8x256xf32> -> vector<8x256xf32>
    %20 = vector.broadcast %5 : vector<1x256xf32> to vector<8x256xf32>
    %21 = arith.addf %19, %20 : vector<8x256xf32>
    %22 = arith.addf %21, %3 : vector<8x256xf32>
    %cst_17 = arith.constant dense<0.000000e+00> : vector<8xf32>
    %23 = vector.multi_reduction <add>, %22, %cst_17 [1] : vector<8x256xf32> to vector<8xf32>
    %24 = vector.shape_cast %23 : vector<8xf32> to vector<8x1xf32>
    %cst_18 = arith.constant 2.560000e+02 : f32
    %25 = vector.broadcast %cst_18 : f32 to vector<8x1xf32>
    %26 = arith.divf %24, %25 : vector<8x1xf32>
    %27 = vector.broadcast %26 : vector<8x1xf32> to vector<8x256xf32>
    %28 = arith.subf %22, %27 : vector<8x256xf32>
    %29 = arith.mulf %28, %28 : vector<8x256xf32>
    %cst_19 = arith.constant dense<0.000000e+00> : vector<8xf32>
    %30 = vector.multi_reduction <add>, %29, %cst_19 [1] : vector<8x256xf32> to vector<8xf32>
    %31 = vector.shape_cast %30 : vector<8xf32> to vector<8x1xf32>
    %cst_20 = arith.constant 2.560000e+02 : f32
    %32 = vector.broadcast %cst_20 : f32 to vector<8x1xf32>
    %33 = arith.divf %31, %32 : vector<8x1xf32>
    %34 = vector.broadcast %26 : vector<8x1xf32> to vector<8x256xf32>
    %35 = arith.subf %22, %34 : vector<8x256xf32>
    %cst_21 = arith.constant 9.99999974E-6 : f32
    %36 = vector.broadcast %cst_21 : f32 to vector<8x1xf32>
    %37 = arith.addf %33, %36 : vector<8x1xf32>
    %38 = math.rsqrt %37 : vector<8x1xf32>
    %39 = vector.broadcast %38 : vector<8x1xf32> to vector<8x256xf32>
    %40 = arith.mulf %35, %39 : vector<8x256xf32>
    %41 = vector.broadcast %6 : vector<1x256xf32> to vector<8x256xf32>
    %42 = arith.mulf %40, %41 : vector<8x256xf32>
    %43 = vector.broadcast %7 : vector<1x256xf32> to vector<8x256xf32>
    %44 = arith.addf %42, %43 : vector<8x256xf32>
    %c4 = arith.constant 4 : index
    %c0_22 = arith.constant 0 : index
    %45 = vector.load %arg5[%c4, %c0_22] : memref<11x512xf32, #tpu.memory_space<vmem>>, vector<1x512xf32>
    %c5 = arith.constant 5 : index
    %c0_23 = arith.constant 0 : index
    %46 = vector.load %arg5[%c5, %c0_23] : memref<11x512xf32, #tpu.memory_space<vmem>>, vector<1x256xf32>
    %c6 = arith.constant 6 : index
    %c0_24 = arith.constant 0 : index
    %47 = vector.load %arg5[%c6, %c0_24] : memref<11x512xf32, #tpu.memory_space<vmem>>, vector<1x256xf32>
    %c7 = arith.constant 7 : index
    %c0_25 = arith.constant 0 : index
    %48 = vector.load %arg5[%c7, %c0_25] : memref<11x512xf32, #tpu.memory_space<vmem>>, vector<1x256xf32>
    %49 = arith.truncf %44 : vector<8x256xf32> to vector<8x256xbf16>
    %c1_26 = arith.constant 1 : index
    %c0_27 = arith.constant 0 : index
    %c0_28 = arith.constant 0 : index
    %50 = vector.load %arg2[%c1_26, %c0_27, %c0_28] : memref<2x256x512xbf16, #tpu.memory_space<vmem>>, vector<1x256x512xbf16>
    %51 = vector.shape_cast %50 : vector<1x256x512xbf16> to vector<256x512xbf16>
    %cst_29 = arith.constant dense<0.000000e+00> : vector<8x512xf32>
    %52 = tpu.matmul %49, %51, %cst_29 {dimension_numbers = #tpu.dot_dimension_numbers<[1], [0], [0], [1], [0, 0, 1, 1], [], []>} : vector<8x256xbf16>, vector<256x512xbf16>, vector<8x512xf32> -> vector<8x512xf32>
    %53 = vector.broadcast %45 : vector<1x512xf32> to vector<8x512xf32>
    %54 = arith.addf %52, %53 : vector<8x512xf32>
    %cst_30 = arith.constant 0.000000e+00 : f32
    %55 = vector.broadcast %cst_30 : f32 to vector<8x512xf32>
    %56 = arith.maximumf %54, %55 : vector<8x512xf32>
    %57 = arith.truncf %56 : vector<8x512xf32> to vector<8x512xbf16>
    %c1_31 = arith.constant 1 : index
    %c0_32 = arith.constant 0 : index
    %c0_33 = arith.constant 0 : index
    %58 = vector.load %arg3[%c1_31, %c0_32, %c0_33] : memref<2x512x256xbf16, #tpu.memory_space<vmem>>, vector<1x512x256xbf16>
    %59 = vector.shape_cast %58 : vector<1x512x256xbf16> to vector<512x256xbf16>
    %cst_34 = arith.constant dense<0.000000e+00> : vector<8x256xf32>
    %60 = tpu.matmul %57, %59, %cst_34 {dimension_numbers = #tpu.dot_dimension_numbers<[1], [0], [0], [1], [0, 0, 1, 1], [], []>} : vector<8x512xbf16>, vector<512x256xbf16>, vector<8x256xf32> -> vector<8x256xf32>
    %61 = vector.broadcast %46 : vector<1x256xf32> to vector<8x256xf32>
    %62 = arith.addf %60, %61 : vector<8x256xf32>
    %63 = arith.addf %62, %44 : vector<8x256xf32>
    %cst_35 = arith.constant dense<0.000000e+00> : vector<8xf32>
    %64 = vector.multi_reduction <add>, %63, %cst_35 [1] : vector<8x256xf32> to vector<8xf32>
    %65 = vector.shape_cast %64 : vector<8xf32> to vector<8x1xf32>
    %cst_36 = arith.constant 2.560000e+02 : f32
    %66 = vector.broadcast %cst_36 : f32 to vector<8x1xf32>
    %67 = arith.divf %65, %66 : vector<8x1xf32>
    %68 = vector.broadcast %67 : vector<8x1xf32> to vector<8x256xf32>
    %69 = arith.subf %63, %68 : vector<8x256xf32>
    %70 = arith.mulf %69, %69 : vector<8x256xf32>
    %cst_37 = arith.constant dense<0.000000e+00> : vector<8xf32>
    %71 = vector.multi_reduction <add>, %70, %cst_37 [1] : vector<8x256xf32> to vector<8xf32>
    %72 = vector.shape_cast %71 : vector<8xf32> to vector<8x1xf32>
    %cst_38 = arith.constant 2.560000e+02 : f32
    %73 = vector.broadcast %cst_38 : f32 to vector<8x1xf32>
    %74 = arith.divf %72, %73 : vector<8x1xf32>
    %75 = vector.broadcast %67 : vector<8x1xf32> to vector<8x256xf32>
    %76 = arith.subf %63, %75 : vector<8x256xf32>
    %cst_39 = arith.constant 9.99999974E-6 : f32
    %77 = vector.broadcast %cst_39 : f32 to vector<8x1xf32>
    %78 = arith.addf %74, %77 : vector<8x1xf32>
    %79 = math.rsqrt %78 : vector<8x1xf32>
    %80 = vector.broadcast %79 : vector<8x1xf32> to vector<8x256xf32>
    %81 = arith.mulf %76, %80 : vector<8x256xf32>
    %82 = vector.broadcast %47 : vector<1x256xf32> to vector<8x256xf32>
    %83 = arith.mulf %81, %82 : vector<8x256xf32>
    %84 = vector.broadcast %48 : vector<1x256xf32> to vector<8x256xf32>
    %85 = arith.addf %83, %84 : vector<8x256xf32>
    %c8 = arith.constant 8 : index
    %c0_40 = arith.constant 0 : index
    %86 = vector.load %arg5[%c8, %c0_40] : memref<11x512xf32, #tpu.memory_space<vmem>>, vector<1x256xf32>
    %c9 = arith.constant 9 : index
    %c0_41 = arith.constant 0 : index
    %87 = vector.load %arg5[%c9, %c0_41] : memref<11x512xf32, #tpu.memory_space<vmem>>, vector<1x256xf32>
    %c10 = arith.constant 10 : index
    %c0_42 = arith.constant 0 : index
    %88 = vector.load %arg5[%c10, %c0_42] : memref<11x512xf32, #tpu.memory_space<vmem>>, vector<1x256xf32>
    %89 = arith.truncf %85 : vector<8x256xf32> to vector<8x256xbf16>
    %c0_43 = arith.constant 0 : index
    %c0_44 = arith.constant 0 : index
    %90 = vector.load %arg4[%c0_43, %c0_44] : memref<256x256xbf16, #tpu.memory_space<vmem>>, vector<256x256xbf16>
    %cst_45 = arith.constant dense<0.000000e+00> : vector<8x256xf32>
    %91 = tpu.matmul %89, %90, %cst_45 {dimension_numbers = #tpu.dot_dimension_numbers<[1], [0], [0], [1], [0, 0, 1, 1], [], []>} : vector<8x256xbf16>, vector<256x256xbf16>, vector<8x256xf32> -> vector<8x256xf32>
    %92 = vector.broadcast %86 : vector<1x256xf32> to vector<8x256xf32>
    %93 = arith.addf %91, %92 : vector<8x256xf32>
    %cst_46 = arith.constant dense<0.000000e+00> : vector<8xf32>
    %94 = vector.multi_reduction <add>, %93, %cst_46 [1] : vector<8x256xf32> to vector<8xf32>
    %95 = vector.shape_cast %94 : vector<8xf32> to vector<8x1xf32>
    %cst_47 = arith.constant 2.560000e+02 : f32
    %96 = vector.broadcast %cst_47 : f32 to vector<8x1xf32>
    %97 = arith.divf %95, %96 : vector<8x1xf32>
    %98 = vector.broadcast %97 : vector<8x1xf32> to vector<8x256xf32>
    %99 = arith.subf %93, %98 : vector<8x256xf32>
    %100 = arith.mulf %99, %99 : vector<8x256xf32>
    %cst_48 = arith.constant dense<0.000000e+00> : vector<8xf32>
    %101 = vector.multi_reduction <add>, %100, %cst_48 [1] : vector<8x256xf32> to vector<8xf32>
    %102 = vector.shape_cast %101 : vector<8xf32> to vector<8x1xf32>
    %cst_49 = arith.constant 2.560000e+02 : f32
    %103 = vector.broadcast %cst_49 : f32 to vector<8x1xf32>
    %104 = arith.divf %102, %103 : vector<8x1xf32>
    %105 = vector.broadcast %97 : vector<8x1xf32> to vector<8x256xf32>
    %106 = arith.subf %93, %105 : vector<8x256xf32>
    %cst_50 = arith.constant 9.99999974E-6 : f32
    %107 = vector.broadcast %cst_50 : f32 to vector<8x1xf32>
    %108 = arith.addf %104, %107 : vector<8x1xf32>
    %109 = math.rsqrt %108 : vector<8x1xf32>
    %110 = vector.broadcast %109 : vector<8x1xf32> to vector<8x256xf32>
    %111 = arith.mulf %106, %110 : vector<8x256xf32>
    %112 = vector.broadcast %87 : vector<1x256xf32> to vector<8x256xf32>
    %113 = arith.mulf %111, %112 : vector<8x256xf32>
    %114 = vector.broadcast %88 : vector<1x256xf32> to vector<8x256xf32>
    %115 = arith.addf %113, %114 : vector<8x256xf32>
    %c0_51 = arith.constant 0 : index
    %c0_52 = arith.constant 0 : index
    %116 = vector.load %arg6[%c0_51, %c0_52] : memref<8x256xf32, #tpu.memory_space<vmem>>, vector<8x256xf32>
    tpu.vector_store %arg6[%c0_51, %c0_52], %115 {strides = array<i32>} : memref<8x256xf32, #tpu.memory_space<vmem>>, vector<8x256xf32>,
    return
  }
  func.func @transform_0(%arg0: i32) -> (i32, i32, i32) {
    %c0_i32 = arith.constant 0 : i32
    %c0_i32_0 = arith.constant 0 : i32
    %c0_i32_1 = arith.constant 0 : i32
    return %arg0, %c0_i32, %c0_i32_0 : i32, i32, i32
  }
  func.func @transform_1(%arg0: i32) -> (i32, i32, i32) {
    %c0_i32 = arith.constant 0 : i32
    %c0_i32_0 = arith.constant 0 : i32
    %c0_i32_1 = arith.constant 0 : i32
    %c0_i32_2 = arith.constant 0 : i32
    return %c0_i32, %c0_i32_0, %c0_i32_1 : i32, i32, i32
  }
  func.func @transform_2(%arg0: i32) -> (i32, i32, i32) {
    %c0_i32 = arith.constant 0 : i32
    %c0_i32_0 = arith.constant 0 : i32
    %c0_i32_1 = arith.constant 0 : i32
    %c0_i32_2 = arith.constant 0 : i32
    return %c0_i32, %c0_i32_0, %c0_i32_1 : i32, i32, i32
  }
  func.func @transform_3(%arg0: i32) -> (i32, i32) {
    %c0_i32 = arith.constant 0 : i32
    %c0_i32_0 = arith.constant 0 : i32
    %c0_i32_1 = arith.constant 0 : i32
    return %c0_i32, %c0_i32_0 : i32, i32
  }
  func.func @transform_4(%arg0: i32) -> (i32, i32) {
    %c0_i32 = arith.constant 0 : i32
    %c0_i32_0 = arith.constant 0 : i32
    %c0_i32_1 = arith.constant 0 : i32
    return %c0_i32, %c0_i32_0 : i32, i32
  }
  func.func @transform_5(%arg0: i32) -> (i32, i32) {
    %c0_i32 = arith.constant 0 : i32
    %c0_i32_0 = arith.constant 0 : i32
    return %arg0, %c0_i32 : i32, i32
  }
}

module attributes {stable_mosaic.version = 11 : i64} {
  func.func @v2a_mapper_kernel(%arg0: i32, %arg1: memref<8x8x256xf32, #tpu.memory_space<vmem>>, %arg2: memref<2x256x512xbf16, #tpu.memory_space<vmem>>, %arg3: memref<2x512x256xbf16, #tpu.memory_space<vmem>>, %arg4: memref<256x256xbf16, #tpu.memory_space<vmem>>, %arg5: memref<11x512xf32, #tpu.memory_space<vmem>>, %arg6: memref<8x256xf32, #tpu.memory_space<vmem>>) attributes {dimension_semantics = [#tpu.dimension_semantics<arbitrary>], iteration_bounds = array<i64: 1>, scalar_prefetch = 0 : i64, scratch_operands = 0 : i64, tpu.core_type = #tpu.core_type<tc>, window_params = [{transform_indices = @transform_0, window_bounds = array<i64: 8, 8, 256>}, {pipeline_mode = #tpu.pipeline_mode<synchronous>, transform_indices = @transform_1, window_bounds = array<i64: 2, 256, 512>}, {pipeline_mode = #tpu.pipeline_mode<synchronous>, transform_indices = @transform_2, window_bounds = array<i64: 2, 512, 256>}, {pipeline_mode = #tpu.pipeline_mode<synchronous>, transform_indices = @transform_3, window_bounds = array<i64: 256, 256>}, {pipeline_mode = #tpu.pipeline_mode<synchronous>, transform_indices = @transform_4, window_bounds = array<i64: 11, 512>}, {transform_indices = @transform_5, window_bounds = array<i64: 8, 256>}]} {
    %c0 = arith.constant 0 : index
    %c0_0 = arith.constant 0 : index
    %c0_1 = arith.constant 0 : index
    %0 = vector.load %arg1[%c0, %c0_0, %c0_1] : memref<8x8x256xf32, #tpu.memory_space<vmem>>, vector<8x8x256xf32>
    %cst = arith.constant dense<0.000000e+00> : vector<8x256xf32>
    %1 = vector.multi_reduction <add>, %0, %cst [1] : vector<8x8x256xf32> to vector<8x256xf32>
    %cst_2 = arith.constant 8.000000e+00 : f32
    %2 = vector.broadcast %cst_2 : f32 to vector<8x256xf32>
    %3 = arith.divf %1, %2 : vector<8x256xf32>
    %c0_3 = arith.constant 0 : index
    %c0_4 = arith.constant 0 : index
    %4 = vector.load %arg5[%c0_3, %c0_4] : memref<11x512xf32, #tpu.memory_space<vmem>>, vector<1x512xf32>
    %c1 = arith.constant 1 : index
    %c0_5 = arith.constant 0 : index
    %5 = vector.load %arg5[%c1, %c0_5] : memref<11x512xf32, #tpu.memory_space<vmem>>, vector<1x256xf32>
    %c2 = arith.constant 2 : index
    %c0_6 = arith.constant 0 : index
    %6 = vector.load %arg5[%c2, %c0_6] : memref<11x512xf32, #tpu.memory_space<vmem>>, vector<1x256xf32>
    %c3 = arith.constant 3 : index
    %c0_7 = arith.constant 0 : index
    %7 = vector.load %arg5[%c3, %c0_7] : memref<11x512xf32, #tpu.memory_space<vmem>>, vector<1x256xf32>
    %8 = arith.truncf %3 : vector<8x256xf32> to vector<8x256xbf16>
    %c0_8 = arith.constant 0 : index
    %c0_9 = arith.constant 0 : index
    %c0_10 = arith.constant 0 : index
    %9 = vector.load %arg2[%c0_8, %c0_9, %c0_10] : memref<2x256x512xbf16, #tpu.memory_space<vmem>>, vector<1x256x512xbf16>
    %10 = vector.shape_cast %9 : vector<1x256x512xbf16> to vector<256x512xbf16>
    %cst_11 = arith.constant dense<0.000000e+00> : vector<8x512xf32>
    %11 = tpu.matmul %8, %10, %cst_11 {dimension_numbers = #tpu.dot_dimension_numbers<[1], [0], [0], [1], [0, 0, 1, 1], [], []>} : vector<8x256xbf16>, vector<256x512xbf16>, vector<8x512xf32> -> vector<8x512xf32>
    %12 = vector.broadcast %4 : vector<1x512xf32> to vector<8x512xf32>
    %13 = arith.addf %11, %12 : vector<8x512xf32>
    %cst_12 = arith.constant 0.000000e+00 : f32
    %14 = vector.broadcast %cst_12 : f32 to vector<8x512xf32>
    %15 = arith.maximumf %13, %14 : vector<8x512xf32>
    %16 = arith.truncf %15 : vector<8x512xf32> to vector<8x512xbf16>
    %c0_13 = arith.constant 0 : index
    %c0_14 = arith.constant 0 : index
    %c0_15 = arith.constant 0 : index
    %17 = vector.load %arg3[%c0_13, %c0_14, %c0_15] : memref<2x512x256xbf16, #tpu.memory_space<vmem>>, vector<1x512x256xbf16>
    %18 = vector.shape_cast %17 : vector<1x512x256xbf16> to vector<512x256xbf16>
    %cst_16 = arith.constant dense<0.000000e+00> : vector<8x256xf32>
    %19 = tpu.matmul %16, %18, %cst_16 {dimension_numbers = #tpu.dot_dimension_numbers<[1], [0], [0], [1], [0, 0, 1, 1], [], []>} : vector<8x512xbf16>, vector<512x256xbf16>, vector<8x256xf32> -> vector<8x256xf32>
    %20 = vector.broadcast %5 : vector<1x256xf32> to vector<8x256xf32>
    %21 = arith.addf %19, %20 : vector<8x256xf32>
    %22 = arith.addf %21, %3 : vector<8x256xf32>
    %cst_17 = arith.constant dense<0.000000e+00> : vector<8xf32>
    %23 = vector.multi_reduction <add>, %22, %cst_17 [1] : vector<8x256xf32> to vector<8xf32>
    %24 = vector.shape_cast %23 : vector<8xf32> to vector<8x1xf32>
    %cst_18 = arith.constant 2.560000e+02 : f32
    %25 = vector.broadcast %cst_18 : f32 to vector<8x1xf32>
    %26 = arith.divf %24, %25 : vector<8x1xf32>
    %27 = vector.broadcast %26 : vector<8x1xf32> to vector<8x256xf32>
    %28 = arith.subf %22, %27 : vector<8x256xf32>
    %29 = arith.mulf %28, %28 : vector<8x256xf32>
    %cst_19 = arith.constant dense<0.000000e+00> : vector<8xf32>
    %30 = vector.multi_reduction <add>, %29, %cst_19 [1] : vector<8x256xf32> to vector<8xf32>
    %31 = vector.shape_cast %30 : vector<8xf32> to vector<8x1xf32>
    %cst_20 = arith.constant 2.560000e+02 : f32
    %32 = vector.broadcast %cst_20 : f32 to vector<8x1xf32>
    %33 = arith.divf %31, %32 : vector<8x1xf32>
    %34 = vector.broadcast %26 : vector<8x1xf32> to vector<8x256xf32>
    %35 = arith.subf %22, %34 : vector<8x256xf32>
    %cst_21 = arith.constant 9.99999974E-6 : f32
    %36 = vector.broadcast %cst_21 : f32 to vector<8x1xf32>
    %37 = arith.addf %33, %36 : vector<8x1xf32>
    %38 = math.rsqrt %37 : vector<8x1xf32>
    %39 = vector.broadcast %38 : vector<8x1xf32> to vector<8x256xf32>
    %40 = arith.mulf %35, %39 : vector<8x256xf32>
    %41 = vector.broadcast %6 : vector<1x256xf32> to vector<8x256xf32>
    %42 = arith.mulf %40, %41 : vector<8x256xf32>
    %43 = vector.broadcast %7 : vector<1x256xf32> to vector<8x256xf32>
    %44 = arith.addf %42, %43 : vector<8x256xf32>
    %c4 = arith.constant 4 : index
    %c0_22 = arith.constant 0 : index
    %45 = vector.load %arg5[%c4, %c0_22] : memref<11x512xf32, #tpu.memory_space<vmem>>, vector<1x512xf32>
    %c5 = arith.constant 5 : index
    %c0_23 = arith.constant 0 : index
    %46 = vector.load %arg5[%c5, %c0_23] : memref<11x512xf32, #tpu.memory_space<vmem>>, vector<1x256xf32>
    %c6 = arith.constant 6 : index
    %c0_24 = arith.constant 0 : index
    %47 = vector.load %arg5[%c6, %c0_24] : memref<11x512xf32, #tpu.memory_space<vmem>>, vector<1x256xf32>
    %c7 = arith.constant 7 : index
    %c0_25 = arith.constant 0 : index
    %48 = vector.load %arg5[%c7, %c0_25] : memref<11x512xf32, #tpu.memory_space<vmem>>, vector<1x256xf32>
    %49 = arith.truncf %44 : vector<8x256xf32> to vector<8x256xbf16>
    %c1_26 = arith.constant 1 : index
    %c0_27 = arith.constant 0 : index
    %c0_28 = arith.constant 0 : index
    %50 = vector.load %arg2[%c1_26, %c0_27, %c0_28] : memref<2x256x512xbf16, #tpu.memory_space<vmem>>, vector<1x256x512xbf16>
    %51 = vector.shape_cast %50 : vector<1x256x512xbf16> to vector<256x512xbf16>
    %cst_29 = arith.constant dense<0.000000e+00> : vector<8x512xf32>
    %52 = tpu.matmul %49, %51, %cst_29 {dimension_numbers = #tpu.dot_dimension_numbers<[1], [0], [0], [1], [0, 0, 1, 1], [], []>} : vector<8x256xbf16>, vector<256x512xbf16>, vector<8x512xf32> -> vector<8x512xf32>
    %53 = vector.broadcast %45 : vector<1x512xf32> to vector<8x512xf32>
    %54 = arith.addf %52, %53 : vector<8x512xf32>
    %cst_30 = arith.constant 0.000000e+00 : f32
    %55 = vector.broadcast %cst_30 : f32 to vector<8x512xf32>
    %56 = arith.maximumf %54, %55 : vector<8x512xf32>
    %57 = arith.truncf %56 : vector<8x512xf32> to vector<8x512xbf16>
    %c1_31 = arith.constant 1 : index
    %c0_32 = arith.constant 0 : index
    %c0_33 = arith.constant 0 : index
    %58 = vector.load %arg3[%c1_31, %c0_32, %c0_33] : memref<2x512x256xbf16, #tpu.memory_space<vmem>>, vector<1x512x256xbf16>
    %59 = vector.shape_cast %58 : vector<1x512x256xbf16> to vector<512x256xbf16>
    %cst_34 = arith.constant dense<0.000000e+00> : vector<8x256xf32>
    %60 = tpu.matmul %57, %59, %cst_34 {dimension_numbers = #tpu.dot_dimension_numbers<[1], [0], [0], [1], [0, 0, 1, 1], [], []>} : vector<8x512xbf16>, vector<512x256xbf16>, vector<8x256xf32> -> vector<8x256xf32>
    %61 = vector.broadcast %46 : vector<1x256xf32> to vector<8x256xf32>
    %62 = arith.addf %60, %61 : vector<8x256xf32>
    %63 = arith.addf %62, %44 : vector<8x256xf32>
    %cst_35 = arith.constant dense<0.000000e+00> : vector<8xf32>
    %64 = vector.multi_reduction <add>, %63, %cst_35 [1] : vector<8x256xf32> to vector<8xf32>
    %65 = vector.shape_cast %64 : vector<8xf32> to vector<8x1xf32>
    %cst_36 = arith.constant 2.560000e+02 : f32
    %66 = vector.broadcast %cst_36 : f32 to vector<8x1xf32>
    %67 = arith.divf %65, %66 : vector<8x1xf32>
    %68 = vector.broadcast %67 : vector<8x1xf32> to vector<8x256xf32>
    %69 = arith.subf %63, %68 : vector<8x256xf32>
    %70 = arith.mulf %69, %69 : vector<8x256xf32>
    %cst_37 = arith.constant dense<0.000000e+00> : vector<8xf32>
    %71 = vector.multi_reduction <add>, %70, %cst_37 [1] : vector<8x256xf32> to vector<8xf32>
    %72 = vector.shape_cast %71 : vector<8xf32> to vector<8x1xf32>
    %cst_38 = arith.constant 2.560000e+02 : f32
    %73 = vector.broadcast %cst_38 : f32 to vector<8x1xf32>
    %74 = arith.divf %72, %73 : vector<8x1xf32>
    %75 = vector.broadcast %67 : vector<8x1xf32> to vector<8x256xf32>
    %76 = arith.subf %63, %75 : vector<8x256xf32>
    %cst_39 = arith.constant 9.99999974E-6 : f32
    %77 = vector.broadcast %cst_39 : f32 to vector<8x1xf32>
    %78 = arith.addf %74, %77 : vector<8x1xf32>
    %79 = math.rsqrt %78 : vector<8x1xf32>
    %80 = vector.broadcast %79 : vector<8x1xf32> to vector<8x256xf32>
    %81 = arith.mulf %76, %80 : vector<8x256xf32>
    %82 = vector.broadcast %47 : vector<1x256xf32> to vector<8x256xf32>
    %83 = arith.mulf %81, %82 : vector<8x256xf32>
    %84 = vector.broadcast %48 : vector<1x256xf32> to vector<8x256xf32>
    %85 = arith.addf %83, %84 : vector<8x256xf32>
    %c8 = arith.constant 8 : index
    %c0_40 = arith.constant 0 : index
    %86 = vector.load %arg5[%c8, %c0_40] : memref<11x512xf32, #tpu.memory_space<vmem>>, vector<1x256xf32>
    %c9 = arith.constant 9 : index
    %c0_41 = arith.constant 0 : index
    %87 = vector.load %arg5[%c9, %c0_41] : memref<11x512xf32, #tpu.memory_space<vmem>>, vector<1x256xf32>
    %c10 = arith.constant 10 : index
    %c0_42 = arith.constant 0 : index
    %88 = vector.load %arg5[%c10, %c0_42] : memref<11x512xf32, #tpu.memory_space<vmem>>, vector<1x256xf32>
    %89 = arith.truncf %85 : vector<8x256xf32> to vector<8x256xbf16>
    %c0_43 = arith.constant 0 : index
    %c0_44 = arith.constant 0 : index
    %90 = vector.load %arg4[%c0_43, %c0_44] : memref<256x256xbf16, #tpu.memory_space<vmem>>, vector<256x256xbf16>
    %cst_45 = arith.constant dense<0.000000e+00> : vector<8x256xf32>
    %91 = tpu.matmul %89, %90, %cst_45 {dimension_numbers = #tpu.dot_dimension_numbers<[1], [0], [0], [1], [0, 0, 1, 1], [], []>} : vector<8x256xbf16>, vector<256x256xbf16>, vector<8x256xf32> -> vector<8x256xf32>
    %92 = vector.broadcast %86 : vector<1x256xf32> to vector<8x256xf32>
    %93 = arith.addf %91, %92 : vector<8x256xf32>
    %cst_46 = arith.constant dense<0.000000e+00> : vector<8xf32>
    %94 = vector.multi_reduction <add>, %93, %cst_46 [1] : vector<8x256xf32> to vector<8xf32>
    %95 = vector.shape_cast %94 : vector<8xf32> to vector<8x1xf32>
    %cst_47 = arith.constant 2.560000e+02 : f32
    %96 = vector.broadcast %cst_47 : f32 to vector<8x1xf32>
    %97 = arith.divf %95, %96 : vector<8x1xf32>
    %98 = vector.broadcast %97 : vector<8x1xf32> to vector<8x256xf32>
    %99 = arith.subf %93, %98 : vector<8x256xf32>
    %100 = arith.mulf %99, %99 : vector<8x256xf32>
    %cst_48 = arith.constant dense<0.000000e+00> : vector<8xf32>
    %101 = vector.multi_reduction <add>, %100, %cst_48 [1] : vector<8x256xf32> to vector<8xf32>
    %102 = vector.shape_cast %101 : vector<8xf32> to vector<8x1xf32>
    %cst_49 = arith.constant 2.560000e+02 : f32
    %103 = vector.broadcast %cst_49 : f32 to vector<8x1xf32>
    %104 = arith.divf %102, %103 : vector<8x1xf32>
    %105 = vector.broadcast %97 : vector<8x1xf32> to vector<8x256xf32>
    %106 = arith.subf %93, %105 : vector<8x256xf32>
    %cst_50 = arith.constant 9.99999974E-6 : f32
    %107 = vector.broadcast %cst_50 : f32 to vector<8x1xf32>
    %108 = arith.addf %104, %107 : vector<8x1xf32>
    %109 = math.rsqrt %108 : vector<8x1xf32>
    %110 = vector.broadcast %109 : vector<8x1xf32> to vector<8x256xf32>
    %111 = arith.mulf %106, %110 : vector<8x256xf32>
    %112 = vector.broadcast %87 : vector<1x256xf32> to vector<8x256xf32>
    %113 = arith.mulf %111, %112 : vector<8x256xf32>
    %114 = vector.broadcast %88 : vector<1x256xf32> to vector<8x256xf32>
    %115 = arith.addf %113, %114 : vector<8x256xf32>
    %c0_51 = arith.constant 0 : index
    %c0_52 = arith.constant 0 : index
    %116 = vector.load %arg6[%c0_51, %c0_52] : memref<8x256xf32, #tpu.memory_space<vmem>>, vector<8x256xf32>
    tpu.vector_store %arg6[%c0_51, %c0_52], %115 {strides = array<i32>} : memref<8x256xf32, #tpu.memory_space<vmem>>, vector<8x256xf32>,
    return
  }
  func.func @transform_0(%arg0: i32) -> (i32, i32, i32) {
    %c0_i32 = arith.constant 0 : i32
    %c0_i32_0 = arith.constant 0 : i32
    %c0_i32_1 = arith.constant 0 : i32
    return %arg0, %c0_i32, %c0_i32_0 : i32, i32, i32
  }
  func.func @transform_1(%arg0: i32) -> (i32, i32, i32) {
    %c0_i32 = arith.constant 0 : i32
    %c0_i32_0 = arith.constant 0 : i32
    %c0_i32_1 = arith.constant 0 : i32
    %c0_i32_2 = arith.constant 0 : i32
    return %c0_i32, %c0_i32_0, %c0_i32_1 : i32, i32, i32
  }
  func.func @transform_2(%arg0: i32) -> (i32, i32, i32) {
    %c0_i32 = arith.constant 0 : i32
    %c0_i32_0 = arith.constant 0 : i32
    %c0_i32_1 = arith.constant 0 : i32
    %c0_i32_2 = arith.constant 0 : i32
    return %c0_i32, %c0_i32_0, %c0_i32_1 : i32, i32, i32
  }
  func.func @transform_3(%arg0: i32) -> (i32, i32) {
    %c0_i32 = arith.constant 0 : i32
    %c0_i32_0 = arith.constant 0 : i32
    %c0_i32_1 = arith.constant 0 : i32
    return %c0_i32, %c0_i32_0 : i32, i32
  }
  func.func @transform_4(%arg0: i32) -> (i32, i32) {
    %c0_i32 = arith.constant 0 : i32
    %c0_i32_0 = arith.constant 0 : i32
    %c0_i32_1 = arith.constant 0 : i32
    return %c0_i32, %c0_i32_0 : i32, i32
  }
  func.func @transform_5(%arg0: i32) -> (i32, i32) {
    %c0_i32 = arith.constant 0 : i32
    %c0_i32_0 = arith.constant 0 : i32
    return %arg0, %c0_i32 : i32, i32
  }
}

</mosaic_0001>

<bundles_post_ra>
// kernel: tpu_custom_call.1
= control target key start
LH: loop header
LB: loop body
LE: loop exit
PB: predicated region body
PF: predicated region fallthrough
CT: control target
= control target key end

     0   :  { %10 = vsyncpa [#allocation3], 0  ;;  %s4749_s0 = inlined_call_operand.hbm [shape: f32[8,8,256], index: 0, kind: input, shape index: {}]   ;;  %s4750_s1 = inlined_call_operand.hbm [shape: bf16[2,256,512], index: 1, kind: input, shape index: {}]   ;;  %s4751_s2 = inlined_call_operand.hbm [shape: bf16[2,512,256], index: 2, kind: input, shape index: {}]   ;;  %s4752_s3 = inlined_call_operand.hbm [shape: bf16[256,256], index: 3, kind: input, shape index: {}]   ;;  %s4753_s4 = inlined_call_operand.hbm [shape: f32[11,512], index: 4, kind: input, shape index: {}]   ;;  %s4754_s5 = inlined_call_operand.hbm [shape: f32[8,256], index: 5, kind: output, shape index: {}]  }
   0x1   :  { %11 = vsyncpa [#allocation6], 0 }
   0x2   :  { %12 = vsyncpa [#allocation9], 0 }
   0x3   :  { %13 = vsyncpa [#allocation4], 0  ;;  %s31_s20 = sshll.u32 %s4750_s1, 4  ;;  %s4376_s21 = smov [#allocation5]   ;;  %s32_s20 = int_to_ptr.hbm [resolvable:$true] %s31_s20 }
   0x4   :  { %s33_s22 = sshll.u32 %s4376_s21, 4  ;;  %s4377_s23 = smov 256   ;;  %s34_s22 = int_to_ptr.vmem [resolvable:$true] %s33_s22 }
   0x5   :  { %s4378_s24 = smov 16   ;;  %s57_s27 = sshll.u32 %s4752_s3, 4  ;;  %s58_s27 = int_to_ptr.hbm [resolvable:$true] %s57_s27 }
   0x6   :  { %39 = dma.hbm_to_vmem [thread:$0]  %s32_s20, 16384, %s34_s22, [#allocation6], %s4377_s23, %s4377_s23, %s4378_s24  }
   0x7   :  { %s4379_s28 = smov [#allocation8]   ;;  %s18_s7 = sshll.u32 %s4749_s0, 4  ;;  %s19_s7 = int_to_ptr.hbm [resolvable:$true] %s18_s7 }
   0x8   :  { %s59_s29 = sshll.u32 %s4379_s28, 4  ;;  %s4380_s1 = smov 128   ;;  %s60_s29 = int_to_ptr.vmem [resolvable:$true] %s59_s29 }
   0x9   :  { %s4381_s8 = smov 8   ;;  %s44_s11 = sshll.u32 %s4751_s2, 4  ;;  %s45_s11 = int_to_ptr.hbm [resolvable:$true] %s44_s11 }
   0xa   :  { %65 = dma.hbm_to_vmem [thread:$0]  %s58_s27, 4096, %s60_s29, [#allocation9], %s4380_s1, %s4380_s1, %s4381_s8  }
   0xb   :  { %s4382_s12 = smov [#allocation2]   ;;  %s4383_s3 = smov [#allocation7]  }
   0xc   :  { %s20_s13 = sshll.u32 %s4382_s12, 4  ;;  %s46_s14 = sshll.u32 %s4383_s3, 4  ;;  %s21_s13 = int_to_ptr.vmem [resolvable:$true] %s20_s13  ;;  %s47_s14 = int_to_ptr.vmem [resolvable:$true] %s46_s14 }
   0xd   :  { %26 = dma.hbm_to_vmem [thread:$0]  %s19_s7, 2048, %s21_s13, [#allocation3], %s4377_s23, %s4377_s23, %s4378_s24  }
   0xe   :  { %s70_s0 = sshll.u32 %s4753_s4, 4  ;;  %s4384_s17 = smov [#allocation10]   ;;  %s71_s0 = int_to_ptr.hbm [resolvable:$true] %s70_s0 }
   0xf   :  { %52 = dma.hbm_to_vmem [thread:$0]  %s45_s11, 16384, %s47_s14, [#allocation6], %s4380_s1, %s4380_s1, %s4381_s8  }
  0x10   :  { %s72_s18 = sshll.u32 %s4384_s17, 4  ;;  %s4385_s19 = smov 512   ;;  %s73_s18 = int_to_ptr.vmem [resolvable:$true] %s72_s18 }
  0x11   :  { %s4386_s20 = smov 32  }
  0x12   :  { %78 = dma.hbm_to_vmem [thread:$0]  %s71_s0, 1024, %s73_s18, [#allocation9], %s4385_s19, %s4385_s19, %s4386_s20  }
  0x13   :  { %4368 = dma.done.wait [#allocation3], 2048  }
  0x14   :  { %4369 = vsyncadd [#allocation3], 4294965248 }
  0x15   :  { %4370 = dma.done.wait [#allocation6], 32768  }
  0x16   :  { %4371 = vsyncadd [#allocation6], 4294934528 }
  0x17   :  { %4372 = dma.done.wait [#allocation9], 5120  }
  0x18   :  { %4373 = vsyncadd [#allocation9], 4294962176  ;;  %v2874_v0 = vld [vmem:[#allocation5 + $0xe0] sm:$0xf]  ;;  %v3942_v1 = vld [vmem:[#allocation5 + $0xec] sm:$0xf0] }
  0x19   :  { %v3002_v2 = vld [vmem:[#allocation5 + $0x1e0] sm:$0xf]  ;;  %v2875_v3 = vor.u32 %v3942_v1, %v2874_v0  ;;  %v3974_v4 = vld [vmem:[#allocation5 + $0x1ec] sm:$0xf0]  ;;  %v3940_v5 = vld [vmem:[#allocation5 + $0xe4] sm:$0xf] }
  0x1a   :  { %v2876_v6 = vld [vmem:[#allocation5 + $0xf0] sm:$0xf0]  ;;  %v3003_v7 = vor.u32 %v3974_v4, %v3002_v2  ;;  %v3972_v9 = vld [vmem:[#allocation5 + $0x1e4] sm:$0xf]  ;;  %v2858_v11 = vld [vmem:[#allocation5 + $0xc0] sm:$0xf] }
  0x1b   :  { %v2879_v8 = vor.u32 %v3940_v5, %v2876_v6  ;;  %v3004_v10 = vld [vmem:[#allocation5 + $0x1f0] sm:$0xf0]  ;;  %707 = vmatpush.bf16.msra.mxu0 %v2875_v3  ;;  %v3938_v13 = vld [vmem:[#allocation5 + $0xcc] sm:$0xf0]  ;;  %v2986_v14 = vld [vmem:[#allocation5 + $0x1c0] sm:$0xf] }
  0x1c   :  { %v3007_v12 = vor.u32 %v3972_v9, %v3004_v10  ;;  %v3970_v15 = vld [vmem:[#allocation5 + $0x1cc] sm:$0xf0]  ;;  %720 = vmatpush.bf16.msra.mxu1 %v3003_v7  ;;  %v2859_v16 = vor.u32 %v3938_v13, %v2858_v11  ;;  %v3936_v18 = vld [vmem:[#allocation5 + $0xc4] sm:$0xf]  ;;  %v2860_v19 = vld [vmem:[#allocation5 + $0xd0] sm:$0xf0] }
  0x1d   :  { %733 = vmatpush.bf16.msra.mxu2 %v2879_v8  ;;  %v2987_v17 = vor.u32 %v3970_v15, %v2986_v14  ;;  %v3968_v20 = vld [vmem:[#allocation5 + $0x1c4] sm:$0xf]  ;;  %v2863_v21 = vor.u32 %v3936_v18, %v2860_v19  ;;  %v2988_v22 = vld [vmem:[#allocation5 + $0x1d0] sm:$0xf0]  ;;  %v2842_v23 = vld [vmem:[#allocation5 + $0xa0] sm:$0xf] }
  0x1e   :  { %746 = vmatpush.bf16.msra.mxu3 %v3007_v12  ;;  %v3934_v24 = vld [vmem:[#allocation5 + $0xac] sm:$0xf0]  ;;  %v2991_v25 = vor.u32 %v3968_v20, %v2988_v22  ;;  %v2970_v26 = vld [vmem:[#allocation5 + $0x1a0] sm:$0xf]  ;;  %v3932_v28 = vld [vmem:[#allocation5 + $0xa4] sm:$0xf] }
  0x1f   :  { %v3966_v27 = vld [vmem:[#allocation5 + $0x1ac] sm:$0xf0]  ;;  %708 = vmatpush.bf16.msra.mxu0 %v2859_v16  ;;  %v2843_v29 = vor.u32 %v3934_v24, %v2842_v23  ;;  %v2844_v30 = vld [vmem:[#allocation5 + $0xb0] sm:$0xf0]  ;;  %v3964_v31 = vld [vmem:[#allocation5 + $0x1a4] sm:$0xf] }
  0x20   :  { %v2972_v32 = vld [vmem:[#allocation5 + $0x1b0] sm:$0xf0]  ;;  %721 = vmatpush.bf16.msra.mxu1 %v2987_v17  ;;  %v2971_v33 = vor.u32 %v3966_v27, %v2970_v26  ;;  %v2847_v34 = vor.u32 %v3932_v28, %v2844_v30  ;;  %v2826_v35 = vld [vmem:[#allocation5 + $0x80] sm:$0xf]  ;;  %v3930_v36 = vld [vmem:[#allocation5 + $0x8c] sm:$0xf0] }
  0x21   :  { %734 = vmatpush.bf16.msra.mxu2 %v2863_v21  ;;  %v2954_v37 = vld [vmem:[#allocation5 + $0x180] sm:$0xf]  ;;  %v2975_v38 = vor.u32 %v3964_v31, %v2972_v32  ;;  %v3962_v39 = vld [vmem:[#allocation5 + $0x18c] sm:$0xf0]  ;;  %v3928_v40 = vld [vmem:[#allocation5 + $0x84] sm:$0xf]  ;;  %v2827_v44 = vor.u32 %v3930_v36, %v2826_v35 }
  0x22   :  { %747 = vmatpush.bf16.msra.mxu3 %v2991_v25  ;;  %v2828_v41 = vld [vmem:[#allocation5 + $0x90] sm:$0xf0]  ;;  %v3960_v42 = vld [vmem:[#allocation5 + $0x184] sm:$0xf]  ;;  %v2810_v45 = vld [vmem:[#allocation5 + $0x60] sm:$0xf]  ;;  %v2955_v46 = vor.u32 %v3962_v39, %v2954_v37 }
  0x23   :  { %v2956_v43 = vld [vmem:[#allocation5 + $0x190] sm:$0xf0]  ;;  %709 = vmatpush.bf16.msra.mxu0 %v2843_v29  ;;  %v2831_v47 = vor.u32 %v3928_v40, %v2828_v41  ;;  %v3926_v48 = vld [vmem:[#allocation5 + $0x6c] sm:$0xf0]  ;;  %v2938_v49 = vld [vmem:[#allocation5 + $0x160] sm:$0xf] }
  0x24   :  { %722 = vmatpush.bf16.msra.mxu1 %v2971_v33  ;;  %v3958_v50 = vld [vmem:[#allocation5 + $0x16c] sm:$0xf0]  ;;  %v2959_v51 = vor.u32 %v3960_v42, %v2956_v43  ;;  %v3924_v52 = vld [vmem:[#allocation5 + $0x64] sm:$0xf]  ;;  %v2812_v53 = vld [vmem:[#allocation5 + $0x70] sm:$0xf0]  ;;  %v2811_v58 = vor.u32 %v3926_v48, %v2810_v45 }
  0x25   :  { %735 = vmatpush.bf16.msra.mxu2 %v2847_v34  ;;  %v3956_v54 = vld [vmem:[#allocation5 + $0x164] sm:$0xf]  ;;  %v2940_v55 = vld [vmem:[#allocation5 + $0x170] sm:$0xf0]  ;;  %v2794_v56 = vld [vmem:[#allocation5 + $0x40] sm:$0xf]  ;;  %v2939_v63 = vor.u32 %v3958_v50, %v2938_v49  ;;  %v2815_v0 = vor.u32 %v3924_v52, %v2812_v53 }
  0x26   :  { %748 = vmatpush.bf16.msra.mxu3 %v2975_v38  ;;  %v3922_v57 = vld [vmem:[#allocation5 + $0x4c] sm:$0xf0]  ;;  %v2922_v59 = vld [vmem:[#allocation5 + $0x140] sm:$0xf]  ;;  %v3920_v61 = vld [vmem:[#allocation5 + $0x44] sm:$0xf]  ;;  %v2943_v4 = vor.u32 %v3956_v54, %v2940_v55 }
  0x27   :  { %710 = vmatpush.bf16.msra.mxu0 %v2827_v44  ;;  %v3954_v60 = vld [vmem:[#allocation5 + $0x14c] sm:$0xf0]  ;;  %v4387_v62 = vmov 8.0   ;;  %v2796_v1 = vld [vmem:[#allocation5 + $0x50] sm:$0xf0]  ;;  %v2795_v14 = vor.u32 %v3922_v57, %v2794_v56  ;;  %v99_v45 = vld [vmem:[#allocation2] sm:$0xff] }
  0x28   :  { %4214 = vrcp.f32 %v4387_v62  ;;  %723 = vmatpush.bf16.msra.mxu1 %v2955_v46  ;;  %v3952_v2 = vld [vmem:[#allocation5 + $0x144] sm:$0xf]  ;;  %v2924_v3 = vld [vmem:[#allocation5 + $0x150] sm:$0xf0]  ;;  %v4435_v5 = vld [vmem:[#allocation5 + $0x20] sm:$0xf]  ;;  %v2923_v18 = vor.u32 %v3954_v60, %v2922_v59  ;;  %v2799_v19 = vor.u32 %v3920_v61, %v2796_v1 }
  0x29   :  { %736 = vmatpush.bf16.msra.mxu2 %v2831_v47  ;;  %v4437_v6 = vld [vmem:[#allocation5 + $0x2c] sm:$0xf0]  ;;  %v4439_v7 = vld [vmem:[#allocation5 + $0x120] sm:$0xf]  ;;  %v4443_v9 = vld [vmem:[#allocation5 + $0x24] sm:$0xf]  ;;  %v2927_v24 = vor.u32 %v3952_v2, %v2924_v3 }
  0x2a   :  { %749 = vmatpush.bf16.msra.mxu3 %v2959_v51  ;;  %v4441_v8 = vld [vmem:[#allocation5 + $0x12c] sm:$0xf0]  ;;  %v4445_v10 = vld [vmem:[#allocation5 + $0x30] sm:$0xf0]  ;;  %v4447_v11 = vld [vmem:[#allocation5 + $0x124] sm:$0xf]  ;;  %v2779_v28 = vor.u32 %v4437_v6, %v4435_v5 }
  0x2b   :  { %v4449_v12 = vld [vmem:[#allocation5 + $0x130] sm:$0xf0]  ;;  %v4451_v13 = vld [vmem:[#allocation5] sm:$0xf]  ;;  %711 = vmatpush.bf16.msra.mxu0 %v2811_v58  ;;  %v4453_v15 = vld [vmem:[#allocation5 + $0xc] sm:$0xf0]  ;;  %v2907_v29 = vor.u32 %v4441_v8, %v4439_v7  ;;  %v2783_v30 = vor.u32 %v4443_v9, %v4445_v10 }
  0x2c   :  { %v4455_v16 = vld [vmem:[#allocation5 + $0x100] sm:$0xf]  ;;  %v4457_v17 = vld [vmem:[#allocation5 + $0x10c] sm:$0xf0]  ;;  %724 = vmatpush.bf16.msra.mxu1 %v2939_v63  ;;  %v4459_v20 = vld [vmem:[#allocation5 + $0x4] sm:$0xf]  ;;  %v2911_v31 = vor.u32 %v4447_v11, %v4449_v12  ;;  %v2763_v35 = vor.u32 %v4453_v15, %v4451_v13 }
  0x2d   :  { %737 = vmatpush.bf16.msra.mxu2 %v2815_v0  ;;  %v4461_v21 = vld [vmem:[#allocation5 + $0x10] sm:$0xf0]  ;;  %v4463_v22 = vld [vmem:[#allocation5 + $0x104] sm:$0xf]  ;;  %v4469_v26 = vld [vmem:[#allocation5 + $0xe8] sm:$0xf]  ;;  %v2891_v36 = vor.u32 %v4457_v17, %v4455_v16 }
  0x2e   :  { %v4465_v23 = vpop.eup %4214  ;;  %750 = vmatpush.bf16.msra.mxu3 %v2943_v4  ;;  %v4467_v25 = vld [vmem:[#allocation5 + $0x110] sm:$0xf0]  ;;  %v4471_v27 = vld [vmem:[#allocation5 + $0xf4] sm:$0xf0]  ;;  %v4481_v32 = vld [vmem:[#allocation5 + $0x1e8] sm:$0xf]  ;;  %v2767_v37 = vor.u32 %v4459_v20, %v4461_v21 }
  0x2f   :  { %v4483_v33 = vld [vmem:[#allocation5 + $0x1f4] sm:$0xf0]  ;;  %v4485_v34 = vld [vmem:[#allocation5 + $0xec] sm:$0xf]  ;;  %712 = vmatpush.bf16.msra.mxu0 %v2795_v14  ;;  %v2895_v38 = vor.u32 %v4463_v22, %v4467_v25  ;;  %v4495_v39 = vld [vmem:[#allocation5 + $0xf8] sm:$0xf0]  ;;  %v2883_v42 = vor.u32 %v4471_v27, %v4469_v26  ;;  %vm216_vm0 = vweird.f32 %v4465_v23 }
  0x30   :  { %v4497_v40 = vld [vmem:[#allocation5 + $0x1ec] sm:$0xf]  ;;  %v4499_v41 = vld [vmem:[#allocation5 + $0x1f8] sm:$0xf0]  ;;  %725 = vmatpush.bf16.msra.mxu1 %v2923_v18  ;;  %v3011_v43 = vor.u32 %v4483_v33, %v4481_v32  ;;  %v2887_v44 = vor.u32 %v4485_v34, %v4495_v39  ;;  %v101_v46 = vld [vmem:[#allocation2 + $0x10] sm:$0xff]  ;;  %v4508_v48 = vmul.f32 8.0, %v4465_v23 }
  0x31   :  { %738 = vmatpush.bf16.msra.mxu2 %v2799_v19  ;;  %v103_v47 = vld [vmem:[#allocation2 + $0x20] sm:$0xff]  ;;  %v3015_v49 = vor.u32 %v4497_v40, %v4499_v41  ;;  %v105_v50 = vld [vmem:[#allocation2 + $0x30] sm:$0xff]  ;;  %v115_v53 = vrot.slane %v99_v45, 4  ;;  %v127_v54 = vrot.slane %v101_v46, 4  ;;  %v100_v34 = vld [vmem:[#allocation2 + $0x8] sm:$0xff]  ;;  %vm362_vm1 = vcmask 1041409  }
  0x32   :  { %751 = vmatpush.bf16.msra.mxu3 %v2927_v24  ;;  %v107_v51 = vld [vmem:[#allocation2 + $0x40] sm:$0xff]  ;;  %v109_v52 = vld [vmem:[#allocation2 + $0x50] sm:$0xff]  ;;  %v139_v55 = vrot.slane %v103_v47, 4  ;;  %v151_v58 = vrot.slane %v105_v50, 4  ;;  %v213_v61 = vsub.f32 1.0, %v4508_v48  ;;  %v106_v41 = vld [vmem:[#allocation2 + $0x38] sm:$0xff] }
  0x33   :  { %v111_v56 = vld [vmem:[#allocation2 + $0x60] sm:$0xff]  ;;  %v113_v57 = vld [vmem:[#allocation2 + $0x70] sm:$0xff]  ;;  %v163_v59 = vrot.slane %v107_v51, 4  ;;  %v175_v60 = vrot.slane %v109_v52, 4  ;;  %713 = vmatpush.bf16.msra.mxu0 %v2779_v28  ;;  %v116_v62 = vadd.f32 %v115_v53, %v99_v45  ;;  %v128_v63 = vadd.f32 %v127_v54, %v101_v46  ;;  %s4389_s2 = smov [#allocation11]   ;;  %s2748_s23 = sshll.u32 %s4754_s5, 4  ;;  %s2749_s23 = int_to_ptr.hbm [resolvable:$true] %s2748_s23 }
  0x34   :  { %v140_v0 = vadd.f32 %v139_v55, %v103_v47  ;;  %v187_v1 = vrot.slane %v111_v56, 4  ;;  %726 = vmatpush.bf16.msra.mxu1 %v2907_v29  ;;  %v152_v2 = vadd.f32 %v151_v58, %v105_v50  ;;  %v199_v5 = vrot.slane %v113_v57, 4  ;;  %v4515_v47 = vld [vmem:[#allocation2 + $0x68] sm:$0xff]  ;;  %s2746_s4 = sshll.u32 %s4389_s2, 4  ;;  %s2747_s4 = int_to_ptr.vmem [resolvable:$true] %s2746_s4 }
  0x35   :  { %739 = vmatpush.bf16.msra.mxu2 %v2783_v30  ;;  %v164_v3 = vadd.f32 %v163_v59, %v107_v51  ;;  %v176_v4 = vadd.f32 %v175_v60, %v109_v52  ;;  %v117_v6 = vrot.slane %v116_v62, 2  ;;  %v129_v7 = vrot.slane %v128_v63, 2 }
  0x36   :  { %752 = vmatpush.bf16.msra.mxu3 %v2911_v31  ;;  %v141_v8 = vrot.slane %v140_v0, 2  ;;  %v188_v9 = vadd.f32 %v187_v1, %v111_v56  ;;  %v153_v10 = vrot.slane %v152_v2, 2  ;;  %v200_v13 = vadd.f32 %v199_v5, %v113_v57 }
  0x37   :  { %v165_v11 = vrot.slane %v164_v3, 2  ;;  %v177_v12 = vrot.slane %v176_v4, 2  ;;  %714 = vmatpush.bf16.msra.mxu0 %v2763_v35  ;;  %v118_v14 = vadd.f32 %v117_v6, %v116_v62  ;;  %v130_v15 = vadd.f32 %v129_v7, %v128_v63  ;;  %v102_v35 = vld [vmem:[#allocation2 + $0x18] sm:$0xff] }
  0x38   :  { %v142_v16 = vadd.f32 %v141_v8, %v140_v0  ;;  %v189_v17 = vrot.slane %v188_v9, 2  ;;  %727 = vmatpush.bf16.msra.mxu1 %v2891_v36  ;;  %v154_v18 = vadd.f32 %v153_v10, %v152_v2  ;;  %v201_v21 = vrot.slane %v200_v13, 2  ;;  %v104_v36 = vld [vmem:[#allocation2 + $0x28] sm:$0xff] }
  0x39   :  { %740 = vmatpush.bf16.msra.mxu2 %v2767_v37  ;;  %v166_v19 = vadd.f32 %v165_v11, %v164_v3  ;;  %v178_v20 = vadd.f32 %v177_v12, %v176_v4  ;;  %v119_v22 = vrot.slane %v118_v14, 1  ;;  %v131_v24 = vrot.slane %v130_v15, 1 }
  0x3a   :  { %753 = vmatpush.bf16.msra.mxu3 %v2895_v38  ;;  %v143_v25 = vrot.slane %v142_v16, 1  ;;  %v190_v26 = vadd.f32 %v189_v17, %v188_v9  ;;  %v155_v27 = vrot.slane %v154_v18, 1  ;;  %v202_v30 = vadd.f32 %v201_v21, %v200_v13 }
  0x3b   :  { %759 = vmatpush.bf16.msrb.mxu0 %v2883_v42  ;;  %v167_v28 = vrot.slane %v166_v19, 1  ;;  %v179_v29 = vrot.slane %v178_v20, 1  ;;  %v120_v32 = vadd.f32 %v119_v22, %v118_v14  ;;  %v132_v37 = vadd.f32 %v131_v24, %v130_v15  ;;  %v108_v42 = vld [vmem:[#allocation2 + $0x48] sm:$0xff] }
  0x3c   :  { %772 = vmatpush.bf16.msrb.mxu1 %v3011_v43  ;;  %v191_v31 = vrot.slane %v190_v26, 1  ;;  %v203_v33 = vrot.slane %v202_v30, 1  ;;  %v144_v38 = vadd.f32 %v143_v25, %v142_v16  ;;  %v156_v39 = vadd.f32 %v155_v27, %v154_v18  ;;  %v110_v43 = vld [vmem:[#allocation2 + $0x58] sm:$0xff] }
  0x3d   :  { %785 = vmatpush.bf16.msrb.mxu2 %v2887_v44  ;;  %v214_v40 = vmul.f32 %v4465_v23, %v213_v61  ;;  %v168_v44 = vadd.f32 %v167_v28, %v166_v19  ;;  %v180_v45 = vadd.f32 %v179_v29, %v178_v20  ;;  %vm364_vm2 = vcmask 1042434  }
  0x3e   :  { %798 = vmatpush.bf16.msrb.mxu3 %v3015_v49  ;;  %v192_v46 = vadd.f32 %v191_v31, %v190_v26  ;;  %v204_v48 = vadd.f32 %v203_v33, %v202_v30  ;;  %vm366_vm3 = vcmask 1043459   ;;  %v121_v50 = vrot.slane %v100_v34, 4 }
  0x3f   :  { %v215_v49 = vadd.f32 %v4465_v23, %v214_v40  ;;  %v133_v51 = vrot.slane %v102_v35, 4  ;;  %vm368_vm4 = vcmask 1044484   ;;  %v145_v52 = vrot.slane %v104_v36, 4 }
  0x40   :  { %v157_v53 = vrot.slane %v106_v41, 4  ;;  %v169_v54 = vrot.slane %v108_v42, 4  ;;  %v181_v55 = vrot.slane %v110_v43, 4  ;;  %vm370_vm5 = vcmask 1045509  }
  0x41   :  { %v4521_v56 = vsel %vm216_vm0, %v4465_v23, %v215_v49  ;;  %v122_v57 = vadd.f32 %v121_v50, %v100_v34  ;;  %v134_v58 = vadd.f32 %v133_v51, %v102_v35  ;;  %v193_v59 = vrot.slane %v4515_v47, 4 }
  0x42   :  { %v4525_v60 = vmul.f32 %v4521_v56, %v120_v32  ;;  %v4528_v61 = vmul.f32 %v4521_v56, %v132_v37  ;;  %v4531_v62 = vmul.f32 %v4521_v56, %v144_v38  ;;  %v4534_v63 = vmul.f32 %v4521_v56, %v156_v39 }
  0x43   :  { %vm372_vm6 = vcmask 1046534   ;;  %v4537_v23 = vmul.f32 %v4521_v56, %v168_v44  ;;  %v4540_v0 = vmul.f32 %v4521_v56, %v180_v45  ;;  %v4543_v1 = vmul.f32 %v4521_v56, %v192_v46 }
  0x44   :  { %v4546_v2 = vmul.f32 %v4521_v56, %v204_v48  ;;  %vm374_vm7 = vcmask 1047559   ;;  %v241_v3 = vpack.c.bf16 %v4525_v60, %v4525_v60  ;;  %v243_v4 = vpack.c.bf16 %v4528_v61, %v4528_v61 }
  0x45   :  { %v245_v5 = vpack.c.bf16 %v4531_v62, %v4531_v62  ;;  %v247_v6 = vpack.c.bf16 %v4534_v63, %v4534_v63  ;;  %v249_v7 = vpack.c.bf16 %v4537_v23, %v4537_v23  ;;  %v251_v8 = vpack.c.bf16 %v4540_v0, %v4540_v0 }
  0x46   :  { %v253_v9 = vpack.c.bf16 %v4543_v1, %v4543_v1  ;;  %v255_v10 = vpack.c.bf16 %v4546_v2, %v4546_v2  ;;  %v346_v11 = vunpack.c.l.b16 %v241_v3  ;;  %v348_v12 = vunpack.c.l.b16 %v243_v4 }
  0x47   :  { %v350_v13 = vunpack.c.l.b16 %v245_v5  ;;  %v352_v14 = vunpack.c.l.b16 %v247_v6  ;;  %v354_v15 = vunpack.c.l.b16 %v249_v7  ;;  %v356_v16 = vunpack.c.l.b16 %v251_v8 }
  0x48   :  { %v358_v17 = vunpack.c.l.b16 %v253_v9  ;;  %v360_v18 = vunpack.c.l.b16 %v255_v10  ;;  %v363_v19 = vsel %vm362_vm1, %v348_v12, %v346_v11  ;;  %v123_v20 = vrot.slane %v122_v57, 2 }
  0x49   :  { %v135_v21 = vrot.slane %v134_v58, 2  ;;  %v146_v22 = vadd.f32 %v145_v52, %v104_v36  ;;  %v365_v24 = vsel %vm364_vm2, %v350_v13, %v363_v19  ;;  %v158_v25 = vadd.f32 %v157_v53, %v106_v41  ;;  %v114_v41 = vld [vmem:[#allocation2 + $0x78] sm:$0xff] }
  0x4a   :  { %v170_v26 = vadd.f32 %v169_v54, %v108_v42  ;;  %v182_v27 = vadd.f32 %v181_v55, %v110_v43  ;;  %v367_v28 = vsel %vm366_vm3, %v352_v14, %v365_v24  ;;  %v124_v29 = vadd.f32 %v123_v20, %v122_v57  ;;  %v3939_v13 = vld [vmem:[#allocation5 + $0xd4] sm:$0xf0]  ;;  %v2994_v14 = vld [vmem:[#allocation5 + $0x1c8] sm:$0xf]  ;;  %v3937_v20 = vld [vmem:[#allocation5 + $0xcc] sm:$0xf] }
  0x4b   :  { %v136_v30 = vadd.f32 %v135_v21, %v134_v58  ;;  %v147_v31 = vrot.slane %v146_v22, 2  ;;  %v369_v32 = vsel %vm368_vm4, %v354_v15, %v367_v28  ;;  %v159_v33 = vrot.slane %v158_v25, 2  ;;  %v3971_v15 = vld [vmem:[#allocation5 + $0x1d4] sm:$0xf0]  ;;  %v2868_v21 = vld [vmem:[#allocation5 + $0xd8] sm:$0xf0] }
  0x4c   :  { %v171_v34 = vrot.slane %v170_v26, 2  ;;  %v183_v35 = vrot.slane %v182_v27, 2  ;;  %v371_v37 = vsel %vm370_vm5, %v356_v16, %v369_v32  ;;  %v125_v38 = vrot.slane %v124_v29, 1  ;;  %v2996_v28 = vld [vmem:[#allocation5 + $0x1d8] sm:$0xf0] }
  0x4d   :  { %v137_v39 = vrot.slane %v136_v30, 1  ;;  %v148_v36 = vadd.f32 %v147_v31, %v146_v22  ;;  %v373_v40 = vsel %vm372_vm6, %v358_v17, %v371_v37  ;;  %v160_v42 = vadd.f32 %v159_v33, %v158_v25 }
  0x4e   :  { %v172_v43 = vadd.f32 %v171_v34, %v170_v26  ;;  %v184_v44 = vadd.f32 %v183_v35, %v182_v27  ;;  %v375_v45 = vsel %vm374_vm7, %v360_v18, %v373_v40  ;;  %v126_v46 = vadd.f32 %v125_v38, %v124_v29  ;;  %v3969_v27 = vld [vmem:[#allocation5 + $0x1cc] sm:$0xf]  ;;  %v2850_v29 = vld [vmem:[#allocation5 + $0xa8] sm:$0xf]  ;;  %v3935_v34 = vld [vmem:[#allocation5 + $0xb4] sm:$0xf0] }
  0x4f   :  { %v138_v48 = vadd.f32 %v137_v39, %v136_v30  ;;  %v149_v49 = vrot.slane %v148_v36, 1  ;;  %v4571_v50 = vpack.c.b16 %v375_v45, %v375_v45  ;;  %v161_v51 = vrot.slane %v160_v42, 1  ;;  %v2978_v35 = vld [vmem:[#allocation5 + $0x1a8] sm:$0xf]  ;;  %v3967_v40 = vld [vmem:[#allocation5 + $0x1b4] sm:$0xf0] }
  0x50   :  { %v173_v52 = vrot.slane %v172_v43, 1  ;;  %v185_v53 = vrot.slane %v184_v44, 1  ;;  %v194_v55 = vadd.f32 %v193_v59, %v4515_v47  ;;  %v205_v57 = vrot.slane %v114_v41, 4  ;;  %v2866_v47 = vld [vmem:[#allocation5 + $0xc8] sm:$0xf] }
  0x51   :  { %v150_v54 = vadd.f32 %v149_v49, %v148_v36  ;;  %v4575_v58 = vmul.f32 %v4521_v56, %v126_v46  ;;  %715 = vmatmul.bf16.vlgmr.msra.gmra.mxu0 %v4571_v50  ;;  %741 = vmatmul.bf16.vlgmr.msra.gmra.mxu2 %v4571_v50  ;;  %v162_v3 = vadd.f32 %v161_v51, %v160_v42  ;;  %v2852_v42 = vld [vmem:[#allocation5 + $0xb8] sm:$0xf0] }
  0x52   :  { %v174_v4 = vadd.f32 %v173_v52, %v172_v43  ;;  %v186_v5 = vadd.f32 %v185_v53, %v184_v44  ;;  %v195_v6 = vrot.slane %v194_v55, 2  ;;  %v206_v7 = vadd.f32 %v205_v57, %v114_v41  ;;  %v3933_v41 = vld [vmem:[#allocation5 + $0xac] sm:$0xf]  ;;  %v2980_v49 = vld [vmem:[#allocation5 + $0x1b8] sm:$0xf0] }
  0x53   :  { %v4580_v8 = vmul.f32 %v4521_v56, %v138_v48  ;;  %v4583_v9 = vmul.f32 %v4521_v56, %v150_v54  ;;  %v4586_v59 = vmul.f32 %v4521_v56, %v162_v3  ;;  %v242_v12 = vpack.c.bf16 %v4575_v58, %v4575_v58  ;;  %v3965_v48 = vld [vmem:[#allocation5 + $0x1ac] sm:$0xf] }
  0x54   :  { %v4589_v10 = vmul.f32 %v4521_v56, %v174_v4  ;;  %v4592_v11 = vmul.f32 %v4521_v56, %v186_v5  ;;  %v196_v16 = vadd.f32 %v195_v6, %v194_v55  ;;  %v207_v17 = vrot.slane %v206_v7, 2  ;;  %v2834_v5 = vld [vmem:[#allocation5 + $0x88] sm:$0xf]  ;;  %v3931_v6 = vld [vmem:[#allocation5 + $0x94] sm:$0xf0] }
  0x55   :  { %v244_v18 = vpack.c.bf16 %v4580_v8, %v4580_v8  ;;  %v246_v19 = vpack.c.bf16 %v4583_v9, %v4583_v9  ;;  %v248_v22 = vpack.c.bf16 %v4586_v59, %v4586_v59  ;;  %v347_v26 = vunpack.c.l.b16 %v242_v12 }
  0x56   :  { %v250_v24 = vpack.c.bf16 %v4589_v10, %v4589_v10  ;;  %v252_v25 = vpack.c.bf16 %v4592_v11, %v4592_v11  ;;  %v197_v30 = vrot.slane %v196_v16, 1  ;;  %v208_v31 = vadd.f32 %v207_v17, %v206_v7 }
  0x57   :  { %v349_v32 = vunpack.c.l.b16 %v244_v18  ;;  %v351_v33 = vunpack.c.l.b16 %v246_v19  ;;  %v353_v37 = vunpack.c.l.b16 %v248_v22  ;;  %v2867_v36 = vor.u32 %v3939_v13, %v2866_v47  ;;  %v2962_v13 = vld [vmem:[#allocation5 + $0x188] sm:$0xf]  ;;  %v2836_v18 = vld [vmem:[#allocation5 + $0x98] sm:$0xf0]  ;;  %v3961_v19 = vld [vmem:[#allocation5 + $0x18c] sm:$0xf] }
  0x58   :  { %v355_v38 = vunpack.c.l.b16 %v250_v24  ;;  %v357_v39 = vunpack.c.l.b16 %v252_v25  ;;  %v198_v43 = vadd.f32 %v197_v30, %v196_v16  ;;  %v209_v44 = vrot.slane %v208_v31, 1  ;;  %v2946_v30 = vld [vmem:[#allocation5 + $0x168] sm:$0xf] }
  0x59   :  { %v376_v45 = vsel %vm362_vm1, %v349_v32, %v347_v26  ;;  %v2995_v46 = vor.u32 %v3971_v15, %v2994_v14  ;;  %760 = vmatpush.bf16.msrb.mxu0 %v2867_v36  ;;  %v2871_v52 = vor.u32 %v3937_v20, %v2868_v21  ;;  %v2999_v53 = vor.u32 %v3969_v27, %v2996_v28  ;;  %v3963_v14 = vld [vmem:[#allocation5 + $0x194] sm:$0xf0]  ;;  %v3929_v15 = vld [vmem:[#allocation5 + $0x8c] sm:$0xf]  ;;  %v2964_v20 = vld [vmem:[#allocation5 + $0x198] sm:$0xf0] }
  0x5a   :  { %v377_v51 = vsel %vm364_vm2, %v351_v33, %v376_v45  ;;  %v2851_v54 = vor.u32 %v3935_v34, %v2850_v29  ;;  %v210_v55 = vadd.f32 %v209_v44, %v208_v31  ;;  %v4609_v57 = vmul.f32 %v4521_v56, %v198_v43  ;;  %v2818_v27 = vld [vmem:[#allocation5 + $0x68] sm:$0xf]  ;;  %v3927_v28 = vld [vmem:[#allocation5 + $0x74] sm:$0xf0]  ;;  %v3925_v32 = vld [vmem:[#allocation5 + $0x6c] sm:$0xf] }
  0x5b   :  { %v378_v3 = vsel %vm366_vm3, %v353_v37, %v377_v51  ;;  %773 = vmatpush.bf16.msrb.mxu1 %v2995_v46  ;;  %v2979_v4 = vor.u32 %v3967_v40, %v2978_v35  ;;  %786 = vmatpush.bf16.msrb.mxu2 %v2871_v52  ;;  %v2855_v47 = vor.u32 %v3933_v41, %v2852_v42  ;;  %v3959_v31 = vld [vmem:[#allocation5 + $0x174] sm:$0xf0]  ;;  %v2820_v35 = vld [vmem:[#allocation5 + $0x78] sm:$0xf0]  ;;  %v3957_v37 = vld [vmem:[#allocation5 + $0x16c] sm:$0xf] }
  0x5c   :  { %v379_v7 = vsel %vm368_vm4, %v355_v38, %v378_v3  ;;  %799 = vmatpush.bf16.msrb.mxu3 %v2999_v53  ;;  %v2983_v12 = vor.u32 %v3965_v48, %v2980_v49  ;;  %v4614_v16 = vmul.f32 %v4521_v56, %v210_v55  ;;  %v254_v17 = vpack.c.bf16 %v4609_v57, %v4609_v57  ;;  %v2948_v38 = vld [vmem:[#allocation5 + $0x178] sm:$0xf0]  ;;  %v2802_v41 = vld [vmem:[#allocation5 + $0x48] sm:$0xf]  ;;  %v3923_v42 = vld [vmem:[#allocation5 + $0x54] sm:$0xf0] }
  0x5d   :  { %v380_v21 = vsel %vm370_vm5, %v357_v39, %v379_v7  ;;  %761 = vmatpush.bf16.msrb.mxu0 %v2851_v54  ;;  %v2835_v22 = vor.u32 %v3931_v6, %v2834_v5  ;;  %v2963_v26 = vor.u32 %v3963_v14, %v2962_v13  ;;  %v2839_v56 = vor.u32 %v3929_v15, %v2836_v18  ;;  %v2930_v46 = vld [vmem:[#allocation5 + $0x148] sm:$0xf]  ;;  %v3955_v48 = vld [vmem:[#allocation5 + $0x154] sm:$0xf0]  ;;  %v3921_v49 = vld [vmem:[#allocation5 + $0x4c] sm:$0xf] }
  0x5e   :  { %v256_v24 = vpack.c.bf16 %v4614_v16, %v4614_v16  ;;  %v359_v25 = vunpack.c.l.b16 %v254_v17  ;;  %v2967_v29 = vor.u32 %v3961_v19, %v2964_v20  ;;  %v2819_v36 = vor.u32 %v3927_v28, %v2818_v27  ;;  %v2804_v51 = vld [vmem:[#allocation5 + $0x58] sm:$0xf0]  ;;  %v3953_v52 = vld [vmem:[#allocation5 + $0x14c] sm:$0xf]  ;;  %v2786_v3 = vld [vmem:[#allocation5 + $0x28] sm:$0xf] }
  0x5f   :  { %774 = vmatpush.bf16.msrb.mxu1 %v2979_v4  ;;  %787 = vmatpush.bf16.msrb.mxu2 %v2855_v47  ;;  %v2947_v40 = vor.u32 %v3959_v31, %v2946_v30  ;;  %v2823_v44 = vor.u32 %v3925_v32, %v2820_v35  ;;  %v2951_v45 = vor.u32 %v3957_v37, %v2948_v38  ;;  %v2932_v53 = vld [vmem:[#allocation5 + $0x158] sm:$0xf0]  ;;  %v3919_v4 = vld [vmem:[#allocation5 + $0x34] sm:$0xf0]  ;;  %v2914_v7 = vld [vmem:[#allocation5 + $0x128] sm:$0xf] }
  0x60   :  { %800 = vmatpush.bf16.msrb.mxu3 %v2983_v12  ;;  %v361_v33 = vunpack.c.l.b16 %v256_v24  ;;  %v381_v34 = vsel %vm372_vm6, %v359_v25, %v380_v21  ;;  %v2803_v54 = vor.u32 %v3923_v42, %v2802_v41  ;;  %v2931_v55 = vor.u32 %v3955_v48, %v2930_v46  ;;  %v3951_v47 = vld [vmem:[#allocation5 + $0x134] sm:$0xf0]  ;;  %v3917_v12 = vld [vmem:[#allocation5 + $0x2c] sm:$0xf]  ;;  %v2788_v13 = vld [vmem:[#allocation5 + $0x38] sm:$0xf0] }
  0x61   :  { %762 = vmatpush.bf16.msrb.mxu0 %v2835_v22  ;;  %v2807_v5 = vor.u32 %v3921_v49, %v2804_v51  ;;  %v2935_v6 = vor.u32 %v3953_v52, %v2932_v53  ;;  %v3949_v14 = vld [vmem:[#allocation5 + $0x12c] sm:$0xf]  ;;  %v2916_v15 = vld [vmem:[#allocation5 + $0x138] sm:$0xf0]  ;;  %v2787_v17 = vor.u32 %v3919_v4, %v2786_v3  ;;  %v2915_v18 = vor.u32 %v3951_v47, %v2914_v7  ;;  %v2770_v19 = vld [vmem:[#allocation5 + $0x8] sm:$0xf] }
  0x62   :  { %v382_v39 = vsel %vm374_vm7, %v361_v33, %v381_v34  ;;  %v3915_v20 = vld [vmem:[#allocation5 + $0x14] sm:$0xf0]  ;;  %v2898_v21 = vld [vmem:[#allocation5 + $0x108] sm:$0xf]  ;;  %v2791_v22 = vor.u32 %v3917_v12, %v2788_v13  ;;  %v2919_v24 = vor.u32 %v3949_v14, %v2916_v15  ;;  %v2772_v27 = vld [vmem:[#allocation5 + $0x18] sm:$0xf0] }
  0x63   :  { %775 = vmatpush.bf16.msrb.mxu1 %v2963_v26  ;;  %v4623_v43 = vpack.c.b16 %v382_v39, %v382_v39  ;;  %788 = vmatpush.bf16.msrb.mxu2 %v2839_v56  ;;  %v3947_v25 = vld [vmem:[#allocation5 + $0x114] sm:$0xf0]  ;;  %v3913_v26 = vld [vmem:[#allocation5 + $0xc] sm:$0xf]  ;;  %v2900_v56 = vld [vmem:[#allocation5 + $0x118] sm:$0xf0]  ;;  %v2771_v33 = vor.u32 %v3915_v20, %v2770_v19 }
  0x64   :  { %801 = vmatpush.bf16.msrb.mxu3 %v2967_v29  ;;  %v3945_v28 = vld [vmem:[#allocation5 + $0x10c] sm:$0xf]  ;;  %v3074_v29 = vld [vmem:[#allocation7 + $0x70] sm:$0xf]  ;;  %v3991_v30 = vld [vmem:[#allocation7 + $0x74] sm:$0xf0]  ;;  %v2899_v34 = vor.u32 %v3947_v25, %v2898_v21  ;;  %v2775_v35 = vor.u32 %v3913_v26, %v2772_v27 }
  0x65   :  { %728 = vmatmul.bf16.vlgmr.msra.gmra.mxu1 %v4623_v43  ;;  %754 = vmatmul.bf16.vlgmr.msra.gmra.mxu3 %v4623_v43  ;;  %v3138_v31 = vld [vmem:[#allocation7 + $0xf0] sm:$0xf]  ;;  %v4007_v32 = vld [vmem:[#allocation7 + $0xf4] sm:$0xf0]  ;;  %v2903_v37 = vor.u32 %v3945_v28, %v2900_v56  ;;  %v3075_v38 = vor.u32 %v3991_v30, %v3074_v29  ;;  %v3066_v39 = vld [vmem:[#allocation7 + $0x60] sm:$0xf] }
  0x66   :  { %763 = vmatpush.bf16.msrb.mxu0 %v2819_v36  ;;  %v3139_v36 = vor.u32 %v4007_v32, %v3138_v31  ;;  %v4023_v41 = vld [vmem:[#allocation7 + $0x174] sm:$0xf0]  ;;  %v3989_v42 = vld [vmem:[#allocation7 + $0x64] sm:$0xf0]  ;;  %v3058_v49 = vld [vmem:[#allocation7 + $0x50] sm:$0xf] }
  0x67   :  { %776 = vmatpush.bf16.msrb.mxu1 %v2947_v40  ;;  %789 = vmatpush.bf16.msrb.mxu2 %v2823_v44  ;;  %v3202_v40 = vld [vmem:[#allocation7 + $0x170] sm:$0xf]  ;;  %v3130_v44 = vld [vmem:[#allocation7 + $0xe0] sm:$0xf]  ;;  %v3067_v48 = vor.u32 %v3989_v42, %v3066_v39  ;;  %v4021_v53 = vld [vmem:[#allocation7 + $0x164] sm:$0xf0] }
  0x68   :  { %802 = vmatpush.bf16.msrb.mxu3 %v2951_v45  ;;  %v4005_v45 = vld [vmem:[#allocation7 + $0xe4] sm:$0xf0]  ;;  %v3203_v46 = vor.u32 %v4023_v41, %v3202_v40  ;;  %v3194_v52 = vld [vmem:[#allocation7 + $0x160] sm:$0xf]  ;;  %v4003_v3 = vld [vmem:[#allocation7 + $0xd4] sm:$0xf0] }
  0x69   :  { %v3131_v51 = vor.u32 %v4005_v45, %v3130_v44  ;;  %v3195_v4 = vor.u32 %v4021_v53, %v3194_v52  ;;  %v3985_v47 = vld [vmem:[#allocation7 + $0x44] sm:$0xf0]  ;;  %v3114_v12 = vld [vmem:[#allocation7 + $0xc0] sm:$0xf]  ;;  %v3042_v15 = vld [vmem:[#allocation7 + $0x30] sm:$0xf] }
  0x6a   :  { %764 = vmatpush.bf16.msrb.mxu0 %v2803_v54  ;;  %v3987_v54 = vld [vmem:[#allocation7 + $0x54] sm:$0xf0]  ;;  %v4001_v13 = vld [vmem:[#allocation7 + $0xc4] sm:$0xf0]  ;;  %v3034_v20 = vld [vmem:[#allocation7 + $0x20] sm:$0xf] }
  0x6b   :  { %777 = vmatpush.bf16.msrb.mxu1 %v2931_v55  ;;  %790 = vmatpush.bf16.msrb.mxu2 %v2807_v5  ;;  %v3122_v55 = vld [vmem:[#allocation7 + $0xd0] sm:$0xf]  ;;  %v3059_v5 = vor.u32 %v3987_v54, %v3058_v49  ;;  %v3999_v19 = vld [vmem:[#allocation7 + $0xb4] sm:$0xf0]  ;;  %v3997_v25 = vld [vmem:[#allocation7 + $0xa4] sm:$0xf0] }
  0x6c   :  { %803 = vmatpush.bf16.msrb.mxu3 %v2935_v6  ;;  %v3050_v6 = vld [vmem:[#allocation7 + $0x40] sm:$0xf]  ;;  %v3123_v7 = vor.u32 %v4003_v3, %v3122_v55  ;;  %v3026_v27 = vld [vmem:[#allocation7 + $0x10] sm:$0xf]  ;;  %v3979_v56 = vld [vmem:[#allocation7 + $0x14] sm:$0xf0] }
  0x6d   :  { %v3051_v14 = vor.u32 %v3985_v47, %v3050_v6  ;;  %v3090_v29 = vld [vmem:[#allocation7 + $0x90] sm:$0xf]  ;;  %v3995_v30 = vld [vmem:[#allocation7 + $0x94] sm:$0xf0]  ;;  %v3027_v31 = vor.u32 %v3979_v56, %v3026_v27  ;;  %v3018_v32 = vld [vmem:[#allocation7] sm:$0xf] }
  0x6e   :  { %765 = vmatpush.bf16.msrb.mxu0 %v2787_v17  ;;  %v3115_v17 = vor.u32 %v4001_v13, %v3114_v12  ;;  %v3076_v39 = vld [vmem:[#allocation7 + $0x78] sm:$0xf0]  ;;  %v3988_v42 = vld [vmem:[#allocation7 + $0x64] sm:$0xf]  ;;  %v3068_v44 = vld [vmem:[#allocation7 + $0x68] sm:$0xf0] }
  0x6f   :  { %778 = vmatpush.bf16.msrb.mxu1 %v2915_v18  ;;  %791 = vmatpush.bf16.msrb.mxu2 %v2791_v22  ;;  %v3983_v18 = vld [vmem:[#allocation7 + $0x34] sm:$0xf0]  ;;  %v3981_v22 = vld [vmem:[#allocation7 + $0x24] sm:$0xf0]  ;;  %v3071_v45 = vor.u32 %v3988_v42, %v3068_v44  ;;  %v4006_v49 = vld [vmem:[#allocation7 + $0xf4] sm:$0xf] }
  0x70   :  { %804 = vmatpush.bf16.msrb.mxu3 %v2919_v24  ;;  %v3098_v24 = vld [vmem:[#allocation7 + $0xa0] sm:$0xf]  ;;  %v3035_v26 = vor.u32 %v3981_v22, %v3034_v20  ;;  %v3140_v52 = vld [vmem:[#allocation7 + $0xf8] sm:$0xf0]  ;;  %v3186_v54 = vld [vmem:[#allocation7 + $0x150] sm:$0xf] }
  0x71   :  { %v3099_v28 = vor.u32 %v3997_v25, %v3098_v24  ;;  %v3143_v53 = vor.u32 %v4006_v49, %v3140_v52  ;;  %v4019_v55 = vld [vmem:[#allocation7 + $0x154] sm:$0xf0]  ;;  %v3986_v3 = vld [vmem:[#allocation7 + $0x54] sm:$0xf]  ;;  %v4037_v47 = vld [vmem:[#allocation7 + $0x1e4] sm:$0xf0] }
  0x72   :  { %766 = vmatpush.bf16.msrb.mxu0 %v2771_v33  ;;  %v3091_v33 = vor.u32 %v3995_v30, %v3090_v29  ;;  %v4004_v12 = vld [vmem:[#allocation7 + $0xe4] sm:$0xf]  ;;  %v4035_v22 = vld [vmem:[#allocation7 + $0x1d4] sm:$0xf0]  ;;  %v4002_v25 = vld [vmem:[#allocation7 + $0xd4] sm:$0xf] }
  0x73   :  { %779 = vmatpush.bf16.msrb.mxu1 %v2899_v34  ;;  %792 = vmatpush.bf16.msrb.mxu2 %v2775_v35  ;;  %v3977_v34 = vld [vmem:[#allocation7 + $0x4] sm:$0xf0]  ;;  %v3082_v35 = vld [vmem:[#allocation7 + $0x80] sm:$0xf]  ;;  %v4015_v56 = vld [vmem:[#allocation7 + $0x134] sm:$0xf0] }
  0x74   :  { %805 = vmatpush.bf16.msrb.mxu3 %v2903_v37  ;;  %v3993_v37 = vld [vmem:[#allocation7 + $0x84] sm:$0xf0]  ;;  %v3982_v29 = vld [vmem:[#allocation7 + $0x34] sm:$0xf]  ;;  %v3036_v44 = vld [vmem:[#allocation7 + $0x28] sm:$0xf0] }
  0x75   :  { %767 = vmatmul.bf16.vlgmr.msrb.gmra.mxu0 %v4571_v50  ;;  %v3083_v40 = vor.u32 %v3993_v37, %v3082_v35  ;;  %v4000_v35 = vld [vmem:[#allocation7 + $0xc4] sm:$0xf]  ;;  %v3998_v49 = vld [vmem:[#allocation7 + $0xb4] sm:$0xf] }
  0x76   :  { %1208 = vmatpush.bf16.msra.mxu0 %v3075_v38  ;;  %780 = vmatmul.bf16.vlgmr.msrb.gmra.mxu1 %v4623_v43  ;;  %v3990_v38 = vld [vmem:[#allocation7 + $0x74] sm:$0xf] }
  0x77   :  { %1221 = vmatpush.bf16.msra.mxu1 %v3139_v36  ;;  %793 = vmatmul.bf16.vlgmr.msrb.gmra.mxu2 %v4571_v50  ;;  %v3106_v50 = vld [vmem:[#allocation7 + $0xb0] sm:$0xf]  ;;  %v3019_v36 = vor.u32 %v3977_v34, %v3018_v32  ;;  %v3079_v41 = vor.u32 %v3990_v38, %v3076_v39  ;;  %v4033_v34 = vld [vmem:[#allocation7 + $0x1c4] sm:$0xf0]  ;;  %v3116_v38 = vld [vmem:[#allocation7 + $0xc8] sm:$0xf0] }
  0x78   :  { %806 = vmatmul.bf16.vlgmr.msrb.gmra.mxu3 %v4623_v43  ;;  %1234 = vmatpush.bf16.msra.mxu2 %v3203_v46  ;;  %v3043_v43 = vor.u32 %v3983_v18, %v3042_v15  ;;  %v3107_v21 = vor.u32 %v3999_v19, %v3106_v50  ;;  %v3266_v46 = vld [vmem:[#allocation7 + $0x1f0] sm:$0xf]  ;;  %v4017_v18 = vld [vmem:[#allocation7 + $0x144] sm:$0xf0]  ;;  %v3984_v50 = vld [vmem:[#allocation7 + $0x44] sm:$0xf]  ;;  %v3119_v39 = vor.u32 %v4000_v35, %v3116_v38 }
  0x79   :  { %v3196_v35 = vld [vmem:[#allocation7 + $0x168] sm:$0xf0]  ;;  %v3210_v38 = vld [vmem:[#allocation7 + $0x180] sm:$0xf] }
  0x7a   :  { %1209 = vmatpush.bf16.msra.mxu0 %v3067_v48  ;;  %v4039_v48 = vld [vmem:[#allocation7 + $0x1f4] sm:$0xf0] }
  0x7b   :  { %1222 = vmatpush.bf16.msra.mxu1 %v3131_v51  ;;  %v3267_v51 = vor.u32 %v4039_v48, %v3266_v46  ;;  %v3234_v46 = vld [vmem:[#allocation7 + $0x1b0] sm:$0xf]  ;;  %v4031_v48 = vld [vmem:[#allocation7 + $0x1b4] sm:$0xf0] }
  0x7c   :  { %1235 = vmatpush.bf16.msra.mxu2 %v3195_v4  ;;  %v3187_v4 = vor.u32 %v4019_v55, %v3186_v54  ;;  %v3235_v52 = vor.u32 %v4031_v48, %v3234_v46  ;;  %v3154_v55 = vld [vmem:[#allocation7 + $0x110] sm:$0xf]  ;;  %v3268_v46 = vld [vmem:[#allocation7 + $0x1f8] sm:$0xf0] }
  0x7d   :  { %1247 = vmatpush.bf16.msra.mxu3 %v3267_v51 }
  0x7e   :  { %1210 = vmatpush.bf16.msra.mxu0 %v3059_v5  ;;  %v3060_v5 = vld [vmem:[#allocation7 + $0x58] sm:$0xf0] }
  0x7f   :  { %1223 = vmatpush.bf16.msra.mxu1 %v3123_v7  ;;  %v3063_v6 = vor.u32 %v3986_v3, %v3060_v5  ;;  %v3258_v7 = vld [vmem:[#allocation7 + $0x1e0] sm:$0xf]  ;;  %v4011_v3 = vld [vmem:[#allocation7 + $0x114] sm:$0xf0] }
  0x80   :  { %1236 = vmatpush.bf16.msra.mxu2 %v3187_v4  ;;  %v3259_v13 = vor.u32 %v4037_v47, %v3258_v7  ;;  %v3978_v4 = vld [vmem:[#allocation7 + $0x14] sm:$0xf]  ;;  %v3155_v5 = vor.u32 %v4011_v3, %v3154_v55  ;;  %v3226_v7 = vld [vmem:[#allocation7 + $0x1a0] sm:$0xf]  ;;  %v4029_v47 = vld [vmem:[#allocation7 + $0x1a4] sm:$0xf0] }
  0x81   :  { %v4036_v55 = vld [vmem:[#allocation7 + $0x1e4] sm:$0xf]  ;;  %v3260_v3 = vld [vmem:[#allocation7 + $0x1e8] sm:$0xf0] }
  0x82   :  { %1211 = vmatpush.bf16.msra.mxu0 %v3051_v14  ;;  %v3132_v14 = vld [vmem:[#allocation7 + $0xe8] sm:$0xf0]  ;;  %1248 = vmatpush.bf16.msra.mxu3 %v3259_v13  ;;  %v3227_v13 = vor.u32 %v4029_v47, %v3226_v7  ;;  %v4016_v7 = vld [vmem:[#allocation7 + $0x144] sm:$0xf] }
  0x83   :  { %1224 = vmatpush.bf16.msra.mxu1 %v3115_v17  ;;  %v3135_v15 = vor.u32 %v4004_v12, %v3132_v14  ;;  %v3178_v17 = vld [vmem:[#allocation7 + $0x140] sm:$0xf]  ;;  %v3996_v14 = vld [vmem:[#allocation7 + $0xa4] sm:$0xf]  ;;  %v3180_v47 = vld [vmem:[#allocation7 + $0x148] sm:$0xf0] }
  0x84   :  { %v3179_v19 = vor.u32 %v4017_v18, %v3178_v17  ;;  %v3146_v17 = vld [vmem:[#allocation7 + $0x100] sm:$0xf] }
  0x86   :  { %1212 = vmatpush.bf16.msra.mxu0 %v3043_v43  ;;  %v3052_v43 = vld [vmem:[#allocation7 + $0x48] sm:$0xf0]  ;;  %1237 = vmatpush.bf16.msra.mxu2 %v3179_v19  ;;  %v3976_v19 = vld [vmem:[#allocation7 + $0x4] sm:$0xf] }
  0x87   :  { %1225 = vmatpush.bf16.msra.mxu1 %v3107_v21  ;;  %v3055_v20 = vor.u32 %v3984_v50, %v3052_v43  ;;  %v3250_v21 = vld [vmem:[#allocation7 + $0x1d0] sm:$0xf]  ;;  %v4009_v50 = vld [vmem:[#allocation7 + $0x104] sm:$0xf0]  ;;  %v3020_v43 = vld [vmem:[#allocation7 + $0x8] sm:$0xf0] }
  0x88   :  { %v3251_v24 = vor.u32 %v4035_v22, %v3250_v21  ;;  %v3023_v21 = vor.u32 %v3976_v19, %v3020_v43  ;;  %v4022_v22 = vld [vmem:[#allocation7 + $0x174] sm:$0xf] }
  0x8a   :  { %1213 = vmatpush.bf16.msra.mxu0 %v3035_v26  ;;  %v3124_v26 = vld [vmem:[#allocation7 + $0xd8] sm:$0xf0]  ;;  %1249 = vmatpush.bf16.msra.mxu3 %v3251_v24 }
  0x8b   :  { %1226 = vmatpush.bf16.msra.mxu1 %v3099_v28  ;;  %v3127_v27 = vor.u32 %v4002_v25, %v3124_v26  ;;  %v3170_v28 = vld [vmem:[#allocation7 + $0x130] sm:$0xf]  ;;  %v3204_v24 = vld [vmem:[#allocation7 + $0x178] sm:$0xf0] }
  0x8c   :  { %v3171_v30 = vor.u32 %v4015_v56, %v3170_v28  ;;  %v3218_v25 = vld [vmem:[#allocation7 + $0x190] sm:$0xf]  ;;  %v4027_v28 = vld [vmem:[#allocation7 + $0x194] sm:$0xf0]  ;;  %v3994_v56 = vld [vmem:[#allocation7 + $0x94] sm:$0xf] }
  0x8e   :  { %1214 = vmatpush.bf16.msra.mxu0 %v3027_v31  ;;  %v3044_v31 = vld [vmem:[#allocation7 + $0x38] sm:$0xf0]  ;;  %1238 = vmatpush.bf16.msra.mxu2 %v3171_v30  ;;  %v3219_v30 = vor.u32 %v4027_v28, %v3218_v25 }
  0x8f   :  { %1227 = vmatpush.bf16.msra.mxu1 %v3091_v33  ;;  %v3047_v32 = vor.u32 %v3982_v29, %v3044_v31  ;;  %v3242_v33 = vld [vmem:[#allocation7 + $0x1c0] sm:$0xf]  ;;  %v3092_v29 = vld [vmem:[#allocation7 + $0x98] sm:$0xf0] }
  0x90   :  { %v3243_v37 = vor.u32 %v4033_v34, %v3242_v33  ;;  %v3095_v31 = vor.u32 %v3994_v56, %v3092_v29  ;;  %v4633_v33 = vld [vmem:[#allocation10] ss:$8 sm:$0xf]  ;;  %v4020_v34 = vld [vmem:[#allocation7 + $0x164] sm:$0xf] }
  0x91   :  { %v4030_v29 = vld [vmem:[#allocation7 + $0x1b4] sm:$0xf] }
  0x92   :  { %1215 = vmatpush.bf16.msra.mxu0 %v3019_v36  ;;  %v3162_v36 = vld [vmem:[#allocation7 + $0x120] sm:$0xf]  ;;  %1250 = vmatpush.bf16.msra.mxu3 %v3243_v37  ;;  %v3199_v37 = vor.u32 %v4020_v34, %v3196_v35  ;;  %v3156_v34 = vld [vmem:[#allocation7 + $0x118] sm:$0xf0] }
  0x93   :  { %1228 = vmatpush.bf16.msra.mxu1 %v3083_v40  ;;  %v4013_v40 = vld [vmem:[#allocation7 + $0x124] sm:$0xf0] }
  0x94   :  { %v3163_v42 = vor.u32 %v4013_v40, %v3162_v36  ;;  %v3992_v36 = vld [vmem:[#allocation7 + $0x84] sm:$0xf] }
  0x96   :  { %1260 = vmatpush.bf16.msrb.mxu0 %v3079_v41  ;;  %v3980_v41 = vld [vmem:[#allocation7 + $0x24] sm:$0xf]  ;;  %1239 = vmatpush.bf16.msra.mxu2 %v3163_v42  ;;  %v4038_v42 = vld [vmem:[#allocation7 + $0x1f4] sm:$0xf] }
  0x97   :  { %1273 = vmatpush.bf16.msrb.mxu1 %v3143_v53  ;;  %v3108_v53 = vld [vmem:[#allocation7 + $0xb8] sm:$0xf0]  ;;  %1251 = vmatpush.bf16.msra.mxu3 %v3235_v52  ;;  %v4018_v52 = vld [vmem:[#allocation7 + $0x154] sm:$0xf] }
  0x98   :  { %v3111_v54 = vor.u32 %v3998_v49, %v3108_v53  ;;  %v3271_v49 = vor.u32 %v4038_v42, %v3268_v46  ;;  %v3188_v53 = vld [vmem:[#allocation7 + $0x158] sm:$0xf0]  ;;  %v3148_v42 = vld [vmem:[#allocation7 + $0x108] sm:$0xf0]  ;;  %v324_v46 = vperm.slane %v4633_v33, 2 }
  0x9a   :  { %1261 = vmatpush.bf16.msrb.mxu0 %v3071_v45  ;;  %v3039_v45 = vor.u32 %v3980_v41, %v3036_v44  ;;  %1240 = vmatpush.bf16.msra.mxu2 %v3155_v5  ;;  %v3084_v41 = vld [vmem:[#allocation7 + $0x88] sm:$0xf0]  ;;  %v322_v44 = vperm.slane %v4633_v33, 0  ;;  %v323_v5 = vperm.slane %v4633_v33, 1 }
  0x9b   :  { %1274 = vmatpush.bf16.msrb.mxu1 %v3135_v15  ;;  %v3100_v15 = vld [vmem:[#allocation7 + $0xa8] sm:$0xf0]  ;;  %1252 = vmatpush.bf16.msra.mxu3 %v3227_v13  ;;  %v3183_v13 = vor.u32 %v4016_v7, %v3180_v47  ;;  %v325_v47 = vperm.slane %v4633_v33, 3 }
  0x9c   :  { %v3103_v18 = vor.u32 %v3996_v14, %v3100_v15  ;;  %v3252_v14 = vld [vmem:[#allocation7 + $0x1d8] sm:$0xf0]  ;;  %v4014_v15 = vld [vmem:[#allocation7 + $0x134] sm:$0xf] }
  0x9e   :  { %1262 = vmatpush.bf16.msrb.mxu0 %v3063_v6  ;;  %v3028_v6 = vld [vmem:[#allocation7 + $0x18] sm:$0xf0] }
  0x9f   :  { %1275 = vmatpush.bf16.msrb.mxu1 %v3127_v27  ;;  %v3031_v12 = vor.u32 %v3978_v4, %v3028_v6  ;;  %v3207_v27 = vor.u32 %v4022_v22, %v3204_v24  ;;  %1253 = vmatpush.bf16.msra.mxu3 %v3219_v30  ;;  %v3263_v6 = vor.u32 %v4036_v55, %v3260_v3  ;;  %v3164_v22 = vld [vmem:[#allocation7 + $0x128] sm:$0xf0]  ;;  %v3236_v30 = vld [vmem:[#allocation7 + $0x1b8] sm:$0xf0] }
  0xa2   :  { %1263 = vmatpush.bf16.msrb.mxu0 %v3055_v20  ;;  %v3147_v20 = vor.u32 %v4009_v50, %v3146_v17  ;;  %v3172_v17 = vld [vmem:[#allocation7 + $0x138] sm:$0xf0] }
  0xa3   :  { %1276 = vmatpush.bf16.msrb.mxu1 %v3119_v39  ;;  %v4025_v39 = vld [vmem:[#allocation7 + $0x184] sm:$0xf0]  ;;  %v3175_v43 = vor.u32 %v4014_v15, %v3172_v17 }
  0xa4   :  { %1241 = vmatpush.bf16.msra.mxu2 %v3147_v20  ;;  %v3211_v40 = vor.u32 %v4025_v39, %v3210_v38  ;;  %v4032_v20 = vld [vmem:[#allocation7 + $0x1c4] sm:$0xf]  ;;  %v3239_v38 = vor.u32 %v4030_v29, %v3236_v30 }
  0xa6   :  { %1264 = vmatpush.bf16.msrb.mxu0 %v3047_v32  ;;  %1254 = vmatpush.bf16.msra.mxu3 %v3211_v40  ;;  %v4028_v40 = vld [vmem:[#allocation7 + $0x1a4] sm:$0xf] }
  0xa7   :  { %1277 = vmatpush.bf16.msrb.mxu1 %v3111_v54  ;;  %v3191_v54 = vor.u32 %v4018_v52, %v3188_v53  ;;  %v3220_v52 = vld [vmem:[#allocation7 + $0x198] sm:$0xf0] }
  0xa8   :  { %1286 = vmatpush.bf16.msrb.mxu2 %v3207_v27 }
  0xaa   :  { %1265 = vmatpush.bf16.msrb.mxu0 %v3039_v45  ;;  %v3087_v45 = vor.u32 %v3992_v36, %v3084_v41  ;;  %1299 = vmatpush.bf16.msrb.mxu3 %v3271_v49  ;;  %v4008_v41 = vld [vmem:[#allocation7 + $0x104] sm:$0xf]  ;;  %v4026_v49 = vld [vmem:[#allocation7 + $0x194] sm:$0xf] }
  0xab   :  { %1278 = vmatpush.bf16.msrb.mxu1 %v3103_v18  ;;  %v3223_v3 = vor.u32 %v4026_v49, %v3220_v52 }
  0xac   :  { %1287 = vmatpush.bf16.msrb.mxu2 %v3199_v37 }
  0xae   :  { %1266 = vmatpush.bf16.msrb.mxu0 %v3031_v12  ;;  %v4034_v12 = vld [vmem:[#allocation7 + $0x1d4] sm:$0xf]  ;;  %1300 = vmatpush.bf16.msrb.mxu3 %v3263_v6  ;;  %v3212_v6 = vld [vmem:[#allocation7 + $0x188] sm:$0xf0] }
  0xaf   :  { %1279 = vmatpush.bf16.msrb.mxu1 %v3095_v31  ;;  %v3255_v50 = vor.u32 %v4034_v12, %v3252_v14 }
  0xb0   :  { %1288 = vmatpush.bf16.msrb.mxu2 %v3191_v54 }
  0xb2   :  { %1267 = vmatpush.bf16.msrb.mxu0 %v3023_v21  ;;  %v3244_v21 = vld [vmem:[#allocation7 + $0x1c8] sm:$0xf0]  ;;  %1301 = vmatpush.bf16.msrb.mxu3 %v3255_v50 }
  0xb3   :  { %1280 = vmatpush.bf16.msrb.mxu1 %v3087_v45  ;;  %v3247_v27 = vor.u32 %v4032_v20, %v3244_v21 }
  0xb4   :  { %1289 = vmatpush.bf16.msrb.mxu2 %v3183_v13 }
  0xb6   :  { %1302 = vmatpush.bf16.msrb.mxu3 %v3247_v27 }
  0xb8   :  { %1290 = vmatpush.bf16.msrb.mxu2 %v3175_v43 }
  0xba   :  { %1303 = vmatpush.bf16.msrb.mxu3 %v3239_v38 }
  0xce   :  { %v4631_v51 = vpop.f32.mrf.mxu0 }
  0xcf   :  { %v717_v4 = vadd.f32 %v4631_v51, %v322_v44  ;;  %v4012_v51 = vld [vmem:[#allocation7 + $0x124] sm:$0xf] }
  0xd0   :  { %v3167_v56 = vor.u32 %v4012_v51, %v3164_v22 }
  0xd2   :  { %1291 = vmatpush.bf16.msrb.mxu2 %v3167_v56 }
  0xd4   :  { %v742_v26 = vpop.f32.mrf.mxu2 }
  0xd5   :  { %v743_v25 = vadd.f32 %v742_v26, %v323_v5  ;;  %v3228_v26 = vld [vmem:[#allocation7 + $0x1a8] sm:$0xf0]  ;;  %v4024_v5 = vld [vmem:[#allocation7 + $0x184] sm:$0xf] }
  0xd6   :  { %v718_v32 = vpop.f32.mrf.mxu0  ;;  %v3231_v45 = vor.u32 %v4028_v40, %v3228_v26  ;;  %v3215_v12 = vor.u32 %v4024_v5, %v3212_v6 }
  0xd7   :  { %v4010_v32 = vld [vmem:[#allocation7 + $0x114] sm:$0xf] }
  0xd8   :  { %v3159_v36 = vor.u32 %v4010_v32, %v3156_v34  ;;  %1304 = vmatpush.bf16.msrb.mxu3 %v3231_v45  ;;  %v1335_v32 = vsel %vm362_vm1, %v4580_v8, %v4575_v58 }
  0xda   :  { %1292 = vmatpush.bf16.msrb.mxu2 %v3159_v36  ;;  %v1336_v36 = vsel %vm364_vm2, %v4583_v9, %v1335_v32 }
  0xdc   :  { %v744_v48 = vpop.f32.mrf.mxu2  ;;  %1305 = vmatpush.bf16.msrb.mxu3 %v3223_v3 }
  0xdd   :  { %v3151_v48 = vor.u32 %v4008_v41, %v3148_v42 }
  0xdf   :  { %1293 = vmatpush.bf16.msrb.mxu2 %v3151_v48 }
  0xe0   :  { %1306 = vmatpush.bf16.msrb.mxu3 %v3215_v12 }
  0xe2   :  { %v729_v18 = vpop.f32.mrf.mxu1 }
  0xe3   :  { %v730_v19 = vadd.f32 %v729_v18, %v717_v4 }
  0xe5   :  { %v811_v24 = vmax.f32 %v730_v19, 0.0 }
  0xe7   :  { %v815_v28 = vpack.c.bf16 %v811_v24, %v811_v24 }
  0xe8   :  { %v755_v31 = vpop.f32.mrf.mxu3 }
  0xe9   :  { %v756_v35 = vadd.f32 %v755_v31, %v743_v25  ;;  %1216 = vmatmul.bf16.vlgmr.msra.gmra.mxu0 %v815_v28  ;;  %v1328_v31 = vsel %vm362_vm1, %v4528_v61, %v4525_v60  ;;  %v1337_v60 = vsel %vm366_vm3, %v4586_v59, %v1336_v36  ;;  %v4092_v36 = vld [vmem:[#allocation5 + $0x3a4] sm:$0xf] }
  0xea   :  { %v731_v37 = vpop.f32.mrf.mxu1  ;;  %v1338_v8 = vsel %vm368_vm4, %v4589_v10, %v1337_v60 }
  0xeb   :  { %v812_v39 = vmax.f32 %v756_v35, 0.0  ;;  %v236_v35 = vld [vmem:[#allocation10 + $0x1] ss:$8 sm:$0x3] }
  0xec   :  { %v884_v40 = vperm.slane %v236_v35, 0  ;;  %v885_v41 = vperm.slane %v236_v35, 1  ;;  %v4094_v35 = vld [vmem:[#allocation5 + $0x3ac] sm:$0xf0] }
  0xed   :  { %v816_v44 = vpack.c.bf16 %v812_v39, %v812_v39  ;;  %v1329_v39 = vsel %vm364_vm2, %v4531_v62, %v1328_v31  ;;  %v4062_v31 = vld [vmem:[#allocation5 + $0x2ac] sm:$0xf0] }
  0xee   :  { %v1330_v26 = vsel %vm366_vm3, %v4534_v63, %v1329_v39  ;;  %v3356_v39 = vld [vmem:[#allocation5 + $0x2b0] sm:$0xf0] }
  0xef   :  { %1229 = vmatmul.bf16.vlgmr.msra.gmra.mxu1 %v816_v44  ;;  %v1331_v58 = vsel %vm368_vm4, %v4537_v23, %v1330_v26 }
  0xf0   :  { %v757_v53 = vpop.f32.mrf.mxu3  ;;  %v1332_v9 = vsel %vm370_vm5, %v4540_v0, %v1331_v58  ;;  %v3466_v58 = vld [vmem:[#allocation5 + $0x380] sm:$0xf] }
  0xf1   :  { %v1333_v48 = vsel %vm372_vm6, %v4543_v1, %v1332_v9  ;;  %v3340_v9 = vld [vmem:[#allocation5 + $0x290] sm:$0xf0] }
  0xf2   :  { %v768_v54 = vpop.f32.mrf.mxu0  ;;  %v1334_v53 = vsel %vm374_vm7, %v4546_v2, %v1333_v48 }
  0xf3   :  { %v781_v55 = vpop.f32.mrf.mxu1  ;;  %v769_v4 = vadd.f32 %v768_v54, %v324_v46 }
  0xf5   :  { %v782_v7 = vadd.f32 %v781_v55, %v769_v4  ;;  %v4388_v4 = vmov 256.0  }
  0xf6   :  { %4216 = vrcp.f32 %v4388_v4  ;;  %v3322_v4 = vld [vmem:[#allocation5 + $0x260] sm:$0xf] }
  0xf7   :  { %v813_v13 = vmax.f32 %v782_v7, 0.0  ;;  %v3386_v7 = vld [vmem:[#allocation5 + $0x2e0] sm:$0xf] }
  0xf9   :  { %1268 = vmatmul.bf16.vlgmr.msrb.gmra.mxu0 %v815_v28  ;;  %v817_v14 = vpack.c.bf16 %v813_v13, %v813_v13  ;;  %v4102_v13 = vld [vmem:[#allocation5 + $0x3ec] sm:$0xf0] }
  0xfa   :  { %v794_v15 = vpop.f32.mrf.mxu2  ;;  %v770_v50 = vpop.f32.mrf.mxu0 }
  0xfb   :  { %v807_v17 = vpop.f32.mrf.mxu3  ;;  %v795_v18 = vadd.f32 %v794_v15, %v325_v47  ;;  %v783_v19 = vpop.f32.mrf.mxu1  ;;  %1242 = vmatmul.bf16.vlgmr.msra.gmra.mxu2 %v817_v14  ;;  %v3514_v47 = vld [vmem:[#allocation5 + $0x3e0] sm:$0xf]  ;;  %v3388_v15 = vld [vmem:[#allocation5 + $0x2f0] sm:$0xf0]  ;;  %v4100_v50 = vld [vmem:[#allocation5 + $0x3e4] sm:$0xf] }
  0xfc   :  { %v4676_v5 = vpop.eup %4216  ;;  %v3516_v19 = vld [vmem:[#allocation5 + $0x3f0] sm:$0xf0] }
  0xfd   :  { %v808_v43 = vadd.f32 %v807_v17, %v795_v18  ;;  %v1350_v2 = vmul.f32 256.0, %v4676_v5  ;;  %v3515_v17 = vor.u32 %v4102_v13, %v3514_v47  ;;  %vm1354_vm8 = vweird.f32 %v4676_v5  ;;  %v3324_v47 = vld [vmem:[#allocation5 + $0x270] sm:$0xf0]  ;;  %v4084_v13 = vld [vmem:[#allocation5 + $0x364] sm:$0xf] }
  0xff   :  { %v814_v20 = vmax.f32 %v808_v43, 0.0  ;;  %1281 = vmatmul.bf16.vlgmr.msrb.gmra.mxu1 %v816_v44  ;;  %v1339_v44 = vsel %vm370_vm5, %v4592_v11, %v1338_v8  ;;  %v1351_v6 = vsub.f32 1.0, %v1350_v2  ;;  %v3370_v43 = vld [vmem:[#allocation5 + $0x2c0] sm:$0xf] }
 0x100   :  { %v1340_v23 = vsel %vm372_vm6, %v4609_v57, %v1339_v44  ;;  %1809 = vmatpush.bf16.msra.mxu1 %v3515_v17  ;;  %v4088_v44 = vld [vmem:[#allocation5 + $0x384] sm:$0xf]  ;;  %v3450_v2 = vld [vmem:[#allocation5 + $0x360] sm:$0xf]  ;;  %v4050_v17 = vld [vmem:[#allocation5 + $0x24c] sm:$0xf0] }
 0x101   :  { %v818_v21 = vpack.c.bf16 %v814_v20, %v814_v20  ;;  %v1341_v0 = vsel %vm374_vm7, %v4614_v16, %v1340_v23  ;;  %v4070_v16 = vld [vmem:[#allocation5 + $0x2ec] sm:$0xf0]  ;;  %v3519_v20 = vor.u32 %v4100_v50, %v3516_v19  ;;  %v1352_v48 = vmul.f32 %v4676_v5, %v1351_v6 }
 0x102   :  { %v796_v51 = vpop.f32.mrf.mxu2  ;;  %v3387_v12 = vor.u32 %v4070_v16, %v3386_v7  ;;  %v4086_v7 = vld [vmem:[#allocation5 + $0x36c] sm:$0xf0]  ;;  %v4052_v16 = vld [vmem:[#allocation5 + $0x264] sm:$0xf] }
 0x103   :  { %v809_v22 = vpop.f32.mrf.mxu3  ;;  %1255 = vmatmul.bf16.vlgmr.msra.gmra.mxu3 %v818_v21  ;;  %v3498_v51 = vld [vmem:[#allocation5 + $0x3c0] sm:$0xf]  ;;  %v4082_v19 = vld [vmem:[#allocation5 + $0x34c] sm:$0xf0] }
 0x104   :  { %1796 = vmatpush.bf16.msra.mxu0 %v3387_v12  ;;  %v4098_v22 = vld [vmem:[#allocation5 + $0x3cc] sm:$0xf0]  ;;  %1835 = vmatpush.bf16.msra.mxu3 %v3519_v20  ;;  %v3327_v12 = vor.u32 %v4052_v16, %v3324_v47  ;;  %v3308_v20 = vld [vmem:[#allocation5 + $0x250] sm:$0xf0]  ;;  %v3380_v47 = vld [vmem:[#allocation5 + $0x2d8] sm:$0xf0] }
 0x10b   :  { %1294 = vmatmul.bf16.vlgmr.msrb.gmra.mxu2 %v817_v14  ;;  %v4068_v14 = vld [vmem:[#allocation5 + $0x2e4] sm:$0xf] }
 0x10c   :  { %v3391_v18 = vor.u32 %v4068_v14, %v3388_v15  ;;  %v3306_v15 = vld [vmem:[#allocation5 + $0x240] sm:$0xf] }
 0x10d   :  { %v3307_v50 = vor.u32 %v4050_v17, %v3306_v15  ;;  %v4063_v15 = vld [vmem:[#allocation5 + $0x2b4] sm:$0xf0]  ;;  %v3490_v17 = vld [vmem:[#allocation5 + $0x3a8] sm:$0xf] }
 0x10e   :  { %1822 = vmatpush.bf16.msra.mxu2 %v3391_v18  ;;  %v3434_v18 = vld [vmem:[#allocation5 + $0x340] sm:$0xf] }
 0x113   :  { %1307 = vmatmul.bf16.vlgmr.msrb.gmra.mxu3 %v818_v21  ;;  %v4066_v21 = vld [vmem:[#allocation5 + $0x2cc] sm:$0xf0] }
 0x166   :  { %v1217_v33 = vpop.f32.mrf.mxu0 }
 0x167   :  { %v1218_v61 = vadd.f32 %v1217_v33, %v884_v40  ;;  %v3371_v33 = vor.u32 %v4066_v21, %v3370_v43  ;;  %v3484_v40 = vld [vmem:[#allocation5 + $0x3b0] sm:$0xf0]  ;;  %v4048_v43 = vld [vmem:[#allocation5 + $0x244] sm:$0xf]  ;;  %v3435_v21 = vor.u32 %v4082_v19, %v3434_v18  ;;  %v4095_v18 = vld [vmem:[#allocation5 + $0x3b4] sm:$0xf0] }
 0x168   :  { %v3487_v8 = vor.u32 %v4092_v36, %v3484_v40  ;;  %v4042_v36 = vld [vmem:[#allocation5 + $0x20c] sm:$0xf0]  ;;  %v3402_v40 = vld [vmem:[#allocation5 + $0x300] sm:$0xf]  ;;  %v3364_v19 = vld [vmem:[#allocation5 + $0x2b8] sm:$0xf0] }
 0x169   :  { %1797 = vmatpush.bf16.msra.mxu0 %v3371_v33  ;;  %v3436_v33 = vld [vmem:[#allocation5 + $0x350] sm:$0xf0] }
 0x16c   :  { %v1230_v24 = vpop.f32.mrf.mxu1 }
 0x16d   :  { %v1231_v63 = vadd.f32 %v1230_v24, %v1218_v61  ;;  %v3499_v24 = vor.u32 %v4098_v22, %v3498_v51  ;;  %v3338_v61 = vld [vmem:[#allocation5 + $0x280] sm:$0xf]  ;;  %v3311_v51 = vor.u32 %v4048_v43, %v3308_v20  ;;  %v4080_v22 = vld [vmem:[#allocation5 + $0x344] sm:$0xf] }
 0x16e   :  { %v1219_v25 = vpop.f32.mrf.mxu0 }
 0x16f   :  { %v4064_v25 = vld [vmem:[#allocation5 + $0x2c4] sm:$0xf]  ;;  %1810 = vmatpush.bf16.msra.mxu1 %v3499_v24  ;;  %v3439_v24 = vor.u32 %v4080_v22, %v3436_v33  ;;  %v3492_v22 = vld [vmem:[#allocation5 + $0x3b8] sm:$0xf0]  ;;  %v3346_v33 = vld [vmem:[#allocation5 + $0x288] sm:$0xf] }
 0x174   :  { %v1232_v27 = vpop.f32.mrf.mxu1 }
 0x175   :  { %v3372_v27 = vld [vmem:[#allocation5 + $0x2d0] sm:$0xf0] }
 0x176   :  { %v1269_v28 = vpop.f32.mrf.mxu0 }
 0x177   :  { %v1270_v45 = vadd.f32 %v1269_v28, %v885_v41  ;;  %v4096_v28 = vld [vmem:[#allocation5 + $0x3c4] sm:$0xf]  ;;  %v4058_v41 = vld [vmem:[#allocation5 + $0x28c] sm:$0xf0] }
 0x17c   :  { %v1282_v56 = vpop.f32.mrf.mxu1 }
 0x17d   :  { %v1283_v46 = vadd.f32 %v1282_v56, %v1270_v45  ;;  %v3375_v56 = vor.u32 %v4064_v25, %v3372_v27  ;;  %v3339_v45 = vor.u32 %v4058_v41, %v3338_v61  ;;  %v3290_v25 = vld [vmem:[#allocation5 + $0x220] sm:$0xf]  ;;  %v4046_v27 = vld [vmem:[#allocation5 + $0x22c] sm:$0xf0]  ;;  %v4040_v61 = vld [vmem:[#allocation5 + $0x204] sm:$0xf] }
 0x17e   :  { %v1271_v29 = vpop.f32.mrf.mxu0  ;;  %v1243_v30 = vpop.f32.mrf.mxu2  ;;  %v3276_v41 = vld [vmem:[#allocation5 + $0x210] sm:$0xf0] }
 0x17f   :  { %v1244_v59 = vadd.f32 %v1243_v30, %v1231_v63  ;;  %v3500_v29 = vld [vmem:[#allocation5 + $0x3d0] sm:$0xf0]  ;;  %v3354_v30 = vld [vmem:[#allocation5 + $0x2a0] sm:$0xf]  ;;  %1823 = vmatpush.bf16.msra.mxu2 %v3375_v56  ;;  %v3291_v56 = vor.u32 %v4046_v27, %v3290_v25  ;;  %v4059_v27 = vld [vmem:[#allocation5 + $0x294] sm:$0xf0] }
 0x180   :  { %v3503_v32 = vor.u32 %v4096_v28, %v3500_v29  ;;  %v3468_v63 = vld [vmem:[#allocation5 + $0x390] sm:$0xf0]  ;;  %v3418_v28 = vld [vmem:[#allocation5 + $0x320] sm:$0xf]  ;;  %v4078_v29 = vld [vmem:[#allocation5 + $0x32c] sm:$0xf0] }
 0x181   :  { %v3471_v23 = vor.u32 %v4088_v44, %v3468_v63  ;;  %v4071_v63 = vld [vmem:[#allocation5 + $0x2f4] sm:$0xf0] }
 0x182   :  { %1836 = vmatpush.bf16.msra.mxu3 %v3503_v32  ;;  %v3419_v32 = vor.u32 %v4078_v29, %v3418_v28  ;;  %v3474_v28 = vld [vmem:[#allocation5 + $0x388] sm:$0xf] }
 0x184   :  { %v1284_v34 = vpop.f32.mrf.mxu1 }
 0x185   :  { %v3482_v34 = vld [vmem:[#allocation5 + $0x3a0] sm:$0xf] }
 0x186   :  { %v1256_v37 = vpop.f32.mrf.mxu3  ;;  %v1245_v38 = vpop.f32.mrf.mxu2  ;;  %v3483_v26 = vor.u32 %v4094_v35, %v3482_v34  ;;  %1837 = vmatpush.bf16.msra.mxu3 %v3487_v8  ;;  %v4076_v35 = vld [vmem:[#allocation5 + $0x324] sm:$0xf]  ;;  %v3279_v8 = vor.u32 %v4040_v61, %v3276_v41  ;;  %v4087_v61 = vld [vmem:[#allocation5 + $0x374] sm:$0xf0]  ;;  %v4053_v41 = vld [vmem:[#allocation5 + $0x26c] sm:$0xf] }
 0x187   :  { %v1257_v49 = vadd.f32 %v1256_v37, %v1244_v59  ;;  %v4060_v37 = vld [vmem:[#allocation5 + $0x2a4] sm:$0xf]  ;;  %v3355_v38 = vor.u32 %v4062_v31, %v3354_v30  ;;  %v3292_v31 = vld [vmem:[#allocation5 + $0x230] sm:$0xf0] }
 0x188   :  { %v3359_v60 = vor.u32 %v4060_v37, %v3356_v39  ;;  %1811 = vmatpush.bf16.msra.mxu1 %v3483_v26  ;;  %v4044_v30 = vld [vmem:[#allocation5 + $0x224] sm:$0xf]  ;;  %v3420_v37 = vld [vmem:[#allocation5 + $0x330] sm:$0xf0]  ;;  %v3274_v39 = vld [vmem:[#allocation5 + $0x200] sm:$0xf] }
 0x189   :  { %v4670_v55 = vadd.f32 %v1334_v53, %v1257_v49  ;;  %1798 = vmatpush.bf16.msra.mxu0 %v3355_v38  ;;  %v1353_v49 = vadd.f32 %v4676_v5, %v1352_v48  ;;  %v3295_v34 = vor.u32 %v4044_v30, %v3292_v31  ;;  %v3423_v38 = vor.u32 %v4076_v35, %v3420_v37  ;;  %v4057_v30 = vld [vmem:[#allocation5 + $0x28c] sm:$0xf]  ;;  %v3348_v31 = vld [vmem:[#allocation5 + $0x298] sm:$0xf0] }
 0x18a   :  { %1824 = vmatpush.bf16.msra.mxu2 %v3359_v60  ;;  %1838 = vmatpush.bf16.msra.mxu3 %v3471_v23  ;;  %v3275_v26 = vor.u32 %v4042_v36, %v3274_v39  ;;  %v4074_v60 = vld [vmem:[#allocation5 + $0x30c] sm:$0xf0]  ;;  %v4069_v23 = vld [vmem:[#allocation5 + $0x2ec] sm:$0xf]  ;;  %v3476_v35 = vld [vmem:[#allocation5 + $0x398] sm:$0xf0]  ;;  %v3347_v37 = vor.u32 %v4059_v27, %v3346_v33  ;;  %v3351_v39 = vor.u32 %v4057_v30, %v3348_v31 }
 0x18b   :  { %v3330_v36 = vld [vmem:[#allocation5 + $0x268] sm:$0xf]  ;;  %v4073_v27 = vld [vmem:[#allocation5 + $0x30c] sm:$0xf] }
 0x18d   :  { %1799 = vmatpush.bf16.msra.mxu0 %v3339_v45  ;;  %v3522_v45 = vld [vmem:[#allocation5 + $0x3e8] sm:$0xf] }
 0x18e   :  { %v1258_v42 = vpop.f32.mrf.mxu3  ;;  %v1295_v62 = vpop.f32.mrf.mxu2 }
 0x18f   :  { %v1296_v10 = vadd.f32 %v1295_v62, %v1283_v46  ;;  %v4090_v42 = vld [vmem:[#allocation5 + $0x38c] sm:$0xf0]  ;;  %v4056_v62 = vld [vmem:[#allocation5 + $0x284] sm:$0xf] }
 0x190   :  { %v3467_v46 = vor.u32 %v4090_v42, %v3466_v58  ;;  %v3343_v59 = vor.u32 %v4056_v62, %v3340_v9  ;;  %v3403_v58 = vor.u32 %v4074_v60, %v3402_v40  ;;  %v4072_v42 = vld [vmem:[#allocation5 + $0x304] sm:$0xf]  ;;  %v3404_v62 = vld [vmem:[#allocation5 + $0x310] sm:$0xf0]  ;;  %v3394_v9 = vld [vmem:[#allocation5 + $0x2e8] sm:$0xf] }
 0x191   :  { %v3407_v44 = vor.u32 %v4072_v42, %v3404_v62  ;;  %v4055_v40 = vld [vmem:[#allocation5 + $0x274] sm:$0xf0]  ;;  %v3460_v42 = vld [vmem:[#allocation5 + $0x378] sm:$0xf0] }
 0x192   :  { %1812 = vmatpush.bf16.msra.mxu1 %v3467_v46  ;;  %1825 = vmatpush.bf16.msra.mxu2 %v3343_v59  ;;  %v4103_v46 = vld [vmem:[#allocation5 + $0x3f4] sm:$0xf0]  ;;  %v3395_v59 = vor.u32 %v4071_v63, %v3394_v9  ;;  %v3331_v62 = vor.u32 %v4055_v40, %v3330_v36 }
 0x193   :  { %v3523_v48 = vor.u32 %v4103_v46, %v3522_v45  ;;  %v4051_v45 = vld [vmem:[#allocation5 + $0x254] sm:$0xf0]  ;;  %v3442_v46 = vld [vmem:[#allocation5 + $0x348] sm:$0xf] }
 0x196   :  { %v1308_v52 = vpop.f32.mrf.mxu3  ;;  %v1297_v54 = vpop.f32.mrf.mxu2  ;;  %1826 = vmatpush.bf16.msra.mxu2 %v3327_v12  ;;  %v3508_v12 = vld [vmem:[#allocation5 + $0x3d8] sm:$0xf0] }
 0x197   :  { %v1309_v11 = vadd.f32 %v1308_v52, %v1296_v10  ;;  %v4683_v10 = vsel %vm1354_vm8, %v4676_v5, %v1353_v49  ;;  %v4054_v5 = vld [vmem:[#allocation5 + $0x26c] sm:$0xf0]  ;;  %v3396_v49 = vld [vmem:[#allocation5 + $0x2f8] sm:$0xf0] }
 0x198   :  { %v3323_v6 = vor.u32 %v4054_v5, %v3322_v4 }
 0x199   :  { %v4672_v3 = vadd.f32 %v1341_v0, %v1309_v11 }
 0x19a   :  { %1800 = vmatpush.bf16.msra.mxu0 %v3323_v6  ;;  %1827 = vmatpush.bf16.msra.mxu2 %v3311_v51  ;;  %v4099_v6 = vld [vmem:[#allocation5 + $0x3d4] sm:$0xf0]  ;;  %v4093_v51 = vld [vmem:[#allocation5 + $0x3ac] sm:$0xf] }
 0x19b   :  { %v1346_v1 = vadd.f32 %v4672_v3, %v4670_v55  ;;  %v3495_v29 = vor.u32 %v4093_v51, %v3492_v22  ;;  %v4075_v51 = vld [vmem:[#allocation5 + $0x314] sm:$0xf0] }
 0x19d   :  { %1347 = vadd.xlane.f32.xlu0 %v1346_v1 }
 0x19e   :  { %v1310_v57 = vpop.f32.mrf.mxu3  ;;  %1801 = vmatpush.bf16.msra.mxu0 %v3307_v50  ;;  %1828 = vmatpush.bf16.msra.mxu2 %v3295_v34  ;;  %v4061_v50 = vld [vmem:[#allocation5 + $0x2ac] sm:$0xf] }
 0x19f   :  { %v3367_v25 = vor.u32 %v4061_v50, %v3364_v19  ;;  %v4089_v34 = vld [vmem:[#allocation5 + $0x38c] sm:$0xf]  ;;  %v3282_v19 = vld [vmem:[#allocation5 + $0x208] sm:$0xf] }
 0x1a0   :  { %v3479_v60 = vor.u32 %v4089_v34, %v3476_v35 }
 0x1a2   :  { %1802 = vmatpush.bf16.msra.mxu0 %v3291_v56  ;;  %1829 = vmatpush.bf16.msra.mxu2 %v3279_v8  ;;  %v4091_v56 = vld [vmem:[#allocation5 + $0x394] sm:$0xf0]  ;;  %v4085_v8 = vld [vmem:[#allocation5 + $0x36c] sm:$0xf] }
 0x1a6   :  { %1803 = vmatpush.bf16.msra.mxu0 %v3275_v26  ;;  %v3458_v26 = vld [vmem:[#allocation5 + $0x368] sm:$0xf] }
 0x1a7   :  { %v3459_v9 = vor.u32 %v4087_v61, %v3458_v26 }
 0x1aa   :  { %1848 = vmatpush.bf16.msrb.mxu0 %v3395_v59  ;;  %v4083_v59 = vld [vmem:[#allocation5 + $0x354] sm:$0xf0] }
 0x210   :  { %v1348_v52 = vpop.xlane.xlu0 %1347 }
 0x211   :  { %v1356_v53 = vmul.f32 %v4683_v10, %v1348_v52  ;;  %v4101_v52 = vld [vmem:[#allocation5 + $0x3ec] sm:$0xf] }
 0x213   :  { %v4687_v0 = vsub.f32 %v4670_v55, %v1356_v53  ;;  %v4690_v11 = vsub.f32 %v4672_v3, %v1356_v53  ;;  %v3451_v55 = vor.u32 %v4086_v7, %v3450_v2  ;;  %v3452_v3 = vld [vmem:[#allocation5 + $0x370] sm:$0xf0]  ;;  %v3399_v53 = vor.u32 %v4069_v23, %v3396_v49  ;;  %v3506_v2 = vld [vmem:[#allocation5 + $0x3c8] sm:$0xf]  ;;  %v4065_v7 = vld [vmem:[#allocation5 + $0x2cc] sm:$0xf] }
 0x214   :  { %v3455_v14 = vor.u32 %v4084_v13, %v3452_v3  ;;  %v3507_v16 = vor.u32 %v4099_v6, %v3506_v2  ;;  %v3383_v13 = vor.u32 %v4065_v7, %v3380_v47  ;;  %v4049_v23 = vld [vmem:[#allocation5 + $0x24c] sm:$0xf]  ;;  %v3316_v49 = vld [vmem:[#allocation5 + $0x258] sm:$0xf0]  ;;  %v4047_v6 = vld [vmem:[#allocation5 + $0x234] sm:$0xf0] }
 0x215   :  { %v1359_v54 = vmul.f32 %v4687_v0, %v4687_v0  ;;  %v1360_v1 = vmul.f32 %v4690_v11, %v4690_v11  ;;  %1813 = vmatpush.bf16.msra.mxu1 %v3451_v55  ;;  %1874 = vmatpush.bf16.msrb.mxu2 %v3399_v53  ;;  %v4097_v55 = vld [vmem:[#allocation5 + $0x3cc] sm:$0xf]  ;;  %v3319_v2 = vor.u32 %v4049_v23, %v3316_v49  ;;  %v3426_v7 = vld [vmem:[#allocation5 + $0x328] sm:$0xf] }
 0x216   :  { %1839 = vmatpush.bf16.msra.mxu3 %v3455_v14  ;;  %v3511_v3 = vor.u32 %v4097_v55, %v3508_v12  ;;  %v3362_v14 = vld [vmem:[#allocation5 + $0x2a8] sm:$0xf]  ;;  %v4081_v53 = vld [vmem:[#allocation5 + $0x34c] sm:$0xf] }
 0x217   :  { %v1361_v57 = vadd.f32 %v1360_v1, %v1359_v54  ;;  %v3524_v54 = vld [vmem:[#allocation5 + $0x3f8] sm:$0xf0]  ;;  %v3378_v1 = vld [vmem:[#allocation5 + $0x2c8] sm:$0xf]  ;;  %v3363_v20 = vor.u32 %v4063_v15, %v3362_v14  ;;  %v4045_v12 = vld [vmem:[#allocation5 + $0x22c] sm:$0xf] }
 0x218   :  { %v3527_v4 = vor.u32 %v4101_v52, %v3524_v54  ;;  %v3444_v54 = vld [vmem:[#allocation5 + $0x358] sm:$0xf0]  ;;  %v4117_v23 = vld [vmem:[#allocation7 + $0x264] sm:$0xf0] }
 0x219   :  { %1362 = vadd.xlane.f32.xlu0 %v1361_v57  ;;  %1814 = vmatpush.bf16.msra.mxu1 %v3435_v21  ;;  %v4067_v57 = vld [vmem:[#allocation5 + $0x2d4] sm:$0xf0]  ;;  %v3491_v21 = vor.u32 %v4095_v18, %v3490_v17  ;;  %v3447_v55 = vor.u32 %v4081_v53, %v3444_v54  ;;  %v3428_v14 = vld [vmem:[#allocation5 + $0x338] sm:$0xf0]  ;;  %v4133_v53 = vld [vmem:[#allocation7 + $0x2e4] sm:$0xf0] }
 0x21a   :  { %1840 = vmatpush.bf16.msra.mxu3 %v3439_v24  ;;  %v3379_v5 = vor.u32 %v4067_v57, %v3378_v1  ;;  %1875 = vmatpush.bf16.msrb.mxu2 %v3383_v13  ;;  %v3300_v13 = vld [vmem:[#allocation5 + $0x238] sm:$0xf0]  ;;  %v238_v17 = vld [vmem:[#allocation10 + $0x2] ss:$8 sm:$0x3] }
 0x21b   :  { %v1379_v34 = vperm.slane %v238_v17, 0  ;;  %v1380_v35 = vperm.slane %v238_v17, 1  ;;  %v3762_v17 = vld [vmem:[#allocation7 + $0x3d0] sm:$0xf] }
 0x21c   :  { %1849 = vmatpush.bf16.msrb.mxu0 %v3379_v5  ;;  %v3298_v5 = vld [vmem:[#allocation5 + $0x228] sm:$0xf] }
 0x21d   :  { %1815 = vmatpush.bf16.msra.mxu1 %v3419_v32  ;;  %v3299_v18 = vor.u32 %v4047_v6, %v3298_v5  ;;  %v3770_v5 = vld [vmem:[#allocation7 + $0x3e0] sm:$0xf] }
 0x21e   :  { %1841 = vmatpush.bf16.msra.mxu3 %v3423_v38  ;;  %v3475_v38 = vor.u32 %v4091_v56, %v3474_v28  ;;  %1876 = vmatpush.bf16.msrb.mxu2 %v3367_v25  ;;  %v3284_v25 = vld [vmem:[#allocation5 + $0x218] sm:$0xf0] }
 0x21f   :  { %v3412_v28 = vld [vmem:[#allocation5 + $0x318] sm:$0xf0] }
 0x220   :  { %1850 = vmatpush.bf16.msrb.mxu0 %v3363_v20  ;;  %v4043_v20 = vld [vmem:[#allocation5 + $0x214] sm:$0xf0] }
 0x221   :  { %1816 = vmatpush.bf16.msra.mxu1 %v3403_v58  ;;  %v3332_v58 = vld [vmem:[#allocation5 + $0x278] sm:$0xf0]  ;;  %v3283_v30 = vor.u32 %v4043_v20, %v3282_v19  ;;  %v3562_v19 = vld [vmem:[#allocation7 + $0x240] sm:$0xf] }
 0x222   :  { %1842 = vmatpush.bf16.msra.mxu3 %v3407_v44  ;;  %v3314_v44 = vld [vmem:[#allocation5 + $0x248] sm:$0xf]  ;;  %1877 = vmatpush.bf16.msrb.mxu2 %v3351_v39  ;;  %v3335_v63 = vor.u32 %v4053_v41, %v3332_v58  ;;  %v3415_v39 = vor.u32 %v4073_v27, %v3412_v28  ;;  %v3586_v41 = vld [vmem:[#allocation7 + $0x270] sm:$0xf]  ;;  %v4119_v58 = vld [vmem:[#allocation7 + $0x274] sm:$0xf0] }
 0x223   :  { %v3315_v57 = vor.u32 %v4051_v45, %v3314_v44  ;;  %v3754_v27 = vld [vmem:[#allocation7 + $0x3c0] sm:$0xf]  ;;  %v4161_v28 = vld [vmem:[#allocation7 + $0x3c4] sm:$0xf0] }
 0x224   :  { %1851 = vmatpush.bf16.msrb.mxu0 %v3347_v37 }
 0x225   :  { %1861 = vmatpush.bf16.msrb.mxu1 %v3523_v48  ;;  %v3463_v48 = vor.u32 %v4085_v8, %v3460_v42  ;;  %v3650_v8 = vld [vmem:[#allocation7 + $0x2f0] sm:$0xf]  ;;  %v4135_v42 = vld [vmem:[#allocation7 + $0x2f4] sm:$0xf0] }
 0x226   :  { %1887 = vmatpush.bf16.msrb.mxu3 %v3527_v4  ;;  %v3443_v4 = vor.u32 %v4083_v59, %v3442_v46  ;;  %1878 = vmatpush.bf16.msrb.mxu2 %v3335_v63  ;;  %v3778_v63 = vld [vmem:[#allocation7 + $0x3f0] sm:$0xf]  ;;  %v3587_v59 = vor.u32 %v4119_v58, %v3586_v41  ;;  %v3651_v49 = vor.u32 %v4135_v42, %v3650_v8  ;;  %v4125_v41 = vld [vmem:[#allocation7 + $0x2a4] sm:$0xf0] }
 0x227   :  { %v3538_v42 = vld [vmem:[#allocation7 + $0x210] sm:$0xf] }
 0x228   :  { %1852 = vmatpush.bf16.msrb.mxu0 %v3331_v62  ;;  %v3714_v62 = vld [vmem:[#allocation7 + $0x370] sm:$0xf] }
 0x229   :  { %1862 = vmatpush.bf16.msrb.mxu1 %v3507_v16  ;;  %v4079_v16 = vld [vmem:[#allocation5 + $0x334] sm:$0xf0] }
 0x22a   :  { %1888 = vmatpush.bf16.msrb.mxu3 %v3511_v3  ;;  %v4077_v3 = vld [vmem:[#allocation5 + $0x32c] sm:$0xf]  ;;  %v3427_v50 = vor.u32 %v4079_v16, %v3426_v7  ;;  %1879 = vmatpush.bf16.msrb.mxu2 %v3319_v2  ;;  %v4165_v2 = vld [vmem:[#allocation7 + $0x3e4] sm:$0xf0]  ;;  %v3570_v7 = vld [vmem:[#allocation7 + $0x250] sm:$0xf] }
 0x22b   :  { %v3431_v33 = vor.u32 %v4077_v3, %v3428_v14  ;;  %v4115_v16 = vld [vmem:[#allocation7 + $0x254] sm:$0xf0]  ;;  %v3698_v3 = vld [vmem:[#allocation7 + $0x350] sm:$0xf]  ;;  %v3771_v14 = vor.u32 %v4165_v2, %v3770_v5  ;;  %v3580_v5 = vld [vmem:[#allocation7 + $0x268] sm:$0xf0] }
 0x22c   :  { %1853 = vmatpush.bf16.msrb.mxu0 %v3315_v57 }
 0x22d   :  { %1863 = vmatpush.bf16.msrb.mxu1 %v3491_v21  ;;  %v3410_v21 = vld [vmem:[#allocation5 + $0x308] sm:$0xf] }
 0x22e   :  { %1889 = vmatpush.bf16.msrb.mxu3 %v3495_v29  ;;  %v240_v29 = vld [vmem:[#allocation10 + $0x3] ss:$8 sm:$0x3]  ;;  %v3411_v31 = vor.u32 %v4075_v51, %v3410_v21 }
 0x22f   :  { %v1386_v26 = vperm.slane %v240_v29, 0  ;;  %v3626_v21 = vld [vmem:[#allocation7 + $0x2c0] sm:$0xf]  ;;  %v4129_v51 = vld [vmem:[#allocation7 + $0x2c4] sm:$0xf0] }
 0x230   :  { %1854 = vmatpush.bf16.msrb.mxu0 %v3299_v18  ;;  %v4163_v18 = vld [vmem:[#allocation7 + $0x3d4] sm:$0xf0] }
 0x231   :  { %1864 = vmatpush.bf16.msrb.mxu1 %v3475_v38 }
 0x232   :  { %1890 = vmatpush.bf16.msrb.mxu3 %v3479_v60  ;;  %v1387_v60 = vperm.slane %v240_v29, 1  ;;  %v3554_v29 = vld [vmem:[#allocation7 + $0x230] sm:$0xf] }
 0x234   :  { %1855 = vmatpush.bf16.msrb.mxu0 %v3283_v30  ;;  %v3627_v30 = vor.u32 %v4129_v51, %v3626_v21 }
 0x235   :  { %1865 = vmatpush.bf16.msrb.mxu1 %v3459_v9 }
 0x236   :  { %1891 = vmatpush.bf16.msrb.mxu3 %v3463_v48  ;;  %v3578_v48 = vld [vmem:[#allocation7 + $0x260] sm:$0xf] }
 0x237   :  { %v3579_v6 = vor.u32 %v4117_v23, %v3578_v48  ;;  %v3530_v48 = vld [vmem:[#allocation7 + $0x200] sm:$0xf] }
 0x239   :  { %1866 = vmatpush.bf16.msrb.mxu1 %v3443_v4  ;;  %v4149_v4 = vld [vmem:[#allocation7 + $0x364] sm:$0xf0] }
 0x23a   :  { %1892 = vmatpush.bf16.msrb.mxu3 %v3447_v55  ;;  %v3634_v55 = vld [vmem:[#allocation7 + $0x2d0] sm:$0xf] }
 0x23d   :  { %1867 = vmatpush.bf16.msrb.mxu1 %v3427_v50  ;;  %v3571_v50 = vor.u32 %v4115_v16, %v3570_v7  ;;  %v3652_v7 = vld [vmem:[#allocation7 + $0x2f8] sm:$0xf0]  ;;  %v3674_v16 = vld [vmem:[#allocation7 + $0x320] sm:$0xf] }
 0x23e   :  { %1893 = vmatpush.bf16.msrb.mxu3 %v3431_v33  ;;  %v3690_v33 = vld [vmem:[#allocation7 + $0x340] sm:$0xf] }
 0x241   :  { %1868 = vmatpush.bf16.msrb.mxu1 %v3411_v31  ;;  %v4111_v31 = vld [vmem:[#allocation7 + $0x234] sm:$0xf0] }
 0x242   :  { %1894 = vmatpush.bf16.msrb.mxu3 %v3415_v39  ;;  %v3682_v39 = vld [vmem:[#allocation7 + $0x330] sm:$0xf] }
 0x28c   :  { %v1363_v43 = vpop.xlane.xlu0 %1362 }
 0x28d   :  { %v1364_v24 = vmul.f32 %v1363_v43, %v4683_v10  ;;  %v3303_v43 = vor.u32 %v4045_v12, %v3300_v13  ;;  %v4131_v12 = vld [vmem:[#allocation7 + $0x2d4] sm:$0xf0] }
 0x28e   :  { %v3635_v20 = vor.u32 %v4131_v12, %v3634_v55  ;;  %v4141_v55 = vld [vmem:[#allocation7 + $0x324] sm:$0xf0]  ;;  %v4114_v12 = vld [vmem:[#allocation7 + $0x254] sm:$0xf] }
 0x28f   :  { %v4697_v32 = vadd.f32 1e-05, %v1364_v24  ;;  %v4041_v24 = vld [vmem:[#allocation5 + $0x20c] sm:$0xf]  ;;  %1880 = vmatpush.bf16.msrb.mxu2 %v3303_v43  ;;  %v4113_v43 = vld [vmem:[#allocation7 + $0x244] sm:$0xf0] }
 0x290   :  { %v3287_v37 = vor.u32 %v4041_v24, %v3284_v25  ;;  %v3763_v24 = vor.u32 %v4163_v18, %v3762_v17  ;;  %v4145_v25 = vld [vmem:[#allocation7 + $0x344] sm:$0xf0]  ;;  %v4159_v17 = vld [vmem:[#allocation7 + $0x3b4] sm:$0xf0]  ;;  %v4132_v18 = vld [vmem:[#allocation7 + $0x2e4] sm:$0xf] }
 0x291   :  { %4218 = vrsqrt.f32 %v4697_v32  ;;  %vm1372_vm10 = vweird.f32 %v4697_v32 }
 0x293   :  { %1881 = vmatpush.bf16.msrb.mxu2 %v3287_v37  ;;  %v3691_v37 = vor.u32 %v4145_v25, %v3690_v33  ;;  %v3564_v33 = vld [vmem:[#allocation7 + $0x248] sm:$0xf0]  ;;  %v3738_v25 = vld [vmem:[#allocation7 + $0x3a0] sm:$0xf] }
 0x297   :  { %v4219_v52 = vpop.eup %4218 }
 0x298   :  { %v1367_v1 = vmul.f32 %v4219_v52, %v4697_v32  ;;  %vm1373_vm9 = vweird.f32 %v4219_v52 }
 0x299   :  { %vm1374_vm11 = vmor %vm1372_vm10, %vm1373_vm9 }
 0x29a   :  { %v1368_v47 = vmul.f32 %v4219_v52, %v1367_v1  ;;  %v3706_v1 = vld [vmem:[#allocation7 + $0x360] sm:$0xf] }
 0x29b   :  { %v3707_v13 = vor.u32 %v4149_v4, %v3706_v1  ;;  %v4116_v4 = vld [vmem:[#allocation7 + $0x264] sm:$0xf] }
 0x29c   :  { %v1369_v15 = vmul.f32 0.5, %v1368_v47  ;;  %v3583_v2 = vor.u32 %v4116_v4, %v3580_v5  ;;  %v3540_v4 = vld [vmem:[#allocation7 + $0x218] sm:$0xf0] }
 0x29e   :  { %v1370_v22 = vsub.f32 1.5, %v1369_v15  ;;  %v4147_v15 = vld [vmem:[#allocation7 + $0x354] sm:$0xf0] }
 0x2a0   :  { %v1371_v56 = vmul.f32 %v4219_v52, %v1370_v22  ;;  %v3699_v22 = vor.u32 %v4147_v15, %v3698_v3  ;;  %v3675_v3 = vor.u32 %v4141_v55, %v3674_v16  ;;  %v3746_v15 = vld [vmem:[#allocation7 + $0x3b0] sm:$0xf]  ;;  %v4124_v16 = vld [vmem:[#allocation7 + $0x2a4] sm:$0xf]  ;;  %v3612_v55 = vld [vmem:[#allocation7 + $0x2a8] sm:$0xf0] }
 0x2a2   :  { %v1375_v38 = vsel %vm1374_vm11, %v4219_v52, %v1371_v56  ;;  %v3642_v52 = vld [vmem:[#allocation7 + $0x2e0] sm:$0xf]  ;;  %v3563_v56 = vor.u32 %v4113_v43, %v3562_v19  ;;  %v3644_v19 = vld [vmem:[#allocation7 + $0x2e8] sm:$0xf0]  ;;  %v3666_v43 = vld [vmem:[#allocation7 + $0x310] sm:$0xf] }
 0x2a3   :  { %v1376_v36 = vmul.f32 %v1375_v38, %v4687_v0  ;;  %v1377_v40 = vmul.f32 %v1375_v38, %v4690_v11  ;;  %v4151_v0 = vld [vmem:[#allocation7 + $0x374] sm:$0xf0]  ;;  %v3643_v47 = vor.u32 %v4133_v53, %v3642_v52  ;;  %v3755_v38 = vor.u32 %v4161_v28, %v3754_v27  ;;  %v3594_v52 = vld [vmem:[#allocation7 + $0x280] sm:$0xf]  ;;  %v4121_v53 = vld [vmem:[#allocation7 + $0x284] sm:$0xf0] }
 0x2a4   :  { %v4167_v11 = vld [vmem:[#allocation7 + $0x3f4] sm:$0xf0]  ;;  %v3715_v54 = vor.u32 %v4151_v0, %v3714_v62  ;;  %v3595_v1 = vor.u32 %v4121_v53, %v3594_v52  ;;  %v3647_v21 = vor.u32 %v4132_v18, %v3644_v19  ;;  %v4157_v27 = vld [vmem:[#allocation7 + $0x3a4] sm:$0xf0]  ;;  %v4130_v28 = vld [vmem:[#allocation7 + $0x2d4] sm:$0xf] }
 0x2a5   :  { %v1383_v32 = vmul.f32 %v1379_v34, %v1376_v36  ;;  %v1384_v61 = vmul.f32 %v1380_v35, %v1377_v40  ;;  %v3779_v57 = vor.u32 %v4167_v11, %v3778_v63  ;;  %v3618_v34 = vld [vmem:[#allocation7 + $0x2b0] sm:$0xf]  ;;  %v4127_v35 = vld [vmem:[#allocation7 + $0x2b4] sm:$0xf0]  ;;  %v3555_v40 = vor.u32 %v4111_v31, %v3554_v29  ;;  %v3636_v29 = vld [vmem:[#allocation7 + $0x2d8] sm:$0xf0] }
 0x2a6   :  { %v4143_v36 = vld [vmem:[#allocation7 + $0x334] sm:$0xf0]  ;;  %v3602_v63 = vld [vmem:[#allocation7 + $0x290] sm:$0xf]  ;;  %v4137_v31 = vld [vmem:[#allocation7 + $0x304] sm:$0xf0] }
 0x2a7   :  { %v4704_v9 = vadd.f32 %v1386_v26, %v1383_v32  ;;  %v4706_v44 = vadd.f32 %v1387_v60, %v1384_v61  ;;  %v3546_v26 = vld [vmem:[#allocation7 + $0x220] sm:$0xf]  ;;  %v3619_v60 = vor.u32 %v4127_v35, %v3618_v34  ;;  %v4109_v32 = vld [vmem:[#allocation7 + $0x224] sm:$0xf0]  ;;  %v3683_v58 = vor.u32 %v4143_v36, %v3682_v39  ;;  %v4107_v0 = vld [vmem:[#allocation7 + $0x214] sm:$0xf0] }
 0x2a8   :  { %v3610_v61 = vld [vmem:[#allocation7 + $0x2a0] sm:$0xf]  ;;  %v3547_v8 = vor.u32 %v4109_v32, %v3546_v26  ;;  %v4123_v11 = vld [vmem:[#allocation7 + $0x294] sm:$0xf0]  ;;  %v3639_v34 = vor.u32 %v4130_v28, %v3636_v29  ;;  %v4150_v39 = vld [vmem:[#allocation7 + $0x374] sm:$0xf] }
 0x2a9   :  { %v4710_v45 = vpack.c.bf16 %v4704_v9, %v4704_v9  ;;  %v4714_v46 = vpack.c.bf16 %v4706_v44, %v4706_v44  ;;  %v3611_v62 = vor.u32 %v4125_v41, %v3610_v61  ;;  %v3603_v23 = vor.u32 %v4123_v11, %v3602_v63  ;;  %v3730_v26 = vld [vmem:[#allocation7 + $0x390] sm:$0xf]  ;;  %v4128_v41 = vld [vmem:[#allocation7 + $0x2c4] sm:$0xf]  ;;  %v3708_v63 = vld [vmem:[#allocation7 + $0x368] sm:$0xf0] }
 0x2aa   :  { %v4724_v52 = vld [vmem:[#allocation10 + $0x4] ss:$8 sm:$0xf] }
 0x2ab   :  { %1804 = vmatmul.bf16.vlgmr.msra.gmra.mxu0 %v4710_v45  ;;  %1817 = vmatmul.bf16.vlgmr.msra.gmra.mxu1 %v4714_v46  ;;  %v4126_v53 = vld [vmem:[#allocation7 + $0x2b4] sm:$0xf]  ;;  %v3532_v18 = vld [vmem:[#allocation7 + $0x208] sm:$0xf0]  ;;  %v3684_v29 = vld [vmem:[#allocation7 + $0x338] sm:$0xf0] }
 0x2ac   :  { %1830 = vmatmul.bf16.vlgmr.msra.gmra.mxu2 %v4710_v45  ;;  %1843 = vmatmul.bf16.vlgmr.msra.gmra.mxu3 %v4714_v46 }
 0x2ad   :  { %2298 = vmatpush.bf16.msra.mxu0 %v3587_v59  ;;  %2311 = vmatpush.bf16.msra.mxu1 %v3651_v49  ;;  %v3539_v59 = vor.u32 %v4107_v0, %v3538_v42  ;;  %v4105_v49 = vld [vmem:[#allocation7 + $0x204] sm:$0xf0]  ;;  %v4148_v0 = vld [vmem:[#allocation7 + $0x364] sm:$0xf] }
 0x2ae   :  { %2324 = vmatpush.bf16.msra.mxu2 %v3715_v54  ;;  %2337 = vmatpush.bf16.msra.mxu3 %v3779_v57  ;;  %v3588_v54 = vld [vmem:[#allocation7 + $0x278] sm:$0xf0] }
 0x2b1   :  { %2299 = vmatpush.bf16.msra.mxu0 %v3579_v6  ;;  %2312 = vmatpush.bf16.msra.mxu1 %v3643_v47  ;;  %v4134_v6 = vld [vmem:[#allocation7 + $0x2f4] sm:$0xf] }
 0x2b2   :  { %2325 = vmatpush.bf16.msra.mxu2 %v3707_v13  ;;  %2338 = vmatpush.bf16.msra.mxu3 %v3771_v14  ;;  %v3655_v47 = vor.u32 %v4134_v6, %v3652_v7  ;;  %v3572_v13 = vld [vmem:[#allocation7 + $0x258] sm:$0xf0]  ;;  %v4146_v6 = vld [vmem:[#allocation7 + $0x354] sm:$0xf] }
 0x2b3   :  { %v3575_v14 = vor.u32 %v4114_v12, %v3572_v13  ;;  %v3700_v7 = vld [vmem:[#allocation7 + $0x358] sm:$0xf0]  ;;  %v4164_v12 = vld [vmem:[#allocation7 + $0x3e4] sm:$0xf]  ;;  %v3772_v13 = vld [vmem:[#allocation7 + $0x3e8] sm:$0xf0] }
 0x2b5   :  { %2300 = vmatpush.bf16.msra.mxu0 %v3571_v50  ;;  %2313 = vmatpush.bf16.msra.mxu1 %v3635_v20  ;;  %v3747_v50 = vor.u32 %v4159_v17, %v3746_v15  ;;  %v4139_v20 = vld [vmem:[#allocation7 + $0x314] sm:$0xf0]  ;;  %v1468_v15 = vperm.slane %v4724_v52, 0  ;;  %v4104_v17 = vld [vmem:[#allocation7 + $0x204] sm:$0xf] }
 0x2b6   :  { %2326 = vmatpush.bf16.msra.mxu2 %v3699_v22  ;;  %2339 = vmatpush.bf16.msra.mxu3 %v3763_v24  ;;  %v3667_v51 = vor.u32 %v4139_v20, %v3666_v43  ;;  %v4112_v22 = vld [vmem:[#allocation7 + $0x244] sm:$0xf]  ;;  %v3535_v19 = vor.u32 %v4104_v17, %v3532_v18  ;;  %v3692_v43 = vld [vmem:[#allocation7 + $0x348] sm:$0xf0]  ;;  %v4122_v20 = vld [vmem:[#allocation7 + $0x294] sm:$0xf] }
 0x2b7   :  { %v3567_v24 = vor.u32 %v4112_v22, %v3564_v33  ;;  %v4162_v33 = vld [vmem:[#allocation7 + $0x3d4] sm:$0xf]  ;;  %v3724_v17 = vld [vmem:[#allocation7 + $0x388] sm:$0xf0] }
 0x2b9   :  { %2301 = vmatpush.bf16.msra.mxu0 %v3563_v56  ;;  %2314 = vmatpush.bf16.msra.mxu1 %v3627_v30  ;;  %v3739_v56 = vor.u32 %v4157_v27, %v3738_v25  ;;  %v3658_v30 = vld [vmem:[#allocation7 + $0x300] sm:$0xf]  ;;  %v4142_v25 = vld [vmem:[#allocation7 + $0x334] sm:$0xf] }
 0x2ba   :  { %2327 = vmatpush.bf16.msra.mxu2 %v3691_v37  ;;  %2340 = vmatpush.bf16.msra.mxu3 %v3755_v38  ;;  %v3659_v35 = vor.u32 %v4137_v31, %v3658_v30  ;;  %v4110_v37 = vld [vmem:[#allocation7 + $0x234] sm:$0xf]  ;;  %v3556_v38 = vld [vmem:[#allocation7 + $0x238] sm:$0xf0]  ;;  %v4120_v30 = vld [vmem:[#allocation7 + $0x284] sm:$0xf] }
 0x2bb   :  { %1856 = vmatmul.bf16.vlgmr.msrb.gmra.mxu0 %v4710_v45  ;;  %1869 = vmatmul.bf16.vlgmr.msrb.gmra.mxu1 %v4714_v46  ;;  %v3559_v36 = vor.u32 %v4110_v37, %v3556_v38  ;;  %v3596_v31 = vld [vmem:[#allocation7 + $0x288] sm:$0xf0]  ;;  %v4160_v37 = vld [vmem:[#allocation7 + $0x3c4] sm:$0xf] }
 0x2bc   :  { %1882 = vmatmul.bf16.vlgmr.msrb.gmra.mxu2 %v4710_v45  ;;  %1895 = vmatmul.bf16.vlgmr.msrb.gmra.mxu3 %v4714_v46  ;;  %v4118_v45 = vld [vmem:[#allocation7 + $0x274] sm:$0xf]  ;;  %v3531_v46 = vor.u32 %v4105_v49, %v3530_v48  ;;  %v3722_v48 = vld [vmem:[#allocation7 + $0x380] sm:$0xf]  ;;  %v3756_v38 = vld [vmem:[#allocation7 + $0x3c8] sm:$0xf0] }
 0x2bd   :  { %2302 = vmatpush.bf16.msra.mxu0 %v3555_v40  ;;  %2315 = vmatpush.bf16.msra.mxu1 %v3619_v60  ;;  %v3591_v57 = vor.u32 %v4118_v45, %v3588_v54  ;;  %v3716_v40 = vld [vmem:[#allocation7 + $0x378] sm:$0xf0]  ;;  %v4155_v60 = vld [vmem:[#allocation7 + $0x394] sm:$0xf0]  ;;  %v4166_v54 = vld [vmem:[#allocation7 + $0x3f4] sm:$0xf] }
 0x2be   :  { %2328 = vmatpush.bf16.msra.mxu2 %v3683_v58  ;;  %2341 = vmatpush.bf16.msra.mxu3 %v3747_v50  ;;  %v3719_v32 = vor.u32 %v4150_v39, %v3716_v40  ;;  %v3731_v61 = vor.u32 %v4155_v60, %v3730_v26  ;;  %v3628_v58 = vld [vmem:[#allocation7 + $0x2c8] sm:$0xf0]  ;;  %v3620_v45 = vld [vmem:[#allocation7 + $0x2b8] sm:$0xf0]  ;;  %v4144_v50 = vld [vmem:[#allocation7 + $0x344] sm:$0xf]  ;;  %v3599_v39 = vor.u32 %v4120_v30, %v3596_v31 }
 0x2bf   :  { %v3631_v42 = vor.u32 %v4128_v41, %v3628_v58  ;;  %v3676_v40 = vld [vmem:[#allocation7 + $0x328] sm:$0xf0]  ;;  %v3759_v60 = vor.u32 %v4160_v37, %v3756_v38  ;;  %v3748_v41 = vld [vmem:[#allocation7 + $0x3b8] sm:$0xf0] }
 0x2c1   :  { %2303 = vmatpush.bf16.msra.mxu0 %v3547_v8  ;;  %2316 = vmatpush.bf16.msra.mxu1 %v3611_v62  ;;  %v4108_v8 = vld [vmem:[#allocation7 + $0x224] sm:$0xf]  ;;  %v3548_v62 = vld [vmem:[#allocation7 + $0x228] sm:$0xf0] }
 0x2c2   :  { %2329 = vmatpush.bf16.msra.mxu2 %v3675_v3  ;;  %2342 = vmatpush.bf16.msra.mxu3 %v3739_v56  ;;  %v3551_v11 = vor.u32 %v4108_v8, %v3548_v62  ;;  %v3615_v3 = vor.u32 %v4124_v16, %v3612_v55  ;;  %v3668_v62 = vld [vmem:[#allocation7 + $0x318] sm:$0xf0] }
 0x2c5   :  { %2304 = vmatpush.bf16.msra.mxu0 %v3539_v59  ;;  %2317 = vmatpush.bf16.msra.mxu1 %v3603_v23  ;;  %v3711_v59 = vor.u32 %v4148_v0, %v3708_v63  ;;  %v4153_v23 = vld [vmem:[#allocation7 + $0x384] sm:$0xf0] }
 0x2c6   :  { %2330 = vmatpush.bf16.msra.mxu2 %v3667_v51  ;;  %2343 = vmatpush.bf16.msra.mxu3 %v3731_v61  ;;  %v3723_v49 = vor.u32 %v4153_v23, %v3722_v48  ;;  %v3695_v51 = vor.u32 %v4144_v50, %v3692_v43  ;;  %v4158_v61 = vld [vmem:[#allocation7 + $0x3b4] sm:$0xf]  ;;  %v1471_v43 = vperm.slane %v4724_v52, 3 }
 0x2c9   :  { %2305 = vmatpush.bf16.msra.mxu0 %v3531_v46  ;;  %2318 = vmatpush.bf16.msra.mxu1 %v3595_v1  ;;  %v3623_v46 = vor.u32 %v4126_v53, %v3620_v45  ;;  %v3780_v1 = vld [vmem:[#allocation7 + $0x3f8] sm:$0xf0]  ;;  %v4156_v53 = vld [vmem:[#allocation7 + $0x3a4] sm:$0xf]  ;;  %v3740_v45 = vld [vmem:[#allocation7 + $0x3a8] sm:$0xf0] }
 0x2ca   :  { %2331 = vmatpush.bf16.msra.mxu2 %v3659_v35  ;;  %2344 = vmatpush.bf16.msra.mxu3 %v3723_v49  ;;  %v3783_v5 = vor.u32 %v4166_v54, %v3780_v1  ;;  %v3687_v35 = vor.u32 %v4142_v25, %v3684_v29  ;;  %v4136_v1 = vld [vmem:[#allocation7 + $0x304] sm:$0xf] }
 0x2cd   :  { %2350 = vmatpush.bf16.msrb.mxu0 %v3591_v57  ;;  %2363 = vmatpush.bf16.msrb.mxu1 %v3655_v47  ;;  %v4106_v57 = vld [vmem:[#allocation7 + $0x214] sm:$0xf]  ;;  %v3703_v47 = vor.u32 %v4146_v6, %v3700_v7  ;;  %v3732_v6 = vld [vmem:[#allocation7 + $0x398] sm:$0xf0]  ;;  %v1470_v7 = vperm.slane %v4724_v52, 2 }
 0x2ce   :  { %2376 = vmatpush.bf16.msrb.mxu2 %v3719_v32  ;;  %2389 = vmatpush.bf16.msrb.mxu3 %v3783_v5  ;;  %v1469_v32 = vperm.slane %v4724_v52, 1 }
 0x2d1   :  { %2351 = vmatpush.bf16.msrb.mxu0 %v3583_v2  ;;  %2364 = vmatpush.bf16.msrb.mxu1 %v3647_v21  ;;  %v3543_v2 = vor.u32 %v4106_v57, %v3540_v4  ;;  %v3604_v21 = vld [vmem:[#allocation7 + $0x298] sm:$0xf0]  ;;  %v3660_v57 = vld [vmem:[#allocation7 + $0x308] sm:$0xf0]  ;;  %v3743_v4 = vor.u32 %v4156_v53, %v3740_v45 }
 0x2d2   :  { %2377 = vmatpush.bf16.msrb.mxu2 %v3711_v59  ;;  %v3607_v22 = vor.u32 %v4122_v20, %v3604_v21  ;;  %v3751_v59 = vor.u32 %v4158_v61, %v3748_v41  ;;  %v3663_v16 = vor.u32 %v4136_v1, %v3660_v57  ;;  %v3842_v57 = vld [vmem:[#allocation8 + $0x70] sm:$0xf] }
 0x2d5   :  { %2352 = vmatpush.bf16.msrb.mxu0 %v3575_v14  ;;  %2365 = vmatpush.bf16.msrb.mxu1 %v3639_v34  ;;  %v3775_v14 = vor.u32 %v4164_v12, %v3772_v13 }
 0x2d6   :  { %2378 = vmatpush.bf16.msrb.mxu2 %v3703_v47 }
 0x2d7   :  { %2390 = vmatpush.bf16.msrb.mxu3 %v3775_v14 }
 0x2d9   :  { %2353 = vmatpush.bf16.msrb.mxu0 %v3567_v24  ;;  %2366 = vmatpush.bf16.msrb.mxu1 %v3631_v42  ;;  %v3764_v24 = vld [vmem:[#allocation7 + $0x3d8] sm:$0xf0]  ;;  %v4138_v42 = vld [vmem:[#allocation7 + $0x314] sm:$0xf] }
 0x2da   :  { %v3767_v56 = vor.u32 %v4162_v33, %v3764_v24  ;;  %2379 = vmatpush.bf16.msrb.mxu2 %v3695_v51  ;;  %v3671_v54 = vor.u32 %v4138_v42, %v3668_v62 }
 0x2dc   :  { %2391 = vmatpush.bf16.msrb.mxu3 %v3767_v56 }
 0x2dd   :  { %2354 = vmatpush.bf16.msrb.mxu0 %v3559_v36  ;;  %2367 = vmatpush.bf16.msrb.mxu1 %v3623_v46  ;;  %v4140_v36 = vld [vmem:[#allocation7 + $0x324] sm:$0xf] }
 0x2de   :  { %2380 = vmatpush.bf16.msrb.mxu2 %v3687_v35  ;;  %v3679_v8 = vor.u32 %v4140_v36, %v3676_v40 }
 0x2e0   :  { %2392 = vmatpush.bf16.msrb.mxu3 %v3759_v60  ;;  %v1395_v60 = vld [vmem:[#allocation10 + $0x5] ss:$8 sm:$0x3] }
 0x2e1   :  { %2355 = vmatpush.bf16.msrb.mxu0 %v3551_v11  ;;  %2368 = vmatpush.bf16.msrb.mxu1 %v3615_v3  ;;  %v1974_v61 = vperm.slane %v1395_v60, 0  ;;  %v1975_v41 = vperm.slane %v1395_v60, 1  ;;  %v3818_v60 = vld [vmem:[#allocation8 + $0x40] sm:$0xf] }
 0x2e2   :  { %2381 = vmatpush.bf16.msrb.mxu2 %v3679_v8 }
 0x2e4   :  { %2393 = vmatpush.bf16.msrb.mxu3 %v3751_v59 }
 0x2e5   :  { %2356 = vmatpush.bf16.msrb.mxu0 %v3543_v2  ;;  %2369 = vmatpush.bf16.msrb.mxu1 %v3607_v22  ;;  %v4154_v2 = vld [vmem:[#allocation7 + $0x394] sm:$0xf] }
 0x2e6   :  { %2382 = vmatpush.bf16.msrb.mxu2 %v3671_v54  ;;  %v3735_v13 = vor.u32 %v4154_v2, %v3732_v6  ;;  %v4199_v6 = vld [vmem:[#allocation8 + $0xf4] sm:$0xf0] }
 0x2e8   :  { %2394 = vmatpush.bf16.msrb.mxu3 %v3743_v4  ;;  %v4183_v4 = vld [vmem:[#allocation8 + $0x74] sm:$0xf0] }
 0x2e9   :  { %2357 = vmatpush.bf16.msrb.mxu0 %v3535_v19  ;;  %2370 = vmatpush.bf16.msrb.mxu1 %v3599_v39  ;;  %v3843_v2 = vor.u32 %v4183_v4, %v3842_v57  ;;  %v4190_v4 = vld [vmem:[#allocation8 + $0xb4] sm:$0xf] }
 0x2ea   :  { %2383 = vmatpush.bf16.msrb.mxu2 %v3663_v16  ;;  %v3844_v16 = vld [vmem:[#allocation8 + $0x78] sm:$0xf0] }
 0x2ec   :  { %2395 = vmatpush.bf16.msrb.mxu3 %v3735_v13  ;;  %v3908_v13 = vld [vmem:[#allocation8 + $0xf8] sm:$0xf0] }
 0x328   :  { %v1805_v27 = vpop.f32.mrf.mxu0  ;;  %v1818_v28 = vpop.f32.mrf.mxu1 }
 0x329   :  { %v1806_v34 = vadd.f32 %v1805_v27, %v1468_v15  ;;  %v4152_v15 = vld [vmem:[#allocation7 + $0x384] sm:$0xf] }
 0x32a   :  { %v3727_v19 = vor.u32 %v4152_v15, %v3724_v17 }
 0x32b   :  { %v1819_v26 = vadd.f32 %v1818_v28, %v1806_v34 }
 0x32c   :  { %2396 = vmatpush.bf16.msrb.mxu3 %v3727_v19  ;;  %v3834_v19 = vld [vmem:[#allocation8 + $0x60] sm:$0xf] }
 0x32d   :  { %v1900_v58 = vmax.f32 %v1819_v26, 0.0 }
 0x32f   :  { %v1904_v0 = vpack.c.bf16 %v1900_v58, %v1900_v58  ;;  %v1831_v63 = vpop.f32.mrf.mxu2  ;;  %v1844_v11 = vpop.f32.mrf.mxu3 }
 0x330   :  { %v1832_v48 = vadd.f32 %v1831_v63, %v1469_v32  ;;  %v1807_v23 = vpop.f32.mrf.mxu0  ;;  %v1820_v49 = vpop.f32.mrf.mxu1 }
 0x331   :  { %2306 = vmatmul.bf16.vlgmr.msra.gmra.mxu0 %v1904_v0 }
 0x332   :  { %v1845_v46 = vadd.f32 %v1844_v11, %v1832_v48  ;;  %2648 = vmatpush.bf16.msra.mxu0 %v3843_v2  ;;  %v3802_v2 = vld [vmem:[#allocation8 + $0x20] sm:$0xf] }
 0x334   :  { %v1901_v5 = vmax.f32 %v1845_v46, 0.0 }
 0x336   :  { %v1905_v47 = vpack.c.bf16 %v1901_v5, %v1901_v5  ;;  %v3906_v5 = vld [vmem:[#allocation8 + $0xf0] sm:$0xf] }
 0x337   :  { %v1833_v55 = vpop.f32.mrf.mxu2  ;;  %v1846_v12 = vpop.f32.mrf.mxu3 }
 0x338   :  { %2319 = vmatmul.bf16.vlgmr.msra.gmra.mxu1 %v1905_v47  ;;  %v1857_v3 = vpop.f32.mrf.mxu0  ;;  %v1870_v14 = vpop.f32.mrf.mxu1  ;;  %v4198_v12 = vld [vmem:[#allocation8 + $0xf4] sm:$0xf] }
 0x339   :  { %v1858_v18 = vadd.f32 %v1857_v3, %v1470_v7  ;;  %v4182_v7 = vld [vmem:[#allocation8 + $0x74] sm:$0xf]  ;;  %v3911_v3 = vor.u32 %v4198_v12, %v3908_v13  ;;  %v4172_v13 = vld [vmem:[#allocation8 + $0x24] sm:$0xf] }
 0x33a   :  { %v3847_v55 = vor.u32 %v4182_v7, %v3844_v16  ;;  %v4173_v7 = vld [vmem:[#allocation8 + $0x24] sm:$0xf0]  ;;  %v3866_v16 = vld [vmem:[#allocation8 + $0xa0] sm:$0xf] }
 0x33b   :  { %v1871_v50 = vadd.f32 %v1870_v14, %v1858_v18 }
 0x33d   :  { %v1902_v20 = vmax.f32 %v1871_v50, 0.0 }
 0x33f   :  { %v1906_v21 = vpack.c.bf16 %v1902_v20, %v1902_v20  ;;  %v1883_v51 = vpop.f32.mrf.mxu2  ;;  %v1896_v22 = vpop.f32.mrf.mxu3  ;;  %v3898_v20 = vld [vmem:[#allocation8 + $0xe0] sm:$0xf] }
 0x340   :  { %v1884_v33 = vadd.f32 %v1883_v51, %v1471_v43  ;;  %v1859_v24 = vpop.f32.mrf.mxu0  ;;  %v1872_v25 = vpop.f32.mrf.mxu1  ;;  %v4181_v43 = vld [vmem:[#allocation8 + $0x64] sm:$0xf0] }
 0x341   :  { %2332 = vmatmul.bf16.vlgmr.msra.gmra.mxu2 %v1906_v21  ;;  %2358 = vmatmul.bf16.vlgmr.msrb.gmra.mxu0 %v1904_v0  ;;  %v4197_v51 = vld [vmem:[#allocation8 + $0xe4] sm:$0xf0] }
 0x342   :  { %v1897_v27 = vadd.f32 %v1896_v22, %v1884_v33  ;;  %2674 = vmatpush.bf16.msra.mxu2 %v3847_v55  ;;  %v4180_v22 = vld [vmem:[#allocation8 + $0x64] sm:$0xf]  ;;  %v3836_v33 = vld [vmem:[#allocation8 + $0x68] sm:$0xf0]  ;;  %v3899_v24 = vor.u32 %v4197_v51, %v3898_v20  ;;  %v3803_v55 = vor.u32 %v4173_v7, %v3802_v2  ;;  %v4187_v20 = vld [vmem:[#allocation8 + $0x94] sm:$0xf0] }
 0x343   :  { %v3839_v25 = vor.u32 %v4180_v22, %v3836_v33  ;;  %v3796_v22 = vld [vmem:[#allocation8 + $0x18] sm:$0xf0]  ;;  %v4186_v33 = vld [vmem:[#allocation8 + $0x94] sm:$0xf] }
 0x344   :  { %v1903_v28 = vmax.f32 %v1897_v27, 0.0  ;;  %v4196_v27 = vld [vmem:[#allocation8 + $0xe4] sm:$0xf]  ;;  %v2444_v2 = vld [vmem:[#allocation10 + $0x20] ss:$8 sm:$0x3] }
 0x346   :  { %v1907_v56 = vpack.c.bf16 %v1903_v28, %v1903_v28  ;;  %v3900_v28 = vld [vmem:[#allocation8 + $0xe8] sm:$0xf0]  ;;  %2675 = vmatpush.bf16.msra.mxu2 %v3839_v25 }
 0x347   :  { %v1885_v29 = vpop.f32.mrf.mxu2  ;;  %v1898_v30 = vpop.f32.mrf.mxu3 }
 0x348   :  { %2345 = vmatmul.bf16.vlgmr.msra.gmra.mxu3 %v1907_v56  ;;  %2371 = vmatmul.bf16.vlgmr.msrb.gmra.mxu1 %v1905_v47  ;;  %v3907_v47 = vor.u32 %v4199_v6, %v3906_v5  ;;  %v3826_v29 = vld [vmem:[#allocation8 + $0x50] sm:$0xf]  ;;  %v4179_v30 = vld [vmem:[#allocation8 + $0x54] sm:$0xf0]  ;;  %v3876_v5 = vld [vmem:[#allocation8 + $0xb8] sm:$0xf0] }
 0x349   :  { %2687 = vmatpush.bf16.msra.mxu3 %v3911_v3  ;;  %v3879_v6 = vor.u32 %v4190_v4, %v3876_v5  ;;  %v3804_v3 = vld [vmem:[#allocation8 + $0x28] sm:$0xf0] }
 0x34a   :  { %2661 = vmatpush.bf16.msra.mxu1 %v3907_v47  ;;  %v4189_v47 = vld [vmem:[#allocation8 + $0xa4] sm:$0xf0] }
 0x34b   :  { %v3867_v12 = vor.u32 %v4189_v47, %v3866_v16  ;;  %v2484_v16 = vperm.slane %v2444_v2, 0  ;;  %v2485_v47 = vperm.slane %v2444_v2, 1 }
 0x34e   :  { %2662 = vmatpush.bf16.msra.mxu1 %v3899_v24  ;;  %v3860_v24 = vld [vmem:[#allocation8 + $0x98] sm:$0xf0] }
 0x351   :  { %2384 = vmatmul.bf16.vlgmr.msrb.gmra.mxu2 %v1906_v21  ;;  %v3835_v21 = vor.u32 %v4181_v43, %v3834_v19  ;;  %v3858_v43 = vld [vmem:[#allocation8 + $0x90] sm:$0xf] }
 0x352   :  { %v3859_v25 = vor.u32 %v4187_v20, %v3858_v43 }
 0x353   :  { %2649 = vmatpush.bf16.msra.mxu0 %v3835_v21  ;;  %v4170_v21 = vld [vmem:[#allocation8 + $0x14] sm:$0xf] }
 0x358   :  { %2397 = vmatmul.bf16.vlgmr.msrb.gmra.mxu3 %v1907_v56  ;;  %v3903_v56 = vor.u32 %v4196_v27, %v3900_v28  ;;  %v3799_v27 = vor.u32 %v4170_v21, %v3796_v22  ;;  %v3786_v28 = vld [vmem:[#allocation8] sm:$0xf] }
 0x35a   :  { %2688 = vmatpush.bf16.msra.mxu3 %v3903_v56  ;;  %v4169_v56 = vld [vmem:[#allocation8 + $0x4] sm:$0xf0] }
 0x3ae   :  { %v2307_v52 = vpop.f32.mrf.mxu0 }
 0x3af   :  { %v2308_v8 = vadd.f32 %v2307_v52, %v1974_v61  ;;  %v3890_v52 = vld [vmem:[#allocation8 + $0xd0] sm:$0xf]  ;;  %v3882_v61 = vld [vmem:[#allocation8 + $0xc0] sm:$0xf] }
 0x3b5   :  { %v2320_v31 = vpop.f32.mrf.mxu1 }
 0x3b6   :  { %v2309_v34 = vpop.f32.mrf.mxu0  ;;  %v2321_v62 = vadd.f32 %v2320_v31, %v2308_v8  ;;  %v3827_v31 = vor.u32 %v4179_v30, %v3826_v29  ;;  %v4176_v8 = vld [vmem:[#allocation8 + $0x44] sm:$0xf]  ;;  %v3850_v29 = vld [vmem:[#allocation8 + $0x80] sm:$0xf]  ;;  %v3863_v30 = vor.u32 %v4186_v33, %v3860_v24 }
 0x3b7   :  { %v4195_v34 = vld [vmem:[#allocation8 + $0xd4] sm:$0xf0] }
 0x3b8   :  { %2650 = vmatpush.bf16.msra.mxu0 %v3827_v31  ;;  %v4168_v31 = vld [vmem:[#allocation8 + $0x4] sm:$0xf] }
 0x3bd   :  { %v2322_v35 = vpop.f32.mrf.mxu1 }
 0x3be   :  { %v2359_v37 = vpop.f32.mrf.mxu0  ;;  %v4178_v35 = vld [vmem:[#allocation8 + $0x54] sm:$0xf] }
 0x3bf   :  { %v2360_v0 = vadd.f32 %v2359_v37, %v1975_v41  ;;  %v3828_v37 = vld [vmem:[#allocation8 + $0x58] sm:$0xf0] }
 0x3c4   :  { %v2333_v38 = vpop.f32.mrf.mxu2 }
 0x3c5   :  { %v2372_v39 = vpop.f32.mrf.mxu1  ;;  %v2334_v63 = vadd.f32 %v2333_v38, %v2321_v62  ;;  %v3891_v38 = vor.u32 %v4195_v34, %v3890_v52  ;;  %v4185_v52 = vld [vmem:[#allocation8 + $0x84] sm:$0xf0]  ;;  %v3788_v34 = vld [vmem:[#allocation8 + $0x8] sm:$0xf0] }
 0x3c6   :  { %v2361_v36 = vpop.f32.mrf.mxu0  ;;  %v2373_v11 = vadd.f32 %v2372_v39, %v2360_v0  ;;  %v3831_v39 = vor.u32 %v4178_v35, %v3828_v37  ;;  %v4184_v37 = vld [vmem:[#allocation8 + $0x84] sm:$0xf] }
 0x3c7   :  { %v4194_v36 = vld [vmem:[#allocation8 + $0xd4] sm:$0xf]  ;;  %2663 = vmatpush.bf16.msra.mxu1 %v3891_v38  ;;  %v3852_v38 = vld [vmem:[#allocation8 + $0x88] sm:$0xf0] }
 0x3c8   :  { %2676 = vmatpush.bf16.msra.mxu2 %v3831_v39 }
 0x3cb   :  { %v2346_v40 = vpop.f32.mrf.mxu3 }
 0x3cc   :  { %v2335_v26 = vpop.f32.mrf.mxu2  ;;  %v2347_v59 = vadd.f32 %v2346_v40, %v2334_v63  ;;  %v3892_v40 = vld [vmem:[#allocation8 + $0xd8] sm:$0xf0]  ;;  %v4192_v63 = vld [vmem:[#allocation8 + $0xc4] sm:$0xf] }
 0x3cd   :  { %v2374_v32 = vpop.f32.mrf.mxu1  ;;  %v3895_v26 = vor.u32 %v4194_v36, %v3892_v40  ;;  %v3787_v36 = vor.u32 %v4169_v56, %v3786_v28  ;;  %v3851_v40 = vor.u32 %v4185_v52, %v3850_v29 }
 0x3ce   :  { %v2402_v45 = vadd.f32 %v2347_v59, %v4704_v9  ;;  %v4177_v32 = vld [vmem:[#allocation8 + $0x44] sm:$0xf0] }
 0x3cf   :  { %2689 = vmatpush.bf16.msra.mxu3 %v3895_v26  ;;  %v3819_v41 = vor.u32 %v4177_v32, %v3818_v60  ;;  %v3791_v26 = vor.u32 %v4168_v31, %v3788_v34  ;;  %v3855_v32 = vor.u32 %v4184_v37, %v3852_v38  ;;  %v2446_v31 = vld [vmem:[#allocation10 + $0x21] ss:$8 sm:$0x3] }
 0x3d0   :  { %v2726_v37 = vperm.slane %v2446_v31, 0  ;;  %v2727_v38 = vperm.slane %v2446_v31, 1 }
 0x3d1   :  { %2651 = vmatpush.bf16.msra.mxu0 %v3819_v41 }
 0x3d3   :  { %v2348_v58 = vpop.f32.mrf.mxu3 }
 0x3d4   :  { %v2385_v42 = vpop.f32.mrf.mxu2  ;;  %v4193_v58 = vld [vmem:[#allocation8 + $0xc4] sm:$0xf0] }
 0x3d5   :  { %v2386_v48 = vadd.f32 %v2385_v42, %v2373_v11  ;;  %v3820_v42 = vld [vmem:[#allocation8 + $0x48] sm:$0xf0]  ;;  %v3883_v62 = vor.u32 %v4193_v58, %v3882_v61 }
 0x3d6   :  { %v3823_v0 = vor.u32 %v4176_v8, %v3820_v42  ;;  %v3884_v11 = vld [vmem:[#allocation8 + $0xc8] sm:$0xf0] }
 0x3d7   :  { %v3887_v59 = vor.u32 %v4192_v63, %v3884_v11  ;;  %2664 = vmatpush.bf16.msra.mxu1 %v3883_v62  ;;  %v1397_v62 = vld [vmem:[#allocation10 + $0x6] ss:$8 sm:$0x3]  ;;  %v1399_v63 = vld [vmem:[#allocation10 + $0x7] ss:$8 sm:$0x3] }
 0x3d8   :  { %2677 = vmatpush.bf16.msra.mxu2 %v3823_v0  ;;  %v2430_v11 = vperm.slane %v1397_v62, 0 }
 0x3d9   :  { %2690 = vmatpush.bf16.msra.mxu3 %v3887_v59  ;;  %v2431_v59 = vperm.slane %v1397_v62, 1 }
 0x3db   :  { %v2398_v23 = vpop.f32.mrf.mxu3 }
 0x3dc   :  { %v2399_v49 = vadd.f32 %v2398_v23, %v2386_v48  ;;  %v2387_v53 = vpop.f32.mrf.mxu2  ;;  %v3810_v48 = vld [vmem:[#allocation8 + $0x30] sm:$0xf]  ;;  %v4175_v23 = vld [vmem:[#allocation8 + $0x34] sm:$0xf0] }
 0x3dd   :  { %v3811_v53 = vor.u32 %v4175_v23, %v3810_v48  ;;  %2691 = vmatpush.bf16.msra.mxu3 %v3879_v6 }
 0x3de   :  { %v2403_v54 = vadd.f32 %v2399_v49, %v4706_v44  ;;  %v3874_v49 = vld [vmem:[#allocation8 + $0xb0] sm:$0xf] }
 0x3df   :  { %2652 = vmatpush.bf16.msra.mxu0 %v3811_v53  ;;  %v2437_v53 = vperm.slane %v1399_v63, 0 }
 0x3e0   :  { %v2404_v46 = vadd.f32 %v2403_v54, %v2402_v45 }
 0x3e2   :  { %2405 = vadd.xlane.f32.xlu1 %v2404_v46  ;;  %v3812_v46 = vld [vmem:[#allocation8 + $0x38] sm:$0xf0] }
 0x3e3   :  { %v2400_v1 = vpop.f32.mrf.mxu3  ;;  %2653 = vmatpush.bf16.msra.mxu0 %v3803_v55 }
 0x455   :  { %v2406_v9 = vpop.xlane.xlu1 %2405 }
 0x456   :  { %v2407_v44 = vmul.f32 %v2406_v9, %v4683_v10  ;;  %v4188_v9 = vld [vmem:[#allocation8 + $0xa4] sm:$0xf] }
 0x458   :  { %v4733_v14 = vsub.f32 %v2402_v45, %v2407_v44  ;;  %v4735_v15 = vsub.f32 %v2403_v54, %v2407_v44  ;;  %v4191_v45 = vld [vmem:[#allocation8 + $0xb4] sm:$0xf0]  ;;  %v4174_v54 = vld [vmem:[#allocation8 + $0x34] sm:$0xf]  ;;  %v3807_v44 = vor.u32 %v4172_v13, %v3804_v3 }
 0x459   :  { %v3875_v1 = vor.u32 %v4191_v45, %v3874_v49  ;;  %v3815_v57 = vor.u32 %v4174_v54, %v3812_v46  ;;  %v2438_v45 = vperm.slane %v1399_v63, 1 }
 0x45a   :  { %v2410_v17 = vmul.f32 %v4733_v14, %v4733_v14  ;;  %v2411_v18 = vmul.f32 %v4735_v15, %v4735_v15 }
 0x45b   :  { %2665 = vmatpush.bf16.msra.mxu1 %v3875_v1  ;;  %2678 = vmatpush.bf16.msra.mxu2 %v3815_v57 }
 0x45c   :  { %v2412_v50 = vadd.f32 %v2411_v18, %v2410_v17  ;;  %v3868_v17 = vld [vmem:[#allocation8 + $0xa8] sm:$0xf0]  ;;  %v3794_v18 = vld [vmem:[#allocation8 + $0x10] sm:$0xf] }
 0x45d   :  { %v3871_v19 = vor.u32 %v4188_v9, %v3868_v17 }
 0x45e   :  { %2413 = vadd.xlane.f32.xlu1 %v2412_v50  ;;  %v4171_v50 = vld [vmem:[#allocation8 + $0x14] sm:$0xf0] }
 0x45f   :  { %v3795_v51 = vor.u32 %v4171_v50, %v3794_v18  ;;  %2666 = vmatpush.bf16.msra.mxu1 %v3867_v12  ;;  %2679 = vmatpush.bf16.msra.mxu2 %v3807_v44 }
 0x460   :  { %2692 = vmatpush.bf16.msra.mxu3 %v3871_v19 }
 0x461   :  { %2654 = vmatpush.bf16.msra.mxu0 %v3795_v51 }
 0x463   :  { %2667 = vmatpush.bf16.msra.mxu1 %v3859_v25  ;;  %2680 = vmatpush.bf16.msra.mxu2 %v3799_v27 }
 0x464   :  { %2693 = vmatpush.bf16.msra.mxu3 %v3863_v30 }
 0x465   :  { %2655 = vmatpush.bf16.msra.mxu0 %v3787_v36 }
 0x467   :  { %2668 = vmatpush.bf16.msra.mxu1 %v3851_v40  ;;  %2681 = vmatpush.bf16.msra.mxu2 %v3791_v26 }
 0x468   :  { %2694 = vmatpush.bf16.msra.mxu3 %v3855_v32 }
 0x4d1   :  { %v2414_v35 = vpop.xlane.xlu1 %2413 }
 0x4d2   :  { %v2415_v39 = vmul.f32 %v2414_v35, %v4683_v10  ;;  %v2448_v35 = vld [vmem:[#allocation10 + $0x22] ss:$8 sm:$0x3] }
 0x4d3   :  { %v2733_v26 = vperm.slane %v2448_v35, 0 }
 0x4d4   :  { %v2416_v60 = vadd.f32 1e-05, %v2415_v39 }
 0x4d6   :  { %4220 = vrsqrt.f32 %v2416_v60  ;;  %vm2423_vm13 = vweird.f32 %v2416_v60 }
 0x4dc   :  { %v4221_v61 = vpop.eup %4220 }
 0x4dd   :  { %v2418_v41 = vmul.f32 %v4221_v61, %v2416_v60  ;;  %vm2424_vm12 = vweird.f32 %v4221_v61 }
 0x4de   :  { %vm2425_vm14 = vmor %vm2423_vm13, %vm2424_vm12 }
 0x4df   :  { %v2419_v58 = vmul.f32 %v4221_v61, %v2418_v41 }
 0x4e1   :  { %v2420_v8 = vmul.f32 0.5, %v2419_v58 }
 0x4e3   :  { %v2421_v42 = vsub.f32 1.5, %v2420_v8 }
 0x4e5   :  { %v2422_v0 = vmul.f32 %v4221_v61, %v2421_v42 }
 0x4e7   :  { %v2426_v48 = vsel %vm2425_vm14, %v4221_v61, %v2422_v0 }
 0x4e8   :  { %v2427_v23 = vmul.f32 %v2426_v48, %v4733_v14  ;;  %v2428_v49 = vmul.f32 %v2426_v48, %v4735_v15 }
 0x4ea   :  { %v2434_v54 = vmul.f32 %v2430_v11, %v2427_v23  ;;  %v2435_v46 = vmul.f32 %v2431_v59, %v2428_v49 }
 0x4ec   :  { %v2441_v1 = vadd.f32 %v2437_v53, %v2434_v54  ;;  %v2442_v57 = vadd.f32 %v2438_v45, %v2435_v46 }
 0x4ee   :  { %v2449_v4 = vpack.c.bf16 %v2441_v1, %v2441_v1  ;;  %v2450_v5 = vpack.c.bf16 %v2442_v57, %v2442_v57 }
 0x4f0   :  { %2656 = vmatmul.bf16.vlgmr.msra.gmra.mxu0 %v2449_v4  ;;  %2669 = vmatmul.bf16.vlgmr.msra.gmra.mxu1 %v2450_v5 }
 0x4f1   :  { %2682 = vmatmul.bf16.vlgmr.msra.gmra.mxu2 %v2449_v4  ;;  %2695 = vmatmul.bf16.vlgmr.msra.gmra.mxu3 %v2450_v5 }
 0x56d   :  { %v2657_v6 = vpop.f32.mrf.mxu0  ;;  %v2670_v7 = vpop.f32.mrf.mxu1 }
 0x56e   :  { %v2658_v14 = vadd.f32 %v2657_v6, %v2484_v16 }
 0x570   :  { %v2671_v9 = vadd.f32 %v2670_v7, %v2658_v14 }
 0x574   :  { %v2683_v55 = vpop.f32.mrf.mxu2  ;;  %v2696_v15 = vpop.f32.mrf.mxu3 }
 0x575   :  { %v2684_v12 = vadd.f32 %v2683_v55, %v2485_v47  ;;  %v2659_v13 = vpop.f32.mrf.mxu0  ;;  %v2672_v3 = vpop.f32.mrf.mxu1 }
 0x577   :  { %v2697_v44 = vadd.f32 %v2696_v15, %v2684_v12 }
 0x579   :  { %v2700_v17 = vadd.f32 %v2697_v44, %v2671_v9 }
 0x57b   :  { %2701 = vadd.xlane.f32.xlu2 %v2700_v17 }
 0x57c   :  { %v2685_v18 = vpop.f32.mrf.mxu2  ;;  %v2698_v50 = vpop.f32.mrf.mxu3 }
 0x5ee   :  { %v2702_v19 = vpop.xlane.xlu2 %2701 }
 0x5ef   :  { %v2703_v43 = vmul.f32 %v2702_v19, %v4683_v10 }
 0x5f1   :  { %v2704_v20 = vsub.f32 %v2671_v9, %v2703_v43  ;;  %v2705_v21 = vsub.f32 %v2697_v44, %v2703_v43 }
 0x5f3   :  { %v2706_v51 = vmul.f32 %v2704_v20, %v2704_v20  ;;  %v2707_v22 = vmul.f32 %v2705_v21, %v2705_v21 }
 0x5f5   :  { %v2708_v33 = vadd.f32 %v2707_v22, %v2706_v51 }
 0x5f7   :  { %2709 = vadd.xlane.f32.xlu2 %v2708_v33 }
 0x66a   :  { %v2710_v24 = vpop.xlane.xlu2 %2709 }
 0x66b   :  { %v2711_v25 = vmul.f32 %v2710_v24, %v4683_v10  ;;  %v2734_v10 = vperm.slane %v2448_v35, 1 }
 0x66d   :  { %v2712_v27 = vadd.f32 1e-05, %v2711_v25 }
 0x66f   :  { %4222 = vrsqrt.f32 %v2712_v27  ;;  %vm2719_vm0 = vweird.f32 %v2712_v27 }
 0x675   :  { %v4223_v28 = vpop.eup %4222 }
 0x676   :  { %v2714_v56 = vmul.f32 %v4223_v28, %v2712_v27  ;;  %vm2720_vm15 = vweird.f32 %v4223_v28 }
 0x677   :  { %vm2721_vm1 = vmor %vm2719_vm0, %vm2720_vm15 }
 0x678   :  { %v2715_v29 = vmul.f32 %v4223_v28, %v2714_v56 }
 0x67a   :  { %v2716_v30 = vmul.f32 0.5, %v2715_v29 }
 0x67c   :  { %v2717_v52 = vsub.f32 1.5, %v2716_v30 }
 0x67e   :  { %v2718_v34 = vmul.f32 %v4223_v28, %v2717_v52 }
 0x680   :  { %v2722_v39 = vsel %vm2721_vm1, %v4223_v28, %v2718_v34 }
 0x681   :  { %v2723_v36 = vmul.f32 %v2722_v39, %v2704_v20  ;;  %v2724_v40 = vmul.f32 %v2722_v39, %v2705_v21 }
 0x683   :  { %v2730_v60 = vmul.f32 %v2726_v37, %v2723_v36  ;;  %v2731_v32 = vmul.f32 %v2727_v38, %v2724_v40 }
 0x685   :  { %v2737_v61 = vadd.f32 %v2733_v26, %v2730_v60  ;;  %v2738_v41 = vadd.f32 %v2734_v10, %v2731_v32 }
 0x687   :  { %2739 = vst [vmem:[#allocation11] sm:$0xff] %v2737_v61 }
 0x688   :  { %2740 = vst [vmem:[#allocation11 + $0x8] sm:$0xff] %v2738_v41 }
 0x689   :  { %2751 = dma.vmem_to_hbm [thread:$0]  %s2747_s4, 256, %s2749_s23, [#allocation4]  }
 0x68a   :  { %4374 = dma.done.wait [#allocation4], 256  }
 0x68b   :  { %4375 = vsyncadd [#allocation4], 4294967040 }
 0x68c   :  { %2756 = vsyncpa [#allocation3], 1 }
 0x68d   :  { %2757 = vsyncpa [#allocation6], 1 }
 0x68e   :  { %2758 = vsyncpa [#allocation9], 1 }
 0x68f   :  { %2759 = vsyncpa [#allocation4], 1 }

// kernel: tpu_custom_call.1
= control target key start
LH: loop header
LB: loop body
LE: loop exit
PB: predicated region body
PF: predicated region fallthrough
CT: control target
= control target key end

     0   :  { %10 = vsyncpa [#allocation3], 0  ;;  %s4749_s0 = inlined_call_operand.hbm [shape: f32[8,8,256], index: 0, kind: input, shape index: {}]   ;;  %s4750_s1 = inlined_call_operand.hbm [shape: bf16[2,256,512], index: 1, kind: input, shape index: {}]   ;;  %s4751_s2 = inlined_call_operand.hbm [shape: bf16[2,512,256], index: 2, kind: input, shape index: {}]   ;;  %s4752_s3 = inlined_call_operand.hbm [shape: bf16[256,256], index: 3, kind: input, shape index: {}]   ;;  %s4753_s4 = inlined_call_operand.hbm [shape: f32[11,512], index: 4, kind: input, shape index: {}]   ;;  %s4754_s5 = inlined_call_operand.hbm [shape: f32[8,256], index: 5, kind: output, shape index: {}]  }
   0x1   :  { %11 = vsyncpa [#allocation6], 0 }
   0x2   :  { %12 = vsyncpa [#allocation9], 0 }
   0x3   :  { %13 = vsyncpa [#allocation4], 0  ;;  %s31_s20 = sshll.u32 %s4750_s1, 4  ;;  %s4376_s21 = smov [#allocation5]   ;;  %s32_s20 = int_to_ptr.hbm [resolvable:$true] %s31_s20 }
   0x4   :  { %s33_s22 = sshll.u32 %s4376_s21, 4  ;;  %s4377_s23 = smov 256   ;;  %s34_s22 = int_to_ptr.vmem [resolvable:$true] %s33_s22 }
   0x5   :  { %s4378_s24 = smov 16   ;;  %s57_s27 = sshll.u32 %s4752_s3, 4  ;;  %s58_s27 = int_to_ptr.hbm [resolvable:$true] %s57_s27 }
   0x6   :  { %39 = dma.hbm_to_vmem [thread:$0]  %s32_s20, 16384, %s34_s22, [#allocation6], %s4377_s23, %s4377_s23, %s4378_s24  }
   0x7   :  { %s4379_s28 = smov [#allocation8]   ;;  %s18_s7 = sshll.u32 %s4749_s0, 4  ;;  %s19_s7 = int_to_ptr.hbm [resolvable:$true] %s18_s7 }
   0x8   :  { %s59_s29 = sshll.u32 %s4379_s28, 4  ;;  %s4380_s1 = smov 128   ;;  %s60_s29 = int_to_ptr.vmem [resolvable:$true] %s59_s29 }
   0x9   :  { %s4381_s8 = smov 8   ;;  %s44_s11 = sshll.u32 %s4751_s2, 4  ;;  %s45_s11 = int_to_ptr.hbm [resolvable:$true] %s44_s11 }
   0xa   :  { %65 = dma.hbm_to_vmem [thread:$0]  %s58_s27, 4096, %s60_s29, [#allocation9], %s4380_s1, %s4380_s1, %s4381_s8  }
   0xb   :  { %s4382_s12 = smov [#allocation2]   ;;  %s4383_s3 = smov [#allocation7]  }
   0xc   :  { %s20_s13 = sshll.u32 %s4382_s12, 4  ;;  %s46_s14 = sshll.u32 %s4383_s3, 4  ;;  %s21_s13 = int_to_ptr.vmem [resolvable:$true] %s20_s13  ;;  %s47_s14 = int_to_ptr.vmem [resolvable:$true] %s46_s14 }
   0xd   :  { %26 = dma.hbm_to_vmem [thread:$0]  %s19_s7, 2048, %s21_s13, [#allocation3], %s4377_s23, %s4377_s23, %s4378_s24  }
   0xe   :  { %s70_s0 = sshll.u32 %s4753_s4, 4  ;;  %s4384_s17 = smov [#allocation10]   ;;  %s71_s0 = int_to_ptr.hbm [resolvable:$true] %s70_s0 }
   0xf   :  { %52 = dma.hbm_to_vmem [thread:$0]  %s45_s11, 16384, %s47_s14, [#allocation6], %s4380_s1, %s4380_s1, %s4381_s8  }
  0x10   :  { %s72_s18 = sshll.u32 %s4384_s17, 4  ;;  %s4385_s19 = smov 512   ;;  %s73_s18 = int_to_ptr.vmem [resolvable:$true] %s72_s18 }
  0x11   :  { %s4386_s20 = smov 32  }
  0x12   :  { %78 = dma.hbm_to_vmem [thread:$0]  %s71_s0, 1024, %s73_s18, [#allocation9], %s4385_s19, %s4385_s19, %s4386_s20  }
  0x13   :  { %4368 = dma.done.wait [#allocation3], 2048  }
  0x14   :  { %4369 = vsyncadd [#allocation3], 4294965248 }
  0x15   :  { %4370 = dma.done.wait [#allocation6], 32768  }
  0x16   :  { %4371 = vsyncadd [#allocation6], 4294934528 }
  0x17   :  { %4372 = dma.done.wait [#allocation9], 5120  }
  0x18   :  { %4373 = vsyncadd [#allocation9], 4294962176  ;;  %v2874_v0 = vld [vmem:[#allocation5 + $0xe0] sm:$0xf]  ;;  %v3942_v1 = vld [vmem:[#allocation5 + $0xec] sm:$0xf0] }
  0x19   :  { %v3002_v2 = vld [vmem:[#allocation5 + $0x1e0] sm:$0xf]  ;;  %v2875_v3 = vor.u32 %v3942_v1, %v2874_v0  ;;  %v3974_v4 = vld [vmem:[#allocation5 + $0x1ec] sm:$0xf0]  ;;  %v3940_v5 = vld [vmem:[#allocation5 + $0xe4] sm:$0xf] }
  0x1a   :  { %v2876_v6 = vld [vmem:[#allocation5 + $0xf0] sm:$0xf0]  ;;  %v3003_v7 = vor.u32 %v3974_v4, %v3002_v2  ;;  %v3972_v9 = vld [vmem:[#allocation5 + $0x1e4] sm:$0xf]  ;;  %v2858_v11 = vld [vmem:[#allocation5 + $0xc0] sm:$0xf] }
  0x1b   :  { %v2879_v8 = vor.u32 %v3940_v5, %v2876_v6  ;;  %v3004_v10 = vld [vmem:[#allocation5 + $0x1f0] sm:$0xf0]  ;;  %707 = vmatpush.bf16.msra.mxu0 %v2875_v3  ;;  %v3938_v13 = vld [vmem:[#allocation5 + $0xcc] sm:$0xf0]  ;;  %v2986_v14 = vld [vmem:[#allocation5 + $0x1c0] sm:$0xf] }
  0x1c   :  { %v3007_v12 = vor.u32 %v3972_v9, %v3004_v10  ;;  %v3970_v15 = vld [vmem:[#allocation5 + $0x1cc] sm:$0xf0]  ;;  %720 = vmatpush.bf16.msra.mxu1 %v3003_v7  ;;  %v2859_v16 = vor.u32 %v3938_v13, %v2858_v11  ;;  %v3936_v18 = vld [vmem:[#allocation5 + $0xc4] sm:$0xf]  ;;  %v2860_v19 = vld [vmem:[#allocation5 + $0xd0] sm:$0xf0] }
  0x1d   :  { %733 = vmatpush.bf16.msra.mxu2 %v2879_v8  ;;  %v2987_v17 = vor.u32 %v3970_v15, %v2986_v14  ;;  %v3968_v20 = vld [vmem:[#allocation5 + $0x1c4] sm:$0xf]  ;;  %v2863_v21 = vor.u32 %v3936_v18, %v2860_v19  ;;  %v2988_v22 = vld [vmem:[#allocation5 + $0x1d0] sm:$0xf0]  ;;  %v2842_v23 = vld [vmem:[#allocation5 + $0xa0] sm:$0xf] }
  0x1e   :  { %746 = vmatpush.bf16.msra.mxu3 %v3007_v12  ;;  %v3934_v24 = vld [vmem:[#allocation5 + $0xac] sm:$0xf0]  ;;  %v2991_v25 = vor.u32 %v3968_v20, %v2988_v22  ;;  %v2970_v26 = vld [vmem:[#allocation5 + $0x1a0] sm:$0xf]  ;;  %v3932_v28 = vld [vmem:[#allocation5 + $0xa4] sm:$0xf] }
  0x1f   :  { %v3966_v27 = vld [vmem:[#allocation5 + $0x1ac] sm:$0xf0]  ;;  %708 = vmatpush.bf16.msra.mxu0 %v2859_v16  ;;  %v2843_v29 = vor.u32 %v3934_v24, %v2842_v23  ;;  %v2844_v30 = vld [vmem:[#allocation5 + $0xb0] sm:$0xf0]  ;;  %v3964_v31 = vld [vmem:[#allocation5 + $0x1a4] sm:$0xf] }
  0x20   :  { %v2972_v32 = vld [vmem:[#allocation5 + $0x1b0] sm:$0xf0]  ;;  %721 = vmatpush.bf16.msra.mxu1 %v2987_v17  ;;  %v2971_v33 = vor.u32 %v3966_v27, %v2970_v26  ;;  %v2847_v34 = vor.u32 %v3932_v28, %v2844_v30  ;;  %v2826_v35 = vld [vmem:[#allocation5 + $0x80] sm:$0xf]  ;;  %v3930_v36 = vld [vmem:[#allocation5 + $0x8c] sm:$0xf0] }
  0x21   :  { %734 = vmatpush.bf16.msra.mxu2 %v2863_v21  ;;  %v2954_v37 = vld [vmem:[#allocation5 + $0x180] sm:$0xf]  ;;  %v2975_v38 = vor.u32 %v3964_v31, %v2972_v32  ;;  %v3962_v39 = vld [vmem:[#allocation5 + $0x18c] sm:$0xf0]  ;;  %v3928_v40 = vld [vmem:[#allocation5 + $0x84] sm:$0xf]  ;;  %v2827_v44 = vor.u32 %v3930_v36, %v2826_v35 }
  0x22   :  { %747 = vmatpush.bf16.msra.mxu3 %v2991_v25  ;;  %v2828_v41 = vld [vmem:[#allocation5 + $0x90] sm:$0xf0]  ;;  %v3960_v42 = vld [vmem:[#allocation5 + $0x184] sm:$0xf]  ;;  %v2810_v45 = vld [vmem:[#allocation5 + $0x60] sm:$0xf]  ;;  %v2955_v46 = vor.u32 %v3962_v39, %v2954_v37 }
  0x23   :  { %v2956_v43 = vld [vmem:[#allocation5 + $0x190] sm:$0xf0]  ;;  %709 = vmatpush.bf16.msra.mxu0 %v2843_v29  ;;  %v2831_v47 = vor.u32 %v3928_v40, %v2828_v41  ;;  %v3926_v48 = vld [vmem:[#allocation5 + $0x6c] sm:$0xf0]  ;;  %v2938_v49 = vld [vmem:[#allocation5 + $0x160] sm:$0xf] }
  0x24   :  { %722 = vmatpush.bf16.msra.mxu1 %v2971_v33  ;;  %v3958_v50 = vld [vmem:[#allocation5 + $0x16c] sm:$0xf0]  ;;  %v2959_v51 = vor.u32 %v3960_v42, %v2956_v43  ;;  %v3924_v52 = vld [vmem:[#allocation5 + $0x64] sm:$0xf]  ;;  %v2812_v53 = vld [vmem:[#allocation5 + $0x70] sm:$0xf0]  ;;  %v2811_v58 = vor.u32 %v3926_v48, %v2810_v45 }
  0x25   :  { %735 = vmatpush.bf16.msra.mxu2 %v2847_v34  ;;  %v3956_v54 = vld [vmem:[#allocation5 + $0x164] sm:$0xf]  ;;  %v2940_v55 = vld [vmem:[#allocation5 + $0x170] sm:$0xf0]  ;;  %v2794_v56 = vld [vmem:[#allocation5 + $0x40] sm:$0xf]  ;;  %v2939_v63 = vor.u32 %v3958_v50, %v2938_v49  ;;  %v2815_v0 = vor.u32 %v3924_v52, %v2812_v53 }
  0x26   :  { %748 = vmatpush.bf16.msra.mxu3 %v2975_v38  ;;  %v3922_v57 = vld [vmem:[#allocation5 + $0x4c] sm:$0xf0]  ;;  %v2922_v59 = vld [vmem:[#allocation5 + $0x140] sm:$0xf]  ;;  %v3920_v61 = vld [vmem:[#allocation5 + $0x44] sm:$0xf]  ;;  %v2943_v4 = vor.u32 %v3956_v54, %v2940_v55 }
  0x27   :  { %710 = vmatpush.bf16.msra.mxu0 %v2827_v44  ;;  %v3954_v60 = vld [vmem:[#allocation5 + $0x14c] sm:$0xf0]  ;;  %v4387_v62 = vmov 8.0   ;;  %v2796_v1 = vld [vmem:[#allocation5 + $0x50] sm:$0xf0]  ;;  %v2795_v14 = vor.u32 %v3922_v57, %v2794_v56  ;;  %v99_v45 = vld [vmem:[#allocation2] sm:$0xff] }
  0x28   :  { %4214 = vrcp.f32 %v4387_v62  ;;  %723 = vmatpush.bf16.msra.mxu1 %v2955_v46  ;;  %v3952_v2 = vld [vmem:[#allocation5 + $0x144] sm:$0xf]  ;;  %v2924_v3 = vld [vmem:[#allocation5 + $0x150] sm:$0xf0]  ;;  %v4435_v5 = vld [vmem:[#allocation5 + $0x20] sm:$0xf]  ;;  %v2923_v18 = vor.u32 %v3954_v60, %v2922_v59  ;;  %v2799_v19 = vor.u32 %v3920_v61, %v2796_v1 }
  0x29   :  { %736 = vmatpush.bf16.msra.mxu2 %v2831_v47  ;;  %v4437_v6 = vld [vmem:[#allocation5 + $0x2c] sm:$0xf0]  ;;  %v4439_v7 = vld [vmem:[#allocation5 + $0x120] sm:$0xf]  ;;  %v4443_v9 = vld [vmem:[#allocation5 + $0x24] sm:$0xf]  ;;  %v2927_v24 = vor.u32 %v3952_v2, %v2924_v3 }
  0x2a   :  { %749 = vmatpush.bf16.msra.mxu3 %v2959_v51  ;;  %v4441_v8 = vld [vmem:[#allocation5 + $0x12c] sm:$0xf0]  ;;  %v4445_v10 = vld [vmem:[#allocation5 + $0x30] sm:$0xf0]  ;;  %v4447_v11 = vld [vmem:[#allocation5 + $0x124] sm:$0xf]  ;;  %v2779_v28 = vor.u32 %v4437_v6, %v4435_v5 }
  0x2b   :  { %v4449_v12 = vld [vmem:[#allocation5 + $0x130] sm:$0xf0]  ;;  %v4451_v13 = vld [vmem:[#allocation5] sm:$0xf]  ;;  %711 = vmatpush.bf16.msra.mxu0 %v2811_v58  ;;  %v4453_v15 = vld [vmem:[#allocation5 + $0xc] sm:$0xf0]  ;;  %v2907_v29 = vor.u32 %v4441_v8, %v4439_v7  ;;  %v2783_v30 = vor.u32 %v4443_v9, %v4445_v10 }
  0x2c   :  { %v4455_v16 = vld [vmem:[#allocation5 + $0x100] sm:$0xf]  ;;  %v4457_v17 = vld [vmem:[#allocation5 + $0x10c] sm:$0xf0]  ;;  %724 = vmatpush.bf16.msra.mxu1 %v2939_v63  ;;  %v4459_v20 = vld [vmem:[#allocation5 + $0x4] sm:$0xf]  ;;  %v2911_v31 = vor.u32 %v4447_v11, %v4449_v12  ;;  %v2763_v35 = vor.u32 %v4453_v15, %v4451_v13 }
  0x2d   :  { %737 = vmatpush.bf16.msra.mxu2 %v2815_v0  ;;  %v4461_v21 = vld [vmem:[#allocation5 + $0x10] sm:$0xf0]  ;;  %v4463_v22 = vld [vmem:[#allocation5 + $0x104] sm:$0xf]  ;;  %v4469_v26 = vld [vmem:[#allocation5 + $0xe8] sm:$0xf]  ;;  %v2891_v36 = vor.u32 %v4457_v17, %v4455_v16 }
  0x2e   :  { %v4465_v23 = vpop.eup %4214  ;;  %750 = vmatpush.bf16.msra.mxu3 %v2943_v4  ;;  %v4467_v25 = vld [vmem:[#allocation5 + $0x110] sm:$0xf0]  ;;  %v4471_v27 = vld [vmem:[#allocation5 + $0xf4] sm:$0xf0]  ;;  %v4481_v32 = vld [vmem:[#allocation5 + $0x1e8] sm:$0xf]  ;;  %v2767_v37 = vor.u32 %v4459_v20, %v4461_v21 }
  0x2f   :  { %v4483_v33 = vld [vmem:[#allocation5 + $0x1f4] sm:$0xf0]  ;;  %v4485_v34 = vld [vmem:[#allocation5 + $0xec] sm:$0xf]  ;;  %712 = vmatpush.bf16.msra.mxu0 %v2795_v14  ;;  %v2895_v38 = vor.u32 %v4463_v22, %v4467_v25  ;;  %v4495_v39 = vld [vmem:[#allocation5 + $0xf8] sm:$0xf0]  ;;  %v2883_v42 = vor.u32 %v4471_v27, %v4469_v26  ;;  %vm216_vm0 = vweird.f32 %v4465_v23 }
  0x30   :  { %v4497_v40 = vld [vmem:[#allocation5 + $0x1ec] sm:$0xf]  ;;  %v4499_v41 = vld [vmem:[#allocation5 + $0x1f8] sm:$0xf0]  ;;  %725 = vmatpush.bf16.msra.mxu1 %v2923_v18  ;;  %v3011_v43 = vor.u32 %v4483_v33, %v4481_v32  ;;  %v2887_v44 = vor.u32 %v4485_v34, %v4495_v39  ;;  %v101_v46 = vld [vmem:[#allocation2 + $0x10] sm:$0xff]  ;;  %v4508_v48 = vmul.f32 8.0, %v4465_v23 }
  0x31   :  { %738 = vmatpush.bf16.msra.mxu2 %v2799_v19  ;;  %v103_v47 = vld [vmem:[#allocation2 + $0x20] sm:$0xff]  ;;  %v3015_v49 = vor.u32 %v4497_v40, %v4499_v41  ;;  %v105_v50 = vld [vmem:[#allocation2 + $0x30] sm:$0xff]  ;;  %v115_v53 = vrot.slane %v99_v45, 4  ;;  %v127_v54 = vrot.slane %v101_v46, 4  ;;  %v100_v34 = vld [vmem:[#allocation2 + $0x8] sm:$0xff]  ;;  %vm362_vm1 = vcmask 1041409  }
  0x32   :  { %751 = vmatpush.bf16.msra.mxu3 %v2927_v24  ;;  %v107_v51 = vld [vmem:[#allocation2 + $0x40] sm:$0xff]  ;;  %v109_v52 = vld [vmem:[#allocation2 + $0x50] sm:$0xff]  ;;  %v139_v55 = vrot.slane %v103_v47, 4  ;;  %v151_v58 = vrot.slane %v105_v50, 4  ;;  %v213_v61 = vsub.f32 1.0, %v4508_v48  ;;  %v106_v41 = vld [vmem:[#allocation2 + $0x38] sm:$0xff] }
  0x33   :  { %v111_v56 = vld [vmem:[#allocation2 + $0x60] sm:$0xff]  ;;  %v113_v57 = vld [vmem:[#allocation2 + $0x70] sm:$0xff]  ;;  %v163_v59 = vrot.slane %v107_v51, 4  ;;  %v175_v60 = vrot.slane %v109_v52, 4  ;;  %713 = vmatpush.bf16.msra.mxu0 %v2779_v28  ;;  %v116_v62 = vadd.f32 %v115_v53, %v99_v45  ;;  %v128_v63 = vadd.f32 %v127_v54, %v101_v46  ;;  %s4389_s2 = smov [#allocation11]   ;;  %s2748_s23 = sshll.u32 %s4754_s5, 4  ;;  %s2749_s23 = int_to_ptr.hbm [resolvable:$true] %s2748_s23 }
  0x34   :  { %v140_v0 = vadd.f32 %v139_v55, %v103_v47  ;;  %v187_v1 = vrot.slane %v111_v56, 4  ;;  %726 = vmatpush.bf16.msra.mxu1 %v2907_v29  ;;  %v152_v2 = vadd.f32 %v151_v58, %v105_v50  ;;  %v199_v5 = vrot.slane %v113_v57, 4  ;;  %v4515_v47 = vld [vmem:[#allocation2 + $0x68] sm:$0xff]  ;;  %s2746_s4 = sshll.u32 %s4389_s2, 4  ;;  %s2747_s4 = int_to_ptr.vmem [resolvable:$true] %s2746_s4 }
  0x35   :  { %739 = vmatpush.bf16.msra.mxu2 %v2783_v30  ;;  %v164_v3 = vadd.f32 %v163_v59, %v107_v51  ;;  %v176_v4 = vadd.f32 %v175_v60, %v109_v52  ;;  %v117_v6 = vrot.slane %v116_v62, 2  ;;  %v129_v7 = vrot.slane %v128_v63, 2 }
  0x36   :  { %752 = vmatpush.bf16.msra.mxu3 %v2911_v31  ;;  %v141_v8 = vrot.slane %v140_v0, 2  ;;  %v188_v9 = vadd.f32 %v187_v1, %v111_v56  ;;  %v153_v10 = vrot.slane %v152_v2, 2  ;;  %v200_v13 = vadd.f32 %v199_v5, %v113_v57 }
  0x37   :  { %v165_v11 = vrot.slane %v164_v3, 2  ;;  %v177_v12 = vrot.slane %v176_v4, 2  ;;  %714 = vmatpush.bf16.msra.mxu0 %v2763_v35  ;;  %v118_v14 = vadd.f32 %v117_v6, %v116_v62  ;;  %v130_v15 = vadd.f32 %v129_v7, %v128_v63  ;;  %v102_v35 = vld [vmem:[#allocation2 + $0x18] sm:$0xff] }
  0x38   :  { %v142_v16 = vadd.f32 %v141_v8, %v140_v0  ;;  %v189_v17 = vrot.slane %v188_v9, 2  ;;  %727 = vmatpush.bf16.msra.mxu1 %v2891_v36  ;;  %v154_v18 = vadd.f32 %v153_v10, %v152_v2  ;;  %v201_v21 = vrot.slane %v200_v13, 2  ;;  %v104_v36 = vld [vmem:[#allocation2 + $0x28] sm:$0xff] }
  0x39   :  { %740 = vmatpush.bf16.msra.mxu2 %v2767_v37  ;;  %v166_v19 = vadd.f32 %v165_v11, %v164_v3  ;;  %v178_v20 = vadd.f32 %v177_v12, %v176_v4  ;;  %v119_v22 = vrot.slane %v118_v14, 1  ;;  %v131_v24 = vrot.slane %v130_v15, 1 }
  0x3a   :  { %753 = vmatpush.bf16.msra.mxu3 %v2895_v38  ;;  %v143_v25 = vrot.slane %v142_v16, 1  ;;  %v190_v26 = vadd.f32 %v189_v17, %v188_v9  ;;  %v155_v27 = vrot.slane %v154_v18, 1  ;;  %v202_v30 = vadd.f32 %v201_v21, %v200_v13 }
  0x3b   :  { %759 = vmatpush.bf16.msrb.mxu0 %v2883_v42  ;;  %v167_v28 = vrot.slane %v166_v19, 1  ;;  %v179_v29 = vrot.slane %v178_v20, 1  ;;  %v120_v32 = vadd.f32 %v119_v22, %v118_v14  ;;  %v132_v37 = vadd.f32 %v131_v24, %v130_v15  ;;  %v108_v42 = vld [vmem:[#allocation2 + $0x48] sm:$0xff] }
  0x3c   :  { %772 = vmatpush.bf16.msrb.mxu1 %v3011_v43  ;;  %v191_v31 = vrot.slane %v190_v26, 1  ;;  %v203_v33 = vrot.slane %v202_v30, 1  ;;  %v144_v38 = vadd.f32 %v143_v25, %v142_v16  ;;  %v156_v39 = vadd.f32 %v155_v27, %v154_v18  ;;  %v110_v43 = vld [vmem:[#allocation2 + $0x58] sm:$0xff] }
  0x3d   :  { %785 = vmatpush.bf16.msrb.mxu2 %v2887_v44  ;;  %v214_v40 = vmul.f32 %v4465_v23, %v213_v61  ;;  %v168_v44 = vadd.f32 %v167_v28, %v166_v19  ;;  %v180_v45 = vadd.f32 %v179_v29, %v178_v20  ;;  %vm364_vm2 = vcmask 1042434  }
  0x3e   :  { %798 = vmatpush.bf16.msrb.mxu3 %v3015_v49  ;;  %v192_v46 = vadd.f32 %v191_v31, %v190_v26  ;;  %v204_v48 = vadd.f32 %v203_v33, %v202_v30  ;;  %vm366_vm3 = vcmask 1043459   ;;  %v121_v50 = vrot.slane %v100_v34, 4 }
  0x3f   :  { %v215_v49 = vadd.f32 %v4465_v23, %v214_v40  ;;  %v133_v51 = vrot.slane %v102_v35, 4  ;;  %vm368_vm4 = vcmask 1044484   ;;  %v145_v52 = vrot.slane %v104_v36, 4 }
  0x40   :  { %v157_v53 = vrot.slane %v106_v41, 4  ;;  %v169_v54 = vrot.slane %v108_v42, 4  ;;  %v181_v55 = vrot.slane %v110_v43, 4  ;;  %vm370_vm5 = vcmask 1045509  }
  0x41   :  { %v4521_v56 = vsel %vm216_vm0, %v4465_v23, %v215_v49  ;;  %v122_v57 = vadd.f32 %v121_v50, %v100_v34  ;;  %v134_v58 = vadd.f32 %v133_v51, %v102_v35  ;;  %v193_v59 = vrot.slane %v4515_v47, 4 }
  0x42   :  { %v4525_v60 = vmul.f32 %v4521_v56, %v120_v32  ;;  %v4528_v61 = vmul.f32 %v4521_v56, %v132_v37  ;;  %v4531_v62 = vmul.f32 %v4521_v56, %v144_v38  ;;  %v4534_v63 = vmul.f32 %v4521_v56, %v156_v39 }
  0x43   :  { %vm372_vm6 = vcmask 1046534   ;;  %v4537_v23 = vmul.f32 %v4521_v56, %v168_v44  ;;  %v4540_v0 = vmul.f32 %v4521_v56, %v180_v45  ;;  %v4543_v1 = vmul.f32 %v4521_v56, %v192_v46 }
  0x44   :  { %v4546_v2 = vmul.f32 %v4521_v56, %v204_v48  ;;  %vm374_vm7 = vcmask 1047559   ;;  %v241_v3 = vpack.c.bf16 %v4525_v60, %v4525_v60  ;;  %v243_v4 = vpack.c.bf16 %v4528_v61, %v4528_v61 }
  0x45   :  { %v245_v5 = vpack.c.bf16 %v4531_v62, %v4531_v62  ;;  %v247_v6 = vpack.c.bf16 %v4534_v63, %v4534_v63  ;;  %v249_v7 = vpack.c.bf16 %v4537_v23, %v4537_v23  ;;  %v251_v8 = vpack.c.bf16 %v4540_v0, %v4540_v0 }
  0x46   :  { %v253_v9 = vpack.c.bf16 %v4543_v1, %v4543_v1  ;;  %v255_v10 = vpack.c.bf16 %v4546_v2, %v4546_v2  ;;  %v346_v11 = vunpack.c.l.b16 %v241_v3  ;;  %v348_v12 = vunpack.c.l.b16 %v243_v4 }
  0x47   :  { %v350_v13 = vunpack.c.l.b16 %v245_v5  ;;  %v352_v14 = vunpack.c.l.b16 %v247_v6  ;;  %v354_v15 = vunpack.c.l.b16 %v249_v7  ;;  %v356_v16 = vunpack.c.l.b16 %v251_v8 }
  0x48   :  { %v358_v17 = vunpack.c.l.b16 %v253_v9  ;;  %v360_v18 = vunpack.c.l.b16 %v255_v10  ;;  %v363_v19 = vsel %vm362_vm1, %v348_v12, %v346_v11  ;;  %v123_v20 = vrot.slane %v122_v57, 2 }
  0x49   :  { %v135_v21 = vrot.slane %v134_v58, 2  ;;  %v146_v22 = vadd.f32 %v145_v52, %v104_v36  ;;  %v365_v24 = vsel %vm364_vm2, %v350_v13, %v363_v19  ;;  %v158_v25 = vadd.f32 %v157_v53, %v106_v41  ;;  %v114_v41 = vld [vmem:[#allocation2 + $0x78] sm:$0xff] }
  0x4a   :  { %v170_v26 = vadd.f32 %v169_v54, %v108_v42  ;;  %v182_v27 = vadd.f32 %v181_v55, %v110_v43  ;;  %v367_v28 = vsel %vm366_vm3, %v352_v14, %v365_v24  ;;  %v124_v29 = vadd.f32 %v123_v20, %v122_v57  ;;  %v3939_v13 = vld [vmem:[#allocation5 + $0xd4] sm:$0xf0]  ;;  %v2994_v14 = vld [vmem:[#allocation5 + $0x1c8] sm:$0xf]  ;;  %v3937_v20 = vld [vmem:[#allocation5 + $0xcc] sm:$0xf] }
  0x4b   :  { %v136_v30 = vadd.f32 %v135_v21, %v134_v58  ;;  %v147_v31 = vrot.slane %v146_v22, 2  ;;  %v369_v32 = vsel %vm368_vm4, %v354_v15, %v367_v28  ;;  %v159_v33 = vrot.slane %v158_v25, 2  ;;  %v3971_v15 = vld [vmem:[#allocation5 + $0x1d4] sm:$0xf0]  ;;  %v2868_v21 = vld [vmem:[#allocation5 + $0xd8] sm:$0xf0] }
  0x4c   :  { %v171_v34 = vrot.slane %v170_v26, 2  ;;  %v183_v35 = vrot.slane %v182_v27, 2  ;;  %v371_v37 = vsel %vm370_vm5, %v356_v16, %v369_v32  ;;  %v125_v38 = vrot.slane %v124_v29, 1  ;;  %v2996_v28 = vld [vmem:[#allocation5 + $0x1d8] sm:$0xf0] }
  0x4d   :  { %v137_v39 = vrot.slane %v136_v30, 1  ;;  %v148_v36 = vadd.f32 %v147_v31, %v146_v22  ;;  %v373_v40 = vsel %vm372_vm6, %v358_v17, %v371_v37  ;;  %v160_v42 = vadd.f32 %v159_v33, %v158_v25 }
  0x4e   :  { %v172_v43 = vadd.f32 %v171_v34, %v170_v26  ;;  %v184_v44 = vadd.f32 %v183_v35, %v182_v27  ;;  %v375_v45 = vsel %vm374_vm7, %v360_v18, %v373_v40  ;;  %v126_v46 = vadd.f32 %v125_v38, %v124_v29  ;;  %v3969_v27 = vld [vmem:[#allocation5 + $0x1cc] sm:$0xf]  ;;  %v2850_v29 = vld [vmem:[#allocation5 + $0xa8] sm:$0xf]  ;;  %v3935_v34 = vld [vmem:[#allocation5 + $0xb4] sm:$0xf0] }
  0x4f   :  { %v138_v48 = vadd.f32 %v137_v39, %v136_v30  ;;  %v149_v49 = vrot.slane %v148_v36, 1  ;;  %v4571_v50 = vpack.c.b16 %v375_v45, %v375_v45  ;;  %v161_v51 = vrot.slane %v160_v42, 1  ;;  %v2978_v35 = vld [vmem:[#allocation5 + $0x1a8] sm:$0xf]  ;;  %v3967_v40 = vld [vmem:[#allocation5 + $0x1b4] sm:$0xf0] }
  0x50   :  { %v173_v52 = vrot.slane %v172_v43, 1  ;;  %v185_v53 = vrot.slane %v184_v44, 1  ;;  %v194_v55 = vadd.f32 %v193_v59, %v4515_v47  ;;  %v205_v57 = vrot.slane %v114_v41, 4  ;;  %v2866_v47 = vld [vmem:[#allocation5 + $0xc8] sm:$0xf] }
  0x51   :  { %v150_v54 = vadd.f32 %v149_v49, %v148_v36  ;;  %v4575_v58 = vmul.f32 %v4521_v56, %v126_v46  ;;  %715 = vmatmul.bf16.vlgmr.msra.gmra.mxu0 %v4571_v50  ;;  %741 = vmatmul.bf16.vlgmr.msra.gmra.mxu2 %v4571_v50  ;;  %v162_v3 = vadd.f32 %v161_v51, %v160_v42  ;;  %v2852_v42 = vld [vmem:[#allocation5 + $0xb8] sm:$0xf0] }
  0x52   :  { %v174_v4 = vadd.f32 %v173_v52, %v172_v43  ;;  %v186_v5 = vadd.f32 %v185_v53, %v184_v44  ;;  %v195_v6 = vrot.slane %v194_v55, 2  ;;  %v206_v7 = vadd.f32 %v205_v57, %v114_v41  ;;  %v3933_v41 = vld [vmem:[#allocation5 + $0xac] sm:$0xf]  ;;  %v2980_v49 = vld [vmem:[#allocation5 + $0x1b8] sm:$0xf0] }
  0x53   :  { %v4580_v8 = vmul.f32 %v4521_v56, %v138_v48  ;;  %v4583_v9 = vmul.f32 %v4521_v56, %v150_v54  ;;  %v4586_v59 = vmul.f32 %v4521_v56, %v162_v3  ;;  %v242_v12 = vpack.c.bf16 %v4575_v58, %v4575_v58  ;;  %v3965_v48 = vld [vmem:[#allocation5 + $0x1ac] sm:$0xf] }
  0x54   :  { %v4589_v10 = vmul.f32 %v4521_v56, %v174_v4  ;;  %v4592_v11 = vmul.f32 %v4521_v56, %v186_v5  ;;  %v196_v16 = vadd.f32 %v195_v6, %v194_v55  ;;  %v207_v17 = vrot.slane %v206_v7, 2  ;;  %v2834_v5 = vld [vmem:[#allocation5 + $0x88] sm:$0xf]  ;;  %v3931_v6 = vld [vmem:[#allocation5 + $0x94] sm:$0xf0] }
  0x55   :  { %v244_v18 = vpack.c.bf16 %v4580_v8, %v4580_v8  ;;  %v246_v19 = vpack.c.bf16 %v4583_v9, %v4583_v9  ;;  %v248_v22 = vpack.c.bf16 %v4586_v59, %v4586_v59  ;;  %v347_v26 = vunpack.c.l.b16 %v242_v12 }
  0x56   :  { %v250_v24 = vpack.c.bf16 %v4589_v10, %v4589_v10  ;;  %v252_v25 = vpack.c.bf16 %v4592_v11, %v4592_v11  ;;  %v197_v30 = vrot.slane %v196_v16, 1  ;;  %v208_v31 = vadd.f32 %v207_v17, %v206_v7 }
  0x57   :  { %v349_v32 = vunpack.c.l.b16 %v244_v18  ;;  %v351_v33 = vunpack.c.l.b16 %v246_v19  ;;  %v353_v37 = vunpack.c.l.b16 %v248_v22  ;;  %v2867_v36 = vor.u32 %v3939_v13, %v2866_v47  ;;  %v2962_v13 = vld [vmem:[#allocation5 + $0x188] sm:$0xf]  ;;  %v2836_v18 = vld [vmem:[#allocation5 + $0x98] sm:$0xf0]  ;;  %v3961_v19 = vld [vmem:[#allocation5 + $0x18c] sm:$0xf] }
  0x58   :  { %v355_v38 = vunpack.c.l.b16 %v250_v24  ;;  %v357_v39 = vunpack.c.l.b16 %v252_v25  ;;  %v198_v43 = vadd.f32 %v197_v30, %v196_v16  ;;  %v209_v44 = vrot.slane %v208_v31, 1  ;;  %v2946_v30 = vld [vmem:[#allocation5 + $0x168] sm:$0xf] }
  0x59   :  { %v376_v45 = vsel %vm362_vm1, %v349_v32, %v347_v26  ;;  %v2995_v46 = vor.u32 %v3971_v15, %v2994_v14  ;;  %760 = vmatpush.bf16.msrb.mxu0 %v2867_v36  ;;  %v2871_v52 = vor.u32 %v3937_v20, %v2868_v21  ;;  %v2999_v53 = vor.u32 %v3969_v27, %v2996_v28  ;;  %v3963_v14 = vld [vmem:[#allocation5 + $0x194] sm:$0xf0]  ;;  %v3929_v15 = vld [vmem:[#allocation5 + $0x8c] sm:$0xf]  ;;  %v2964_v20 = vld [vmem:[#allocation5 + $0x198] sm:$0xf0] }
  0x5a   :  { %v377_v51 = vsel %vm364_vm2, %v351_v33, %v376_v45  ;;  %v2851_v54 = vor.u32 %v3935_v34, %v2850_v29  ;;  %v210_v55 = vadd.f32 %v209_v44, %v208_v31  ;;  %v4609_v57 = vmul.f32 %v4521_v56, %v198_v43  ;;  %v2818_v27 = vld [vmem:[#allocation5 + $0x68] sm:$0xf]  ;;  %v3927_v28 = vld [vmem:[#allocation5 + $0x74] sm:$0xf0]  ;;  %v3925_v32 = vld [vmem:[#allocation5 + $0x6c] sm:$0xf] }
  0x5b   :  { %v378_v3 = vsel %vm366_vm3, %v353_v37, %v377_v51  ;;  %773 = vmatpush.bf16.msrb.mxu1 %v2995_v46  ;;  %v2979_v4 = vor.u32 %v3967_v40, %v2978_v35  ;;  %786 = vmatpush.bf16.msrb.mxu2 %v2871_v52  ;;  %v2855_v47 = vor.u32 %v3933_v41, %v2852_v42  ;;  %v3959_v31 = vld [vmem:[#allocation5 + $0x174] sm:$0xf0]  ;;  %v2820_v35 = vld [vmem:[#allocation5 + $0x78] sm:$0xf0]  ;;  %v3957_v37 = vld [vmem:[#allocation5 + $0x16c] sm:$0xf] }
  0x5c   :  { %v379_v7 = vsel %vm368_vm4, %v355_v38, %v378_v3  ;;  %799 = vmatpush.bf16.msrb.mxu3 %v2999_v53  ;;  %v2983_v12 = vor.u32 %v3965_v48, %v2980_v49  ;;  %v4614_v16 = vmul.f32 %v4521_v56, %v210_v55  ;;  %v254_v17 = vpack.c.bf16 %v4609_v57, %v4609_v57  ;;  %v2948_v38 = vld [vmem:[#allocation5 + $0x178] sm:$0xf0]  ;;  %v2802_v41 = vld [vmem:[#allocation5 + $0x48] sm:$0xf]  ;;  %v3923_v42 = vld [vmem:[#allocation5 + $0x54] sm:$0xf0] }
  0x5d   :  { %v380_v21 = vsel %vm370_vm5, %v357_v39, %v379_v7  ;;  %761 = vmatpush.bf16.msrb.mxu0 %v2851_v54  ;;  %v2835_v22 = vor.u32 %v3931_v6, %v2834_v5  ;;  %v2963_v26 = vor.u32 %v3963_v14, %v2962_v13  ;;  %v2839_v56 = vor.u32 %v3929_v15, %v2836_v18  ;;  %v2930_v46 = vld [vmem:[#allocation5 + $0x148] sm:$0xf]  ;;  %v3955_v48 = vld [vmem:[#allocation5 + $0x154] sm:$0xf0]  ;;  %v3921_v49 = vld [vmem:[#allocation5 + $0x4c] sm:$0xf] }
  0x5e   :  { %v256_v24 = vpack.c.bf16 %v4614_v16, %v4614_v16  ;;  %v359_v25 = vunpack.c.l.b16 %v254_v17  ;;  %v2967_v29 = vor.u32 %v3961_v19, %v2964_v20  ;;  %v2819_v36 = vor.u32 %v3927_v28, %v2818_v27  ;;  %v2804_v51 = vld [vmem:[#allocation5 + $0x58] sm:$0xf0]  ;;  %v3953_v52 = vld [vmem:[#allocation5 + $0x14c] sm:$0xf]  ;;  %v2786_v3 = vld [vmem:[#allocation5 + $0x28] sm:$0xf] }
  0x5f   :  { %774 = vmatpush.bf16.msrb.mxu1 %v2979_v4  ;;  %787 = vmatpush.bf16.msrb.mxu2 %v2855_v47  ;;  %v2947_v40 = vor.u32 %v3959_v31, %v2946_v30  ;;  %v2823_v44 = vor.u32 %v3925_v32, %v2820_v35  ;;  %v2951_v45 = vor.u32 %v3957_v37, %v2948_v38  ;;  %v2932_v53 = vld [vmem:[#allocation5 + $0x158] sm:$0xf0]  ;;  %v3919_v4 = vld [vmem:[#allocation5 + $0x34] sm:$0xf0]  ;;  %v2914_v7 = vld [vmem:[#allocation5 + $0x128] sm:$0xf] }
  0x60   :  { %800 = vmatpush.bf16.msrb.mxu3 %v2983_v12  ;;  %v361_v33 = vunpack.c.l.b16 %v256_v24  ;;  %v381_v34 = vsel %vm372_vm6, %v359_v25, %v380_v21  ;;  %v2803_v54 = vor.u32 %v3923_v42, %v2802_v41  ;;  %v2931_v55 = vor.u32 %v3955_v48, %v2930_v46  ;;  %v3951_v47 = vld [vmem:[#allocation5 + $0x134] sm:$0xf0]  ;;  %v3917_v12 = vld [vmem:[#allocation5 + $0x2c] sm:$0xf]  ;;  %v2788_v13 = vld [vmem:[#allocation5 + $0x38] sm:$0xf0] }
  0x61   :  { %762 = vmatpush.bf16.msrb.mxu0 %v2835_v22  ;;  %v2807_v5 = vor.u32 %v3921_v49, %v2804_v51  ;;  %v2935_v6 = vor.u32 %v3953_v52, %v2932_v53  ;;  %v3949_v14 = vld [vmem:[#allocation5 + $0x12c] sm:$0xf]  ;;  %v2916_v15 = vld [vmem:[#allocation5 + $0x138] sm:$0xf0]  ;;  %v2787_v17 = vor.u32 %v3919_v4, %v2786_v3  ;;  %v2915_v18 = vor.u32 %v3951_v47, %v2914_v7  ;;  %v2770_v19 = vld [vmem:[#allocation5 + $0x8] sm:$0xf] }
  0x62   :  { %v382_v39 = vsel %vm374_vm7, %v361_v33, %v381_v34  ;;  %v3915_v20 = vld [vmem:[#allocation5 + $0x14] sm:$0xf0]  ;;  %v2898_v21 = vld [vmem:[#allocation5 + $0x108] sm:$0xf]  ;;  %v2791_v22 = vor.u32 %v3917_v12, %v2788_v13  ;;  %v2919_v24 = vor.u32 %v3949_v14, %v2916_v15  ;;  %v2772_v27 = vld [vmem:[#allocation5 + $0x18] sm:$0xf0] }
  0x63   :  { %775 = vmatpush.bf16.msrb.mxu1 %v2963_v26  ;;  %v4623_v43 = vpack.c.b16 %v382_v39, %v382_v39  ;;  %788 = vmatpush.bf16.msrb.mxu2 %v2839_v56  ;;  %v3947_v25 = vld [vmem:[#allocation5 + $0x114] sm:$0xf0]  ;;  %v3913_v26 = vld [vmem:[#allocation5 + $0xc] sm:$0xf]  ;;  %v2900_v56 = vld [vmem:[#allocation5 + $0x118] sm:$0xf0]  ;;  %v2771_v33 = vor.u32 %v3915_v20, %v2770_v19 }
  0x64   :  { %801 = vmatpush.bf16.msrb.mxu3 %v2967_v29  ;;  %v3945_v28 = vld [vmem:[#allocation5 + $0x10c] sm:$0xf]  ;;  %v3074_v29 = vld [vmem:[#allocation7 + $0x70] sm:$0xf]  ;;  %v3991_v30 = vld [vmem:[#allocation7 + $0x74] sm:$0xf0]  ;;  %v2899_v34 = vor.u32 %v3947_v25, %v2898_v21  ;;  %v2775_v35 = vor.u32 %v3913_v26, %v2772_v27 }
  0x65   :  { %728 = vmatmul.bf16.vlgmr.msra.gmra.mxu1 %v4623_v43  ;;  %754 = vmatmul.bf16.vlgmr.msra.gmra.mxu3 %v4623_v43  ;;  %v3138_v31 = vld [vmem:[#allocation7 + $0xf0] sm:$0xf]  ;;  %v4007_v32 = vld [vmem:[#allocation7 + $0xf4] sm:$0xf0]  ;;  %v2903_v37 = vor.u32 %v3945_v28, %v2900_v56  ;;  %v3075_v38 = vor.u32 %v3991_v30, %v3074_v29  ;;  %v3066_v39 = vld [vmem:[#allocation7 + $0x60] sm:$0xf] }
  0x66   :  { %763 = vmatpush.bf16.msrb.mxu0 %v2819_v36  ;;  %v3139_v36 = vor.u32 %v4007_v32, %v3138_v31  ;;  %v4023_v41 = vld [vmem:[#allocation7 + $0x174] sm:$0xf0]  ;;  %v3989_v42 = vld [vmem:[#allocation7 + $0x64] sm:$0xf0]  ;;  %v3058_v49 = vld [vmem:[#allocation7 + $0x50] sm:$0xf] }
  0x67   :  { %776 = vmatpush.bf16.msrb.mxu1 %v2947_v40  ;;  %789 = vmatpush.bf16.msrb.mxu2 %v2823_v44  ;;  %v3202_v40 = vld [vmem:[#allocation7 + $0x170] sm:$0xf]  ;;  %v3130_v44 = vld [vmem:[#allocation7 + $0xe0] sm:$0xf]  ;;  %v3067_v48 = vor.u32 %v3989_v42, %v3066_v39  ;;  %v4021_v53 = vld [vmem:[#allocation7 + $0x164] sm:$0xf0] }
  0x68   :  { %802 = vmatpush.bf16.msrb.mxu3 %v2951_v45  ;;  %v4005_v45 = vld [vmem:[#allocation7 + $0xe4] sm:$0xf0]  ;;  %v3203_v46 = vor.u32 %v4023_v41, %v3202_v40  ;;  %v3194_v52 = vld [vmem:[#allocation7 + $0x160] sm:$0xf]  ;;  %v4003_v3 = vld [vmem:[#allocation7 + $0xd4] sm:$0xf0] }
  0x69   :  { %v3131_v51 = vor.u32 %v4005_v45, %v3130_v44  ;;  %v3195_v4 = vor.u32 %v4021_v53, %v3194_v52  ;;  %v3985_v47 = vld [vmem:[#allocation7 + $0x44] sm:$0xf0]  ;;  %v3114_v12 = vld [vmem:[#allocation7 + $0xc0] sm:$0xf]  ;;  %v3042_v15 = vld [vmem:[#allocation7 + $0x30] sm:$0xf] }
  0x6a   :  { %764 = vmatpush.bf16.msrb.mxu0 %v2803_v54  ;;  %v3987_v54 = vld [vmem:[#allocation7 + $0x54] sm:$0xf0]  ;;  %v4001_v13 = vld [vmem:[#allocation7 + $0xc4] sm:$0xf0]  ;;  %v3034_v20 = vld [vmem:[#allocation7 + $0x20] sm:$0xf] }
  0x6b   :  { %777 = vmatpush.bf16.msrb.mxu1 %v2931_v55  ;;  %790 = vmatpush.bf16.msrb.mxu2 %v2807_v5  ;;  %v3122_v55 = vld [vmem:[#allocation7 + $0xd0] sm:$0xf]  ;;  %v3059_v5 = vor.u32 %v3987_v54, %v3058_v49  ;;  %v3999_v19 = vld [vmem:[#allocation7 + $0xb4] sm:$0xf0]  ;;  %v3997_v25 = vld [vmem:[#allocation7 + $0xa4] sm:$0xf0] }
  0x6c   :  { %803 = vmatpush.bf16.msrb.mxu3 %v2935_v6  ;;  %v3050_v6 = vld [vmem:[#allocation7 + $0x40] sm:$0xf]  ;;  %v3123_v7 = vor.u32 %v4003_v3, %v3122_v55  ;;  %v3026_v27 = vld [vmem:[#allocation7 + $0x10] sm:$0xf]  ;;  %v3979_v56 = vld [vmem:[#allocation7 + $0x14] sm:$0xf0] }
  0x6d   :  { %v3051_v14 = vor.u32 %v3985_v47, %v3050_v6  ;;  %v3090_v29 = vld [vmem:[#allocation7 + $0x90] sm:$0xf]  ;;  %v3995_v30 = vld [vmem:[#allocation7 + $0x94] sm:$0xf0]  ;;  %v3027_v31 = vor.u32 %v3979_v56, %v3026_v27  ;;  %v3018_v32 = vld [vmem:[#allocation7] sm:$0xf] }
  0x6e   :  { %765 = vmatpush.bf16.msrb.mxu0 %v2787_v17  ;;  %v3115_v17 = vor.u32 %v4001_v13, %v3114_v12  ;;  %v3076_v39 = vld [vmem:[#allocation7 + $0x78] sm:$0xf0]  ;;  %v3988_v42 = vld [vmem:[#allocation7 + $0x64] sm:$0xf]  ;;  %v3068_v44 = vld [vmem:[#allocation7 + $0x68] sm:$0xf0] }
  0x6f   :  { %778 = vmatpush.bf16.msrb.mxu1 %v2915_v18  ;;  %791 = vmatpush.bf16.msrb.mxu2 %v2791_v22  ;;  %v3983_v18 = vld [vmem:[#allocation7 + $0x34] sm:$0xf0]  ;;  %v3981_v22 = vld [vmem:[#allocation7 + $0x24] sm:$0xf0]  ;;  %v3071_v45 = vor.u32 %v3988_v42, %v3068_v44  ;;  %v4006_v49 = vld [vmem:[#allocation7 + $0xf4] sm:$0xf] }
  0x70   :  { %804 = vmatpush.bf16.msrb.mxu3 %v2919_v24  ;;  %v3098_v24 = vld [vmem:[#allocation7 + $0xa0] sm:$0xf]  ;;  %v3035_v26 = vor.u32 %v3981_v22, %v3034_v20  ;;  %v3140_v52 = vld [vmem:[#allocation7 + $0xf8] sm:$0xf0]  ;;  %v3186_v54 = vld [vmem:[#allocation7 + $0x150] sm:$0xf] }
  0x71   :  { %v3099_v28 = vor.u32 %v3997_v25, %v3098_v24  ;;  %v3143_v53 = vor.u32 %v4006_v49, %v3140_v52  ;;  %v4019_v55 = vld [vmem:[#allocation7 + $0x154] sm:$0xf0]  ;;  %v3986_v3 = vld [vmem:[#allocation7 + $0x54] sm:$0xf]  ;;  %v4037_v47 = vld [vmem:[#allocation7 + $0x1e4] sm:$0xf0] }
  0x72   :  { %766 = vmatpush.bf16.msrb.mxu0 %v2771_v33  ;;  %v3091_v33 = vor.u32 %v3995_v30, %v3090_v29  ;;  %v4004_v12 = vld [vmem:[#allocation7 + $0xe4] sm:$0xf]  ;;  %v4035_v22 = vld [vmem:[#allocation7 + $0x1d4] sm:$0xf0]  ;;  %v4002_v25 = vld [vmem:[#allocation7 + $0xd4] sm:$0xf] }
  0x73   :  { %779 = vmatpush.bf16.msrb.mxu1 %v2899_v34  ;;  %792 = vmatpush.bf16.msrb.mxu2 %v2775_v35  ;;  %v3977_v34 = vld [vmem:[#allocation7 + $0x4] sm:$0xf0]  ;;  %v3082_v35 = vld [vmem:[#allocation7 + $0x80] sm:$0xf]  ;;  %v4015_v56 = vld [vmem:[#allocation7 + $0x134] sm:$0xf0] }
  0x74   :  { %805 = vmatpush.bf16.msrb.mxu3 %v2903_v37  ;;  %v3993_v37 = vld [vmem:[#allocation7 + $0x84] sm:$0xf0]  ;;  %v3982_v29 = vld [vmem:[#allocation7 + $0x34] sm:$0xf]  ;;  %v3036_v44 = vld [vmem:[#allocation7 + $0x28] sm:$0xf0] }
  0x75   :  { %767 = vmatmul.bf16.vlgmr.msrb.gmra.mxu0 %v4571_v50  ;;  %v3083_v40 = vor.u32 %v3993_v37, %v3082_v35  ;;  %v4000_v35 = vld [vmem:[#allocation7 + $0xc4] sm:$0xf]  ;;  %v3998_v49 = vld [vmem:[#allocation7 + $0xb4] sm:$0xf] }
  0x76   :  { %1208 = vmatpush.bf16.msra.mxu0 %v3075_v38  ;;  %780 = vmatmul.bf16.vlgmr.msrb.gmra.mxu1 %v4623_v43  ;;  %v3990_v38 = vld [vmem:[#allocation7 + $0x74] sm:$0xf] }
  0x77   :  { %1221 = vmatpush.bf16.msra.mxu1 %v3139_v36  ;;  %793 = vmatmul.bf16.vlgmr.msrb.gmra.mxu2 %v4571_v50  ;;  %v3106_v50 = vld [vmem:[#allocation7 + $0xb0] sm:$0xf]  ;;  %v3019_v36 = vor.u32 %v3977_v34, %v3018_v32  ;;  %v3079_v41 = vor.u32 %v3990_v38, %v3076_v39  ;;  %v4033_v34 = vld [vmem:[#allocation7 + $0x1c4] sm:$0xf0]  ;;  %v3116_v38 = vld [vmem:[#allocation7 + $0xc8] sm:$0xf0] }
  0x78   :  { %806 = vmatmul.bf16.vlgmr.msrb.gmra.mxu3 %v4623_v43  ;;  %1234 = vmatpush.bf16.msra.mxu2 %v3203_v46  ;;  %v3043_v43 = vor.u32 %v3983_v18, %v3042_v15  ;;  %v3107_v21 = vor.u32 %v3999_v19, %v3106_v50  ;;  %v3266_v46 = vld [vmem:[#allocation7 + $0x1f0] sm:$0xf]  ;;  %v4017_v18 = vld [vmem:[#allocation7 + $0x144] sm:$0xf0]  ;;  %v3984_v50 = vld [vmem:[#allocation7 + $0x44] sm:$0xf]  ;;  %v3119_v39 = vor.u32 %v4000_v35, %v3116_v38 }
  0x79   :  { %v3196_v35 = vld [vmem:[#allocation7 + $0x168] sm:$0xf0]  ;;  %v3210_v38 = vld [vmem:[#allocation7 + $0x180] sm:$0xf] }
  0x7a   :  { %1209 = vmatpush.bf16.msra.mxu0 %v3067_v48  ;;  %v4039_v48 = vld [vmem:[#allocation7 + $0x1f4] sm:$0xf0] }
  0x7b   :  { %1222 = vmatpush.bf16.msra.mxu1 %v3131_v51  ;;  %v3267_v51 = vor.u32 %v4039_v48, %v3266_v46  ;;  %v3234_v46 = vld [vmem:[#allocation7 + $0x1b0] sm:$0xf]  ;;  %v4031_v48 = vld [vmem:[#allocation7 + $0x1b4] sm:$0xf0] }
  0x7c   :  { %1235 = vmatpush.bf16.msra.mxu2 %v3195_v4  ;;  %v3187_v4 = vor.u32 %v4019_v55, %v3186_v54  ;;  %v3235_v52 = vor.u32 %v4031_v48, %v3234_v46  ;;  %v3154_v55 = vld [vmem:[#allocation7 + $0x110] sm:$0xf]  ;;  %v3268_v46 = vld [vmem:[#allocation7 + $0x1f8] sm:$0xf0] }
  0x7d   :  { %1247 = vmatpush.bf16.msra.mxu3 %v3267_v51 }
  0x7e   :  { %1210 = vmatpush.bf16.msra.mxu0 %v3059_v5  ;;  %v3060_v5 = vld [vmem:[#allocation7 + $0x58] sm:$0xf0] }
  0x7f   :  { %1223 = vmatpush.bf16.msra.mxu1 %v3123_v7  ;;  %v3063_v6 = vor.u32 %v3986_v3, %v3060_v5  ;;  %v3258_v7 = vld [vmem:[#allocation7 + $0x1e0] sm:$0xf]  ;;  %v4011_v3 = vld [vmem:[#allocation7 + $0x114] sm:$0xf0] }
  0x80   :  { %1236 = vmatpush.bf16.msra.mxu2 %v3187_v4  ;;  %v3259_v13 = vor.u32 %v4037_v47, %v3258_v7  ;;  %v3978_v4 = vld [vmem:[#allocation7 + $0x14] sm:$0xf]  ;;  %v3155_v5 = vor.u32 %v4011_v3, %v3154_v55  ;;  %v3226_v7 = vld [vmem:[#allocation7 + $0x1a0] sm:$0xf]  ;;  %v4029_v47 = vld [vmem:[#allocation7 + $0x1a4] sm:$0xf0] }
  0x81   :  { %v4036_v55 = vld [vmem:[#allocation7 + $0x1e4] sm:$0xf]  ;;  %v3260_v3 = vld [vmem:[#allocation7 + $0x1e8] sm:$0xf0] }
  0x82   :  { %1211 = vmatpush.bf16.msra.mxu0 %v3051_v14  ;;  %v3132_v14 = vld [vmem:[#allocation7 + $0xe8] sm:$0xf0]  ;;  %1248 = vmatpush.bf16.msra.mxu3 %v3259_v13  ;;  %v3227_v13 = vor.u32 %v4029_v47, %v3226_v7  ;;  %v4016_v7 = vld [vmem:[#allocation7 + $0x144] sm:$0xf] }
  0x83   :  { %1224 = vmatpush.bf16.msra.mxu1 %v3115_v17  ;;  %v3135_v15 = vor.u32 %v4004_v12, %v3132_v14  ;;  %v3178_v17 = vld [vmem:[#allocation7 + $0x140] sm:$0xf]  ;;  %v3996_v14 = vld [vmem:[#allocation7 + $0xa4] sm:$0xf]  ;;  %v3180_v47 = vld [vmem:[#allocation7 + $0x148] sm:$0xf0] }
  0x84   :  { %v3179_v19 = vor.u32 %v4017_v18, %v3178_v17  ;;  %v3146_v17 = vld [vmem:[#allocation7 + $0x100] sm:$0xf] }
  0x86   :  { %1212 = vmatpush.bf16.msra.mxu0 %v3043_v43  ;;  %v3052_v43 = vld [vmem:[#allocation7 + $0x48] sm:$0xf0]  ;;  %1237 = vmatpush.bf16.msra.mxu2 %v3179_v19  ;;  %v3976_v19 = vld [vmem:[#allocation7 + $0x4] sm:$0xf] }
  0x87   :  { %1225 = vmatpush.bf16.msra.mxu1 %v3107_v21  ;;  %v3055_v20 = vor.u32 %v3984_v50, %v3052_v43  ;;  %v3250_v21 = vld [vmem:[#allocation7 + $0x1d0] sm:$0xf]  ;;  %v4009_v50 = vld [vmem:[#allocation7 + $0x104] sm:$0xf0]  ;;  %v3020_v43 = vld [vmem:[#allocation7 + $0x8] sm:$0xf0] }
  0x88   :  { %v3251_v24 = vor.u32 %v4035_v22, %v3250_v21  ;;  %v3023_v21 = vor.u32 %v3976_v19, %v3020_v43  ;;  %v4022_v22 = vld [vmem:[#allocation7 + $0x174] sm:$0xf] }
  0x8a   :  { %1213 = vmatpush.bf16.msra.mxu0 %v3035_v26  ;;  %v3124_v26 = vld [vmem:[#allocation7 + $0xd8] sm:$0xf0]  ;;  %1249 = vmatpush.bf16.msra.mxu3 %v3251_v24 }
  0x8b   :  { %1226 = vmatpush.bf16.msra.mxu1 %v3099_v28  ;;  %v3127_v27 = vor.u32 %v4002_v25, %v3124_v26  ;;  %v3170_v28 = vld [vmem:[#allocation7 + $0x130] sm:$0xf]  ;;  %v3204_v24 = vld [vmem:[#allocation7 + $0x178] sm:$0xf0] }
  0x8c   :  { %v3171_v30 = vor.u32 %v4015_v56, %v3170_v28  ;;  %v3218_v25 = vld [vmem:[#allocation7 + $0x190] sm:$0xf]  ;;  %v4027_v28 = vld [vmem:[#allocation7 + $0x194] sm:$0xf0]  ;;  %v3994_v56 = vld [vmem:[#allocation7 + $0x94] sm:$0xf] }
  0x8e   :  { %1214 = vmatpush.bf16.msra.mxu0 %v3027_v31  ;;  %v3044_v31 = vld [vmem:[#allocation7 + $0x38] sm:$0xf0]  ;;  %1238 = vmatpush.bf16.msra.mxu2 %v3171_v30  ;;  %v3219_v30 = vor.u32 %v4027_v28, %v3218_v25 }
  0x8f   :  { %1227 = vmatpush.bf16.msra.mxu1 %v3091_v33  ;;  %v3047_v32 = vor.u32 %v3982_v29, %v3044_v31  ;;  %v3242_v33 = vld [vmem:[#allocation7 + $0x1c0] sm:$0xf]  ;;  %v3092_v29 = vld [vmem:[#allocation7 + $0x98] sm:$0xf0] }
  0x90   :  { %v3243_v37 = vor.u32 %v4033_v34, %v3242_v33  ;;  %v3095_v31 = vor.u32 %v3994_v56, %v3092_v29  ;;  %v4633_v33 = vld [vmem:[#allocation10] ss:$8 sm:$0xf]  ;;  %v4020_v34 = vld [vmem:[#allocation7 + $0x164] sm:$0xf] }
  0x91   :  { %v4030_v29 = vld [vmem:[#allocation7 + $0x1b4] sm:$0xf] }
  0x92   :  { %1215 = vmatpush.bf16.msra.mxu0 %v3019_v36  ;;  %v3162_v36 = vld [vmem:[#allocation7 + $0x120] sm:$0xf]  ;;  %1250 = vmatpush.bf16.msra.mxu3 %v3243_v37  ;;  %v3199_v37 = vor.u32 %v4020_v34, %v3196_v35  ;;  %v3156_v34 = vld [vmem:[#allocation7 + $0x118] sm:$0xf0] }
  0x93   :  { %1228 = vmatpush.bf16.msra.mxu1 %v3083_v40  ;;  %v4013_v40 = vld [vmem:[#allocation7 + $0x124] sm:$0xf0] }
  0x94   :  { %v3163_v42 = vor.u32 %v4013_v40, %v3162_v36  ;;  %v3992_v36 = vld [vmem:[#allocation7 + $0x84] sm:$0xf] }
  0x96   :  { %1260 = vmatpush.bf16.msrb.mxu0 %v3079_v41  ;;  %v3980_v41 = vld [vmem:[#allocation7 + $0x24] sm:$0xf]  ;;  %1239 = vmatpush.bf16.msra.mxu2 %v3163_v42  ;;  %v4038_v42 = vld [vmem:[#allocation7 + $0x1f4] sm:$0xf] }
  0x97   :  { %1273 = vmatpush.bf16.msrb.mxu1 %v3143_v53  ;;  %v3108_v53 = vld [vmem:[#allocation7 + $0xb8] sm:$0xf0]  ;;  %1251 = vmatpush.bf16.msra.mxu3 %v3235_v52  ;;  %v4018_v52 = vld [vmem:[#allocation7 + $0x154] sm:$0xf] }
  0x98   :  { %v3111_v54 = vor.u32 %v3998_v49, %v3108_v53  ;;  %v3271_v49 = vor.u32 %v4038_v42, %v3268_v46  ;;  %v3188_v53 = vld [vmem:[#allocation7 + $0x158] sm:$0xf0]  ;;  %v3148_v42 = vld [vmem:[#allocation7 + $0x108] sm:$0xf0]  ;;  %v324_v46 = vperm.slane %v4633_v33, 2 }
  0x9a   :  { %1261 = vmatpush.bf16.msrb.mxu0 %v3071_v45  ;;  %v3039_v45 = vor.u32 %v3980_v41, %v3036_v44  ;;  %1240 = vmatpush.bf16.msra.mxu2 %v3155_v5  ;;  %v3084_v41 = vld [vmem:[#allocation7 + $0x88] sm:$0xf0]  ;;  %v322_v44 = vperm.slane %v4633_v33, 0  ;;  %v323_v5 = vperm.slane %v4633_v33, 1 }
  0x9b   :  { %1274 = vmatpush.bf16.msrb.mxu1 %v3135_v15  ;;  %v3100_v15 = vld [vmem:[#allocation7 + $0xa8] sm:$0xf0]  ;;  %1252 = vmatpush.bf16.msra.mxu3 %v3227_v13  ;;  %v3183_v13 = vor.u32 %v4016_v7, %v3180_v47  ;;  %v325_v47 = vperm.slane %v4633_v33, 3 }
  0x9c   :  { %v3103_v18 = vor.u32 %v3996_v14, %v3100_v15  ;;  %v3252_v14 = vld [vmem:[#allocation7 + $0x1d8] sm:$0xf0]  ;;  %v4014_v15 = vld [vmem:[#allocation7 + $0x134] sm:$0xf] }
  0x9e   :  { %1262 = vmatpush.bf16.msrb.mxu0 %v3063_v6  ;;  %v3028_v6 = vld [vmem:[#allocation7 + $0x18] sm:$0xf0] }
  0x9f   :  { %1275 = vmatpush.bf16.msrb.mxu1 %v3127_v27  ;;  %v3031_v12 = vor.u32 %v3978_v4, %v3028_v6  ;;  %v3207_v27 = vor.u32 %v4022_v22, %v3204_v24  ;;  %1253 = vmatpush.bf16.msra.mxu3 %v3219_v30  ;;  %v3263_v6 = vor.u32 %v4036_v55, %v3260_v3  ;;  %v3164_v22 = vld [vmem:[#allocation7 + $0x128] sm:$0xf0]  ;;  %v3236_v30 = vld [vmem:[#allocation7 + $0x1b8] sm:$0xf0] }
  0xa2   :  { %1263 = vmatpush.bf16.msrb.mxu0 %v3055_v20  ;;  %v3147_v20 = vor.u32 %v4009_v50, %v3146_v17  ;;  %v3172_v17 = vld [vmem:[#allocation7 + $0x138] sm:$0xf0] }
  0xa3   :  { %1276 = vmatpush.bf16.msrb.mxu1 %v3119_v39  ;;  %v4025_v39 = vld [vmem:[#allocation7 + $0x184] sm:$0xf0]  ;;  %v3175_v43 = vor.u32 %v4014_v15, %v3172_v17 }
  0xa4   :  { %1241 = vmatpush.bf16.msra.mxu2 %v3147_v20  ;;  %v3211_v40 = vor.u32 %v4025_v39, %v3210_v38  ;;  %v4032_v20 = vld [vmem:[#allocation7 + $0x1c4] sm:$0xf]  ;;  %v3239_v38 = vor.u32 %v4030_v29, %v3236_v30 }
  0xa6   :  { %1264 = vmatpush.bf16.msrb.mxu0 %v3047_v32  ;;  %1254 = vmatpush.bf16.msra.mxu3 %v3211_v40  ;;  %v4028_v40 = vld [vmem:[#allocation7 + $0x1a4] sm:$0xf] }
  0xa7   :  { %1277 = vmatpush.bf16.msrb.mxu1 %v3111_v54  ;;  %v3191_v54 = vor.u32 %v4018_v52, %v3188_v53  ;;  %v3220_v52 = vld [vmem:[#allocation7 + $0x198] sm:$0xf0] }
  0xa8   :  { %1286 = vmatpush.bf16.msrb.mxu2 %v3207_v27 }
  0xaa   :  { %1265 = vmatpush.bf16.msrb.mxu0 %v3039_v45  ;;  %v3087_v45 = vor.u32 %v3992_v36, %v3084_v41  ;;  %1299 = vmatpush.bf16.msrb.mxu3 %v3271_v49  ;;  %v4008_v41 = vld [vmem:[#allocation7 + $0x104] sm:$0xf]  ;;  %v4026_v49 = vld [vmem:[#allocation7 + $0x194] sm:$0xf] }
  0xab   :  { %1278 = vmatpush.bf16.msrb.mxu1 %v3103_v18  ;;  %v3223_v3 = vor.u32 %v4026_v49, %v3220_v52 }
  0xac   :  { %1287 = vmatpush.bf16.msrb.mxu2 %v3199_v37 }
  0xae   :  { %1266 = vmatpush.bf16.msrb.mxu0 %v3031_v12  ;;  %v4034_v12 = vld [vmem:[#allocation7 + $0x1d4] sm:$0xf]  ;;  %1300 = vmatpush.bf16.msrb.mxu3 %v3263_v6  ;;  %v3212_v6 = vld [vmem:[#allocation7 + $0x188] sm:$0xf0] }
  0xaf   :  { %1279 = vmatpush.bf16.msrb.mxu1 %v3095_v31  ;;  %v3255_v50 = vor.u32 %v4034_v12, %v3252_v14 }
  0xb0   :  { %1288 = vmatpush.bf16.msrb.mxu2 %v3191_v54 }
  0xb2   :  { %1267 = vmatpush.bf16.msrb.mxu0 %v3023_v21  ;;  %v3244_v21 = vld [vmem:[#allocation7 + $0x1c8] sm:$0xf0]  ;;  %1301 = vmatpush.bf16.msrb.mxu3 %v3255_v50 }
  0xb3   :  { %1280 = vmatpush.bf16.msrb.mxu1 %v3087_v45  ;;  %v3247_v27 = vor.u32 %v4032_v20, %v3244_v21 }
  0xb4   :  { %1289 = vmatpush.bf16.msrb.mxu2 %v3183_v13 }
  0xb6   :  { %1302 = vmatpush.bf16.msrb.mxu3 %v3247_v27 }
  0xb8   :  { %1290 = vmatpush.bf16.msrb.mxu2 %v3175_v43 }
  0xba   :  { %1303 = vmatpush.bf16.msrb.mxu3 %v3239_v38 }
  0xce   :  { %v4631_v51 = vpop.f32.mrf.mxu0 }
  0xcf   :  { %v717_v4 = vadd.f32 %v4631_v51, %v322_v44  ;;  %v4012_v51 = vld [vmem:[#allocation7 + $0x124] sm:$0xf] }
  0xd0   :  { %v3167_v56 = vor.u32 %v4012_v51, %v3164_v22 }
  0xd2   :  { %1291 = vmatpush.bf16.msrb.mxu2 %v3167_v56 }
  0xd4   :  { %v742_v26 = vpop.f32.mrf.mxu2 }
  0xd5   :  { %v743_v25 = vadd.f32 %v742_v26, %v323_v5  ;;  %v3228_v26 = vld [vmem:[#allocation7 + $0x1a8] sm:$0xf0]  ;;  %v4024_v5 = vld [vmem:[#allocation7 + $0x184] sm:$0xf] }
  0xd6   :  { %v718_v32 = vpop.f32.mrf.mxu0  ;;  %v3231_v45 = vor.u32 %v4028_v40, %v3228_v26  ;;  %v3215_v12 = vor.u32 %v4024_v5, %v3212_v6 }
  0xd7   :  { %v4010_v32 = vld [vmem:[#allocation7 + $0x114] sm:$0xf] }
  0xd8   :  { %v3159_v36 = vor.u32 %v4010_v32, %v3156_v34  ;;  %1304 = vmatpush.bf16.msrb.mxu3 %v3231_v45  ;;  %v1335_v32 = vsel %vm362_vm1, %v4580_v8, %v4575_v58 }
  0xda   :  { %1292 = vmatpush.bf16.msrb.mxu2 %v3159_v36  ;;  %v1336_v36 = vsel %vm364_vm2, %v4583_v9, %v1335_v32 }
  0xdc   :  { %v744_v48 = vpop.f32.mrf.mxu2  ;;  %1305 = vmatpush.bf16.msrb.mxu3 %v3223_v3 }
  0xdd   :  { %v3151_v48 = vor.u32 %v4008_v41, %v3148_v42 }
  0xdf   :  { %1293 = vmatpush.bf16.msrb.mxu2 %v3151_v48 }
  0xe0   :  { %1306 = vmatpush.bf16.msrb.mxu3 %v3215_v12 }
  0xe2   :  { %v729_v18 = vpop.f32.mrf.mxu1 }
  0xe3   :  { %v730_v19 = vadd.f32 %v729_v18, %v717_v4 }
  0xe5   :  { %v811_v24 = vmax.f32 %v730_v19, 0.0 }
  0xe7   :  { %v815_v28 = vpack.c.bf16 %v811_v24, %v811_v24 }
  0xe8   :  { %v755_v31 = vpop.f32.mrf.mxu3 }
  0xe9   :  { %v756_v35 = vadd.f32 %v755_v31, %v743_v25  ;;  %1216 = vmatmul.bf16.vlgmr.msra.gmra.mxu0 %v815_v28  ;;  %v1328_v31 = vsel %vm362_vm1, %v4528_v61, %v4525_v60  ;;  %v1337_v60 = vsel %vm366_vm3, %v4586_v59, %v1336_v36  ;;  %v4092_v36 = vld [vmem:[#allocation5 + $0x3a4] sm:$0xf] }
  0xea   :  { %v731_v37 = vpop.f32.mrf.mxu1  ;;  %v1338_v8 = vsel %vm368_vm4, %v4589_v10, %v1337_v60 }
  0xeb   :  { %v812_v39 = vmax.f32 %v756_v35, 0.0  ;;  %v236_v35 = vld [vmem:[#allocation10 + $0x1] ss:$8 sm:$0x3] }
  0xec   :  { %v884_v40 = vperm.slane %v236_v35, 0  ;;  %v885_v41 = vperm.slane %v236_v35, 1  ;;  %v4094_v35 = vld [vmem:[#allocation5 + $0x3ac] sm:$0xf0] }
  0xed   :  { %v816_v44 = vpack.c.bf16 %v812_v39, %v812_v39  ;;  %v1329_v39 = vsel %vm364_vm2, %v4531_v62, %v1328_v31  ;;  %v4062_v31 = vld [vmem:[#allocation5 + $0x2ac] sm:$0xf0] }
  0xee   :  { %v1330_v26 = vsel %vm366_vm3, %v4534_v63, %v1329_v39  ;;  %v3356_v39 = vld [vmem:[#allocation5 + $0x2b0] sm:$0xf0] }
  0xef   :  { %1229 = vmatmul.bf16.vlgmr.msra.gmra.mxu1 %v816_v44  ;;  %v1331_v58 = vsel %vm368_vm4, %v4537_v23, %v1330_v26 }
  0xf0   :  { %v757_v53 = vpop.f32.mrf.mxu3  ;;  %v1332_v9 = vsel %vm370_vm5, %v4540_v0, %v1331_v58  ;;  %v3466_v58 = vld [vmem:[#allocation5 + $0x380] sm:$0xf] }
  0xf1   :  { %v1333_v48 = vsel %vm372_vm6, %v4543_v1, %v1332_v9  ;;  %v3340_v9 = vld [vmem:[#allocation5 + $0x290] sm:$0xf0] }
  0xf2   :  { %v768_v54 = vpop.f32.mrf.mxu0  ;;  %v1334_v53 = vsel %vm374_vm7, %v4546_v2, %v1333_v48 }
  0xf3   :  { %v781_v55 = vpop.f32.mrf.mxu1  ;;  %v769_v4 = vadd.f32 %v768_v54, %v324_v46 }
  0xf5   :  { %v782_v7 = vadd.f32 %v781_v55, %v769_v4  ;;  %v4388_v4 = vmov 256.0  }
  0xf6   :  { %4216 = vrcp.f32 %v4388_v4  ;;  %v3322_v4 = vld [vmem:[#allocation5 + $0x260] sm:$0xf] }
  0xf7   :  { %v813_v13 = vmax.f32 %v782_v7, 0.0  ;;  %v3386_v7 = vld [vmem:[#allocation5 + $0x2e0] sm:$0xf] }
  0xf9   :  { %1268 = vmatmul.bf16.vlgmr.msrb.gmra.mxu0 %v815_v28  ;;  %v817_v14 = vpack.c.bf16 %v813_v13, %v813_v13  ;;  %v4102_v13 = vld [vmem:[#allocation5 + $0x3ec] sm:$0xf0] }
  0xfa   :  { %v794_v15 = vpop.f32.mrf.mxu2  ;;  %v770_v50 = vpop.f32.mrf.mxu0 }
  0xfb   :  { %v807_v17 = vpop.f32.mrf.mxu3  ;;  %v795_v18 = vadd.f32 %v794_v15, %v325_v47  ;;  %v783_v19 = vpop.f32.mrf.mxu1  ;;  %1242 = vmatmul.bf16.vlgmr.msra.gmra.mxu2 %v817_v14  ;;  %v3514_v47 = vld [vmem:[#allocation5 + $0x3e0] sm:$0xf]  ;;  %v3388_v15 = vld [vmem:[#allocation5 + $0x2f0] sm:$0xf0]  ;;  %v4100_v50 = vld [vmem:[#allocation5 + $0x3e4] sm:$0xf] }
  0xfc   :  { %v4676_v5 = vpop.eup %4216  ;;  %v3516_v19 = vld [vmem:[#allocation5 + $0x3f0] sm:$0xf0] }
  0xfd   :  { %v808_v43 = vadd.f32 %v807_v17, %v795_v18  ;;  %v1350_v2 = vmul.f32 256.0, %v4676_v5  ;;  %v3515_v17 = vor.u32 %v4102_v13, %v3514_v47  ;;  %vm1354_vm8 = vweird.f32 %v4676_v5  ;;  %v3324_v47 = vld [vmem:[#allocation5 + $0x270] sm:$0xf0]  ;;  %v4084_v13 = vld [vmem:[#allocation5 + $0x364] sm:$0xf] }
  0xff   :  { %v814_v20 = vmax.f32 %v808_v43, 0.0  ;;  %1281 = vmatmul.bf16.vlgmr.msrb.gmra.mxu1 %v816_v44  ;;  %v1339_v44 = vsel %vm370_vm5, %v4592_v11, %v1338_v8  ;;  %v1351_v6 = vsub.f32 1.0, %v1350_v2  ;;  %v3370_v43 = vld [vmem:[#allocation5 + $0x2c0] sm:$0xf] }
 0x100   :  { %v1340_v23 = vsel %vm372_vm6, %v4609_v57, %v1339_v44  ;;  %1809 = vmatpush.bf16.msra.mxu1 %v3515_v17  ;;  %v4088_v44 = vld [vmem:[#allocation5 + $0x384] sm:$0xf]  ;;  %v3450_v2 = vld [vmem:[#allocation5 + $0x360] sm:$0xf]  ;;  %v4050_v17 = vld [vmem:[#allocation5 + $0x24c] sm:$0xf0] }
 0x101   :  { %v818_v21 = vpack.c.bf16 %v814_v20, %v814_v20  ;;  %v1341_v0 = vsel %vm374_vm7, %v4614_v16, %v1340_v23  ;;  %v4070_v16 = vld [vmem:[#allocation5 + $0x2ec] sm:$0xf0]  ;;  %v3519_v20 = vor.u32 %v4100_v50, %v3516_v19  ;;  %v1352_v48 = vmul.f32 %v4676_v5, %v1351_v6 }
 0x102   :  { %v796_v51 = vpop.f32.mrf.mxu2  ;;  %v3387_v12 = vor.u32 %v4070_v16, %v3386_v7  ;;  %v4086_v7 = vld [vmem:[#allocation5 + $0x36c] sm:$0xf0]  ;;  %v4052_v16 = vld [vmem:[#allocation5 + $0x264] sm:$0xf] }
 0x103   :  { %v809_v22 = vpop.f32.mrf.mxu3  ;;  %1255 = vmatmul.bf16.vlgmr.msra.gmra.mxu3 %v818_v21  ;;  %v3498_v51 = vld [vmem:[#allocation5 + $0x3c0] sm:$0xf]  ;;  %v4082_v19 = vld [vmem:[#allocation5 + $0x34c] sm:$0xf0] }
 0x104   :  { %1796 = vmatpush.bf16.msra.mxu0 %v3387_v12  ;;  %v4098_v22 = vld [vmem:[#allocation5 + $0x3cc] sm:$0xf0]  ;;  %1835 = vmatpush.bf16.msra.mxu3 %v3519_v20  ;;  %v3327_v12 = vor.u32 %v4052_v16, %v3324_v47  ;;  %v3308_v20 = vld [vmem:[#allocation5 + $0x250] sm:$0xf0]  ;;  %v3380_v47 = vld [vmem:[#allocation5 + $0x2d8] sm:$0xf0] }
 0x10b   :  { %1294 = vmatmul.bf16.vlgmr.msrb.gmra.mxu2 %v817_v14  ;;  %v4068_v14 = vld [vmem:[#allocation5 + $0x2e4] sm:$0xf] }
 0x10c   :  { %v3391_v18 = vor.u32 %v4068_v14, %v3388_v15  ;;  %v3306_v15 = vld [vmem:[#allocation5 + $0x240] sm:$0xf] }
 0x10d   :  { %v3307_v50 = vor.u32 %v4050_v17, %v3306_v15  ;;  %v4063_v15 = vld [vmem:[#allocation5 + $0x2b4] sm:$0xf0]  ;;  %v3490_v17 = vld [vmem:[#allocation5 + $0x3a8] sm:$0xf] }
 0x10e   :  { %1822 = vmatpush.bf16.msra.mxu2 %v3391_v18  ;;  %v3434_v18 = vld [vmem:[#allocation5 + $0x340] sm:$0xf] }
 0x113   :  { %1307 = vmatmul.bf16.vlgmr.msrb.gmra.mxu3 %v818_v21  ;;  %v4066_v21 = vld [vmem:[#allocation5 + $0x2cc] sm:$0xf0] }
 0x166   :  { %v1217_v33 = vpop.f32.mrf.mxu0 }
 0x167   :  { %v1218_v61 = vadd.f32 %v1217_v33, %v884_v40  ;;  %v3371_v33 = vor.u32 %v4066_v21, %v3370_v43  ;;  %v3484_v40 = vld [vmem:[#allocation5 + $0x3b0] sm:$0xf0]  ;;  %v4048_v43 = vld [vmem:[#allocation5 + $0x244] sm:$0xf]  ;;  %v3435_v21 = vor.u32 %v4082_v19, %v3434_v18  ;;  %v4095_v18 = vld [vmem:[#allocation5 + $0x3b4] sm:$0xf0] }
 0x168   :  { %v3487_v8 = vor.u32 %v4092_v36, %v3484_v40  ;;  %v4042_v36 = vld [vmem:[#allocation5 + $0x20c] sm:$0xf0]  ;;  %v3402_v40 = vld [vmem:[#allocation5 + $0x300] sm:$0xf]  ;;  %v3364_v19 = vld [vmem:[#allocation5 + $0x2b8] sm:$0xf0] }
 0x169   :  { %1797 = vmatpush.bf16.msra.mxu0 %v3371_v33  ;;  %v3436_v33 = vld [vmem:[#allocation5 + $0x350] sm:$0xf0] }
 0x16c   :  { %v1230_v24 = vpop.f32.mrf.mxu1 }
 0x16d   :  { %v1231_v63 = vadd.f32 %v1230_v24, %v1218_v61  ;;  %v3499_v24 = vor.u32 %v4098_v22, %v3498_v51  ;;  %v3338_v61 = vld [vmem:[#allocation5 + $0x280] sm:$0xf]  ;;  %v3311_v51 = vor.u32 %v4048_v43, %v3308_v20  ;;  %v4080_v22 = vld [vmem:[#allocation5 + $0x344] sm:$0xf] }
 0x16e   :  { %v1219_v25 = vpop.f32.mrf.mxu0 }
 0x16f   :  { %v4064_v25 = vld [vmem:[#allocation5 + $0x2c4] sm:$0xf]  ;;  %1810 = vmatpush.bf16.msra.mxu1 %v3499_v24  ;;  %v3439_v24 = vor.u32 %v4080_v22, %v3436_v33  ;;  %v3492_v22 = vld [vmem:[#allocation5 + $0x3b8] sm:$0xf0]  ;;  %v3346_v33 = vld [vmem:[#allocation5 + $0x288] sm:$0xf] }
 0x174   :  { %v1232_v27 = vpop.f32.mrf.mxu1 }
 0x175   :  { %v3372_v27 = vld [vmem:[#allocation5 + $0x2d0] sm:$0xf0] }
 0x176   :  { %v1269_v28 = vpop.f32.mrf.mxu0 }
 0x177   :  { %v1270_v45 = vadd.f32 %v1269_v28, %v885_v41  ;;  %v4096_v28 = vld [vmem:[#allocation5 + $0x3c4] sm:$0xf]  ;;  %v4058_v41 = vld [vmem:[#allocation5 + $0x28c] sm:$0xf0] }
 0x17c   :  { %v1282_v56 = vpop.f32.mrf.mxu1 }
 0x17d   :  { %v1283_v46 = vadd.f32 %v1282_v56, %v1270_v45  ;;  %v3375_v56 = vor.u32 %v4064_v25, %v3372_v27  ;;  %v3339_v45 = vor.u32 %v4058_v41, %v3338_v61  ;;  %v3290_v25 = vld [vmem:[#allocation5 + $0x220] sm:$0xf]  ;;  %v4046_v27 = vld [vmem:[#allocation5 + $0x22c] sm:$0xf0]  ;;  %v4040_v61 = vld [vmem:[#allocation5 + $0x204] sm:$0xf] }
 0x17e   :  { %v1271_v29 = vpop.f32.mrf.mxu0  ;;  %v1243_v30 = vpop.f32.mrf.mxu2  ;;  %v3276_v41 = vld [vmem:[#allocation5 + $0x210] sm:$0xf0] }
 0x17f   :  { %v1244_v59 = vadd.f32 %v1243_v30, %v1231_v63  ;;  %v3500_v29 = vld [vmem:[#allocation5 + $0x3d0] sm:$0xf0]  ;;  %v3354_v30 = vld [vmem:[#allocation5 + $0x2a0] sm:$0xf]  ;;  %1823 = vmatpush.bf16.msra.mxu2 %v3375_v56  ;;  %v3291_v56 = vor.u32 %v4046_v27, %v3290_v25  ;;  %v4059_v27 = vld [vmem:[#allocation5 + $0x294] sm:$0xf0] }
 0x180   :  { %v3503_v32 = vor.u32 %v4096_v28, %v3500_v29  ;;  %v3468_v63 = vld [vmem:[#allocation5 + $0x390] sm:$0xf0]  ;;  %v3418_v28 = vld [vmem:[#allocation5 + $0x320] sm:$0xf]  ;;  %v4078_v29 = vld [vmem:[#allocation5 + $0x32c] sm:$0xf0] }
 0x181   :  { %v3471_v23 = vor.u32 %v4088_v44, %v3468_v63  ;;  %v4071_v63 = vld [vmem:[#allocation5 + $0x2f4] sm:$0xf0] }
 0x182   :  { %1836 = vmatpush.bf16.msra.mxu3 %v3503_v32  ;;  %v3419_v32 = vor.u32 %v4078_v29, %v3418_v28  ;;  %v3474_v28 = vld [vmem:[#allocation5 + $0x388] sm:$0xf] }
 0x184   :  { %v1284_v34 = vpop.f32.mrf.mxu1 }
 0x185   :  { %v3482_v34 = vld [vmem:[#allocation5 + $0x3a0] sm:$0xf] }
 0x186   :  { %v1256_v37 = vpop.f32.mrf.mxu3  ;;  %v1245_v38 = vpop.f32.mrf.mxu2  ;;  %v3483_v26 = vor.u32 %v4094_v35, %v3482_v34  ;;  %1837 = vmatpush.bf16.msra.mxu3 %v3487_v8  ;;  %v4076_v35 = vld [vmem:[#allocation5 + $0x324] sm:$0xf]  ;;  %v3279_v8 = vor.u32 %v4040_v61, %v3276_v41  ;;  %v4087_v61 = vld [vmem:[#allocation5 + $0x374] sm:$0xf0]  ;;  %v4053_v41 = vld [vmem:[#allocation5 + $0x26c] sm:$0xf] }
 0x187   :  { %v1257_v49 = vadd.f32 %v1256_v37, %v1244_v59  ;;  %v4060_v37 = vld [vmem:[#allocation5 + $0x2a4] sm:$0xf]  ;;  %v3355_v38 = vor.u32 %v4062_v31, %v3354_v30  ;;  %v3292_v31 = vld [vmem:[#allocation5 + $0x230] sm:$0xf0] }
 0x188   :  { %v3359_v60 = vor.u32 %v4060_v37, %v3356_v39  ;;  %1811 = vmatpush.bf16.msra.mxu1 %v3483_v26  ;;  %v4044_v30 = vld [vmem:[#allocation5 + $0x224] sm:$0xf]  ;;  %v3420_v37 = vld [vmem:[#allocation5 + $0x330] sm:$0xf0]  ;;  %v3274_v39 = vld [vmem:[#allocation5 + $0x200] sm:$0xf] }
 0x189   :  { %v4670_v55 = vadd.f32 %v1334_v53, %v1257_v49  ;;  %1798 = vmatpush.bf16.msra.mxu0 %v3355_v38  ;;  %v1353_v49 = vadd.f32 %v4676_v5, %v1352_v48  ;;  %v3295_v34 = vor.u32 %v4044_v30, %v3292_v31  ;;  %v3423_v38 = vor.u32 %v4076_v35, %v3420_v37  ;;  %v4057_v30 = vld [vmem:[#allocation5 + $0x28c] sm:$0xf]  ;;  %v3348_v31 = vld [vmem:[#allocation5 + $0x298] sm:$0xf0] }
 0x18a   :  { %1824 = vmatpush.bf16.msra.mxu2 %v3359_v60  ;;  %1838 = vmatpush.bf16.msra.mxu3 %v3471_v23  ;;  %v3275_v26 = vor.u32 %v4042_v36, %v3274_v39  ;;  %v4074_v60 = vld [vmem:[#allocation5 + $0x30c] sm:$0xf0]  ;;  %v4069_v23 = vld [vmem:[#allocation5 + $0x2ec] sm:$0xf]  ;;  %v3476_v35 = vld [vmem:[#allocation5 + $0x398] sm:$0xf0]  ;;  %v3347_v37 = vor.u32 %v4059_v27, %v3346_v33  ;;  %v3351_v39 = vor.u32 %v4057_v30, %v3348_v31 }
 0x18b   :  { %v3330_v36 = vld [vmem:[#allocation5 + $0x268] sm:$0xf]  ;;  %v4073_v27 = vld [vmem:[#allocation5 + $0x30c] sm:$0xf] }
 0x18d   :  { %1799 = vmatpush.bf16.msra.mxu0 %v3339_v45  ;;  %v3522_v45 = vld [vmem:[#allocation5 + $0x3e8] sm:$0xf] }
 0x18e   :  { %v1258_v42 = vpop.f32.mrf.mxu3  ;;  %v1295_v62 = vpop.f32.mrf.mxu2 }
 0x18f   :  { %v1296_v10 = vadd.f32 %v1295_v62, %v1283_v46  ;;  %v4090_v42 = vld [vmem:[#allocation5 + $0x38c] sm:$0xf0]  ;;  %v4056_v62 = vld [vmem:[#allocation5 + $0x284] sm:$0xf] }
 0x190   :  { %v3467_v46 = vor.u32 %v4090_v42, %v3466_v58  ;;  %v3343_v59 = vor.u32 %v4056_v62, %v3340_v9  ;;  %v3403_v58 = vor.u32 %v4074_v60, %v3402_v40  ;;  %v4072_v42 = vld [vmem:[#allocation5 + $0x304] sm:$0xf]  ;;  %v3404_v62 = vld [vmem:[#allocation5 + $0x310] sm:$0xf0]  ;;  %v3394_v9 = vld [vmem:[#allocation5 + $0x2e8] sm:$0xf] }
 0x191   :  { %v3407_v44 = vor.u32 %v4072_v42, %v3404_v62  ;;  %v4055_v40 = vld [vmem:[#allocation5 + $0x274] sm:$0xf0]  ;;  %v3460_v42 = vld [vmem:[#allocation5 + $0x378] sm:$0xf0] }
 0x192   :  { %1812 = vmatpush.bf16.msra.mxu1 %v3467_v46  ;;  %1825 = vmatpush.bf16.msra.mxu2 %v3343_v59  ;;  %v4103_v46 = vld [vmem:[#allocation5 + $0x3f4] sm:$0xf0]  ;;  %v3395_v59 = vor.u32 %v4071_v63, %v3394_v9  ;;  %v3331_v62 = vor.u32 %v4055_v40, %v3330_v36 }
 0x193   :  { %v3523_v48 = vor.u32 %v4103_v46, %v3522_v45  ;;  %v4051_v45 = vld [vmem:[#allocation5 + $0x254] sm:$0xf0]  ;;  %v3442_v46 = vld [vmem:[#allocation5 + $0x348] sm:$0xf] }
 0x196   :  { %v1308_v52 = vpop.f32.mrf.mxu3  ;;  %v1297_v54 = vpop.f32.mrf.mxu2  ;;  %1826 = vmatpush.bf16.msra.mxu2 %v3327_v12  ;;  %v3508_v12 = vld [vmem:[#allocation5 + $0x3d8] sm:$0xf0] }
 0x197   :  { %v1309_v11 = vadd.f32 %v1308_v52, %v1296_v10  ;;  %v4683_v10 = vsel %vm1354_vm8, %v4676_v5, %v1353_v49  ;;  %v4054_v5 = vld [vmem:[#allocation5 + $0x26c] sm:$0xf0]  ;;  %v3396_v49 = vld [vmem:[#allocation5 + $0x2f8] sm:$0xf0] }
 0x198   :  { %v3323_v6 = vor.u32 %v4054_v5, %v3322_v4 }
 0x199   :  { %v4672_v3 = vadd.f32 %v1341_v0, %v1309_v11 }
 0x19a   :  { %1800 = vmatpush.bf16.msra.mxu0 %v3323_v6  ;;  %1827 = vmatpush.bf16.msra.mxu2 %v3311_v51  ;;  %v4099_v6 = vld [vmem:[#allocation5 + $0x3d4] sm:$0xf0]  ;;  %v4093_v51 = vld [vmem:[#allocation5 + $0x3ac] sm:$0xf] }
 0x19b   :  { %v1346_v1 = vadd.f32 %v4672_v3, %v4670_v55  ;;  %v3495_v29 = vor.u32 %v4093_v51, %v3492_v22  ;;  %v4075_v51 = vld [vmem:[#allocation5 + $0x314] sm:$0xf0] }
 0x19d   :  { %1347 = vadd.xlane.f32.xlu0 %v1346_v1 }
 0x19e   :  { %v1310_v57 = vpop.f32.mrf.mxu3  ;;  %1801 = vmatpush.bf16.msra.mxu0 %v3307_v50  ;;  %1828 = vmatpush.bf16.msra.mxu2 %v3295_v34  ;;  %v4061_v50 = vld [vmem:[#allocation5 + $0x2ac] sm:$0xf] }
 0x19f   :  { %v3367_v25 = vor.u32 %v4061_v50, %v3364_v19  ;;  %v4089_v34 = vld [vmem:[#allocation5 + $0x38c] sm:$0xf]  ;;  %v3282_v19 = vld [vmem:[#allocation5 + $0x208] sm:$0xf] }
 0x1a0   :  { %v3479_v60 = vor.u32 %v4089_v34, %v3476_v35 }
 0x1a2   :  { %1802 = vmatpush.bf16.msra.mxu0 %v3291_v56  ;;  %1829 = vmatpush.bf16.msra.mxu2 %v3279_v8  ;;  %v4091_v56 = vld [vmem:[#allocation5 + $0x394] sm:$0xf0]  ;;  %v4085_v8 = vld [vmem:[#allocation5 + $0x36c] sm:$0xf] }
 0x1a6   :  { %1803 = vmatpush.bf16.msra.mxu0 %v3275_v26  ;;  %v3458_v26 = vld [vmem:[#allocation5 + $0x368] sm:$0xf] }
 0x1a7   :  { %v3459_v9 = vor.u32 %v4087_v61, %v3458_v26 }
 0x1aa   :  { %1848 = vmatpush.bf16.msrb.mxu0 %v3395_v59  ;;  %v4083_v59 = vld [vmem:[#allocation5 + $0x354] sm:$0xf0] }
 0x210   :  { %v1348_v52 = vpop.xlane.xlu0 %1347 }
 0x211   :  { %v1356_v53 = vmul.f32 %v4683_v10, %v1348_v52  ;;  %v4101_v52 = vld [vmem:[#allocation5 + $0x3ec] sm:$0xf] }
 0x213   :  { %v4687_v0 = vsub.f32 %v4670_v55, %v1356_v53  ;;  %v4690_v11 = vsub.f32 %v4672_v3, %v1356_v53  ;;  %v3451_v55 = vor.u32 %v4086_v7, %v3450_v2  ;;  %v3452_v3 = vld [vmem:[#allocation5 + $0x370] sm:$0xf0]  ;;  %v3399_v53 = vor.u32 %v4069_v23, %v3396_v49  ;;  %v3506_v2 = vld [vmem:[#allocation5 + $0x3c8] sm:$0xf]  ;;  %v4065_v7 = vld [vmem:[#allocation5 + $0x2cc] sm:$0xf] }
 0x214   :  { %v3455_v14 = vor.u32 %v4084_v13, %v3452_v3  ;;  %v3507_v16 = vor.u32 %v4099_v6, %v3506_v2  ;;  %v3383_v13 = vor.u32 %v4065_v7, %v3380_v47  ;;  %v4049_v23 = vld [vmem:[#allocation5 + $0x24c] sm:$0xf]  ;;  %v3316_v49 = vld [vmem:[#allocation5 + $0x258] sm:$0xf0]  ;;  %v4047_v6 = vld [vmem:[#allocation5 + $0x234] sm:$0xf0] }
 0x215   :  { %v1359_v54 = vmul.f32 %v4687_v0, %v4687_v0  ;;  %v1360_v1 = vmul.f32 %v4690_v11, %v4690_v11  ;;  %1813 = vmatpush.bf16.msra.mxu1 %v3451_v55  ;;  %1874 = vmatpush.bf16.msrb.mxu2 %v3399_v53  ;;  %v4097_v55 = vld [vmem:[#allocation5 + $0x3cc] sm:$0xf]  ;;  %v3319_v2 = vor.u32 %v4049_v23, %v3316_v49  ;;  %v3426_v7 = vld [vmem:[#allocation5 + $0x328] sm:$0xf] }
 0x216   :  { %1839 = vmatpush.bf16.msra.mxu3 %v3455_v14  ;;  %v3511_v3 = vor.u32 %v4097_v55, %v3508_v12  ;;  %v3362_v14 = vld [vmem:[#allocation5 + $0x2a8] sm:$0xf]  ;;  %v4081_v53 = vld [vmem:[#allocation5 + $0x34c] sm:$0xf] }
 0x217   :  { %v1361_v57 = vadd.f32 %v1360_v1, %v1359_v54  ;;  %v3524_v54 = vld [vmem:[#allocation5 + $0x3f8] sm:$0xf0]  ;;  %v3378_v1 = vld [vmem:[#allocation5 + $0x2c8] sm:$0xf]  ;;  %v3363_v20 = vor.u32 %v4063_v15, %v3362_v14  ;;  %v4045_v12 = vld [vmem:[#allocation5 + $0x22c] sm:$0xf] }
 0x218   :  { %v3527_v4 = vor.u32 %v4101_v52, %v3524_v54  ;;  %v3444_v54 = vld [vmem:[#allocation5 + $0x358] sm:$0xf0]  ;;  %v4117_v23 = vld [vmem:[#allocation7 + $0x264] sm:$0xf0] }
 0x219   :  { %1362 = vadd.xlane.f32.xlu0 %v1361_v57  ;;  %1814 = vmatpush.bf16.msra.mxu1 %v3435_v21  ;;  %v4067_v57 = vld [vmem:[#allocation5 + $0x2d4] sm:$0xf0]  ;;  %v3491_v21 = vor.u32 %v4095_v18, %v3490_v17  ;;  %v3447_v55 = vor.u32 %v4081_v53, %v3444_v54  ;;  %v3428_v14 = vld [vmem:[#allocation5 + $0x338] sm:$0xf0]  ;;  %v4133_v53 = vld [vmem:[#allocation7 + $0x2e4] sm:$0xf0] }
 0x21a   :  { %1840 = vmatpush.bf16.msra.mxu3 %v3439_v24  ;;  %v3379_v5 = vor.u32 %v4067_v57, %v3378_v1  ;;  %1875 = vmatpush.bf16.msrb.mxu2 %v3383_v13  ;;  %v3300_v13 = vld [vmem:[#allocation5 + $0x238] sm:$0xf0]  ;;  %v238_v17 = vld [vmem:[#allocation10 + $0x2] ss:$8 sm:$0x3] }
 0x21b   :  { %v1379_v34 = vperm.slane %v238_v17, 0  ;;  %v1380_v35 = vperm.slane %v238_v17, 1  ;;  %v3762_v17 = vld [vmem:[#allocation7 + $0x3d0] sm:$0xf] }
 0x21c   :  { %1849 = vmatpush.bf16.msrb.mxu0 %v3379_v5  ;;  %v3298_v5 = vld [vmem:[#allocation5 + $0x228] sm:$0xf] }
 0x21d   :  { %1815 = vmatpush.bf16.msra.mxu1 %v3419_v32  ;;  %v3299_v18 = vor.u32 %v4047_v6, %v3298_v5  ;;  %v3770_v5 = vld [vmem:[#allocation7 + $0x3e0] sm:$0xf] }
 0x21e   :  { %1841 = vmatpush.bf16.msra.mxu3 %v3423_v38  ;;  %v3475_v38 = vor.u32 %v4091_v56, %v3474_v28  ;;  %1876 = vmatpush.bf16.msrb.mxu2 %v3367_v25  ;;  %v3284_v25 = vld [vmem:[#allocation5 + $0x218] sm:$0xf0] }
 0x21f   :  { %v3412_v28 = vld [vmem:[#allocation5 + $0x318] sm:$0xf0] }
 0x220   :  { %1850 = vmatpush.bf16.msrb.mxu0 %v3363_v20  ;;  %v4043_v20 = vld [vmem:[#allocation5 + $0x214] sm:$0xf0] }
 0x221   :  { %1816 = vmatpush.bf16.msra.mxu1 %v3403_v58  ;;  %v3332_v58 = vld [vmem:[#allocation5 + $0x278] sm:$0xf0]  ;;  %v3283_v30 = vor.u32 %v4043_v20, %v3282_v19  ;;  %v3562_v19 = vld [vmem:[#allocation7 + $0x240] sm:$0xf] }
 0x222   :  { %1842 = vmatpush.bf16.msra.mxu3 %v3407_v44  ;;  %v3314_v44 = vld [vmem:[#allocation5 + $0x248] sm:$0xf]  ;;  %1877 = vmatpush.bf16.msrb.mxu2 %v3351_v39  ;;  %v3335_v63 = vor.u32 %v4053_v41, %v3332_v58  ;;  %v3415_v39 = vor.u32 %v4073_v27, %v3412_v28  ;;  %v3586_v41 = vld [vmem:[#allocation7 + $0x270] sm:$0xf]  ;;  %v4119_v58 = vld [vmem:[#allocation7 + $0x274] sm:$0xf0] }
 0x223   :  { %v3315_v57 = vor.u32 %v4051_v45, %v3314_v44  ;;  %v3754_v27 = vld [vmem:[#allocation7 + $0x3c0] sm:$0xf]  ;;  %v4161_v28 = vld [vmem:[#allocation7 + $0x3c4] sm:$0xf0] }
 0x224   :  { %1851 = vmatpush.bf16.msrb.mxu0 %v3347_v37 }
 0x225   :  { %1861 = vmatpush.bf16.msrb.mxu1 %v3523_v48  ;;  %v3463_v48 = vor.u32 %v4085_v8, %v3460_v42  ;;  %v3650_v8 = vld [vmem:[#allocation7 + $0x2f0] sm:$0xf]  ;;  %v4135_v42 = vld [vmem:[#allocation7 + $0x2f4] sm:$0xf0] }
 0x226   :  { %1887 = vmatpush.bf16.msrb.mxu3 %v3527_v4  ;;  %v3443_v4 = vor.u32 %v4083_v59, %v3442_v46  ;;  %1878 = vmatpush.bf16.msrb.mxu2 %v3335_v63  ;;  %v3778_v63 = vld [vmem:[#allocation7 + $0x3f0] sm:$0xf]  ;;  %v3587_v59 = vor.u32 %v4119_v58, %v3586_v41  ;;  %v3651_v49 = vor.u32 %v4135_v42, %v3650_v8  ;;  %v4125_v41 = vld [vmem:[#allocation7 + $0x2a4] sm:$0xf0] }
 0x227   :  { %v3538_v42 = vld [vmem:[#allocation7 + $0x210] sm:$0xf] }
 0x228   :  { %1852 = vmatpush.bf16.msrb.mxu0 %v3331_v62  ;;  %v3714_v62 = vld [vmem:[#allocation7 + $0x370] sm:$0xf] }
 0x229   :  { %1862 = vmatpush.bf16.msrb.mxu1 %v3507_v16  ;;  %v4079_v16 = vld [vmem:[#allocation5 + $0x334] sm:$0xf0] }
 0x22a   :  { %1888 = vmatpush.bf16.msrb.mxu3 %v3511_v3  ;;  %v4077_v3 = vld [vmem:[#allocation5 + $0x32c] sm:$0xf]  ;;  %v3427_v50 = vor.u32 %v4079_v16, %v3426_v7  ;;  %1879 = vmatpush.bf16.msrb.mxu2 %v3319_v2  ;;  %v4165_v2 = vld [vmem:[#allocation7 + $0x3e4] sm:$0xf0]  ;;  %v3570_v7 = vld [vmem:[#allocation7 + $0x250] sm:$0xf] }
 0x22b   :  { %v3431_v33 = vor.u32 %v4077_v3, %v3428_v14  ;;  %v4115_v16 = vld [vmem:[#allocation7 + $0x254] sm:$0xf0]  ;;  %v3698_v3 = vld [vmem:[#allocation7 + $0x350] sm:$0xf]  ;;  %v3771_v14 = vor.u32 %v4165_v2, %v3770_v5  ;;  %v3580_v5 = vld [vmem:[#allocation7 + $0x268] sm:$0xf0] }
 0x22c   :  { %1853 = vmatpush.bf16.msrb.mxu0 %v3315_v57 }
 0x22d   :  { %1863 = vmatpush.bf16.msrb.mxu1 %v3491_v21  ;;  %v3410_v21 = vld [vmem:[#allocation5 + $0x308] sm:$0xf] }
 0x22e   :  { %1889 = vmatpush.bf16.msrb.mxu3 %v3495_v29  ;;  %v240_v29 = vld [vmem:[#allocation10 + $0x3] ss:$8 sm:$0x3]  ;;  %v3411_v31 = vor.u32 %v4075_v51, %v3410_v21 }
 0x22f   :  { %v1386_v26 = vperm.slane %v240_v29, 0  ;;  %v3626_v21 = vld [vmem:[#allocation7 + $0x2c0] sm:$0xf]  ;;  %v4129_v51 = vld [vmem:[#allocation7 + $0x2c4] sm:$0xf0] }
 0x230   :  { %1854 = vmatpush.bf16.msrb.mxu0 %v3299_v18  ;;  %v4163_v18 = vld [vmem:[#allocation7 + $0x3d4] sm:$0xf0] }
 0x231   :  { %1864 = vmatpush.bf16.msrb.mxu1 %v3475_v38 }
 0x232   :  { %1890 = vmatpush.bf16.msrb.mxu3 %v3479_v60  ;;  %v1387_v60 = vperm.slane %v240_v29, 1  ;;  %v3554_v29 = vld [vmem:[#allocation7 + $0x230] sm:$0xf] }
 0x234   :  { %1855 = vmatpush.bf16.msrb.mxu0 %v3283_v30  ;;  %v3627_v30 = vor.u32 %v4129_v51, %v3626_v21 }
 0x235   :  { %1865 = vmatpush.bf16.msrb.mxu1 %v3459_v9 }
 0x236   :  { %1891 = vmatpush.bf16.msrb.mxu3 %v3463_v48  ;;  %v3578_v48 = vld [vmem:[#allocation7 + $0x260] sm:$0xf] }
 0x237   :  { %v3579_v6 = vor.u32 %v4117_v23, %v3578_v48  ;;  %v3530_v48 = vld [vmem:[#allocation7 + $0x200] sm:$0xf] }
 0x239   :  { %1866 = vmatpush.bf16.msrb.mxu1 %v3443_v4  ;;  %v4149_v4 = vld [vmem:[#allocation7 + $0x364] sm:$0xf0] }
 0x23a   :  { %1892 = vmatpush.bf16.msrb.mxu3 %v3447_v55  ;;  %v3634_v55 = vld [vmem:[#allocation7 + $0x2d0] sm:$0xf] }
 0x23d   :  { %1867 = vmatpush.bf16.msrb.mxu1 %v3427_v50  ;;  %v3571_v50 = vor.u32 %v4115_v16, %v3570_v7  ;;  %v3652_v7 = vld [vmem:[#allocation7 + $0x2f8] sm:$0xf0]  ;;  %v3674_v16 = vld [vmem:[#allocation7 + $0x320] sm:$0xf] }
 0x23e   :  { %1893 = vmatpush.bf16.msrb.mxu3 %v3431_v33  ;;  %v3690_v33 = vld [vmem:[#allocation7 + $0x340] sm:$0xf] }
 0x241   :  { %1868 = vmatpush.bf16.msrb.mxu1 %v3411_v31  ;;  %v4111_v31 = vld [vmem:[#allocation7 + $0x234] sm:$0xf0] }
 0x242   :  { %1894 = vmatpush.bf16.msrb.mxu3 %v3415_v39  ;;  %v3682_v39 = vld [vmem:[#allocation7 + $0x330] sm:$0xf] }
 0x28c   :  { %v1363_v43 = vpop.xlane.xlu0 %1362 }
 0x28d   :  { %v1364_v24 = vmul.f32 %v1363_v43, %v4683_v10  ;;  %v3303_v43 = vor.u32 %v4045_v12, %v3300_v13  ;;  %v4131_v12 = vld [vmem:[#allocation7 + $0x2d4] sm:$0xf0] }
 0x28e   :  { %v3635_v20 = vor.u32 %v4131_v12, %v3634_v55  ;;  %v4141_v55 = vld [vmem:[#allocation7 + $0x324] sm:$0xf0]  ;;  %v4114_v12 = vld [vmem:[#allocation7 + $0x254] sm:$0xf] }
 0x28f   :  { %v4697_v32 = vadd.f32 1e-05, %v1364_v24  ;;  %v4041_v24 = vld [vmem:[#allocation5 + $0x20c] sm:$0xf]  ;;  %1880 = vmatpush.bf16.msrb.mxu2 %v3303_v43  ;;  %v4113_v43 = vld [vmem:[#allocation7 + $0x244] sm:$0xf0] }
 0x290   :  { %v3287_v37 = vor.u32 %v4041_v24, %v3284_v25  ;;  %v3763_v24 = vor.u32 %v4163_v18, %v3762_v17  ;;  %v4145_v25 = vld [vmem:[#allocation7 + $0x344] sm:$0xf0]  ;;  %v4159_v17 = vld [vmem:[#allocation7 + $0x3b4] sm:$0xf0]  ;;  %v4132_v18 = vld [vmem:[#allocation7 + $0x2e4] sm:$0xf] }
 0x291   :  { %4218 = vrsqrt.f32 %v4697_v32  ;;  %vm1372_vm10 = vweird.f32 %v4697_v32 }
 0x293   :  { %1881 = vmatpush.bf16.msrb.mxu2 %v3287_v37  ;;  %v3691_v37 = vor.u32 %v4145_v25, %v3690_v33  ;;  %v3564_v33 = vld [vmem:[#allocation7 + $0x248] sm:$0xf0]  ;;  %v3738_v25 = vld [vmem:[#allocation7 + $0x3a0] sm:$0xf] }
 0x297   :  { %v4219_v52 = vpop.eup %4218 }
 0x298   :  { %v1367_v1 = vmul.f32 %v4219_v52, %v4697_v32  ;;  %vm1373_vm9 = vweird.f32 %v4219_v52 }
 0x299   :  { %vm1374_vm11 = vmor %vm1372_vm10, %vm1373_vm9 }
 0x29a   :  { %v1368_v47 = vmul.f32 %v4219_v52, %v1367_v1  ;;  %v3706_v1 = vld [vmem:[#allocation7 + $0x360] sm:$0xf] }
 0x29b   :  { %v3707_v13 = vor.u32 %v4149_v4, %v3706_v1  ;;  %v4116_v4 = vld [vmem:[#allocation7 + $0x264] sm:$0xf] }
 0x29c   :  { %v1369_v15 = vmul.f32 0.5, %v1368_v47  ;;  %v3583_v2 = vor.u32 %v4116_v4, %v3580_v5  ;;  %v3540_v4 = vld [vmem:[#allocation7 + $0x218] sm:$0xf0] }
 0x29e   :  { %v1370_v22 = vsub.f32 1.5, %v1369_v15  ;;  %v4147_v15 = vld [vmem:[#allocation7 + $0x354] sm:$0xf0] }
 0x2a0   :  { %v1371_v56 = vmul.f32 %v4219_v52, %v1370_v22  ;;  %v3699_v22 = vor.u32 %v4147_v15, %v3698_v3  ;;  %v3675_v3 = vor.u32 %v4141_v55, %v3674_v16  ;;  %v3746_v15 = vld [vmem:[#allocation7 + $0x3b0] sm:$0xf]  ;;  %v4124_v16 = vld [vmem:[#allocation7 + $0x2a4] sm:$0xf]  ;;  %v3612_v55 = vld [vmem:[#allocation7 + $0x2a8] sm:$0xf0] }
 0x2a2   :  { %v1375_v38 = vsel %vm1374_vm11, %v4219_v52, %v1371_v56  ;;  %v3642_v52 = vld [vmem:[#allocation7 + $0x2e0] sm:$0xf]  ;;  %v3563_v56 = vor.u32 %v4113_v43, %v3562_v19  ;;  %v3644_v19 = vld [vmem:[#allocation7 + $0x2e8] sm:$0xf0]  ;;  %v3666_v43 = vld [vmem:[#allocation7 + $0x310] sm:$0xf] }
 0x2a3   :  { %v1376_v36 = vmul.f32 %v1375_v38, %v4687_v0  ;;  %v1377_v40 = vmul.f32 %v1375_v38, %v4690_v11  ;;  %v4151_v0 = vld [vmem:[#allocation7 + $0x374] sm:$0xf0]  ;;  %v3643_v47 = vor.u32 %v4133_v53, %v3642_v52  ;;  %v3755_v38 = vor.u32 %v4161_v28, %v3754_v27  ;;  %v3594_v52 = vld [vmem:[#allocation7 + $0x280] sm:$0xf]  ;;  %v4121_v53 = vld [vmem:[#allocation7 + $0x284] sm:$0xf0] }
 0x2a4   :  { %v4167_v11 = vld [vmem:[#allocation7 + $0x3f4] sm:$0xf0]  ;;  %v3715_v54 = vor.u32 %v4151_v0, %v3714_v62  ;;  %v3595_v1 = vor.u32 %v4121_v53, %v3594_v52  ;;  %v3647_v21 = vor.u32 %v4132_v18, %v3644_v19  ;;  %v4157_v27 = vld [vmem:[#allocation7 + $0x3a4] sm:$0xf0]  ;;  %v4130_v28 = vld [vmem:[#allocation7 + $0x2d4] sm:$0xf] }
 0x2a5   :  { %v1383_v32 = vmul.f32 %v1379_v34, %v1376_v36  ;;  %v1384_v61 = vmul.f32 %v1380_v35, %v1377_v40  ;;  %v3779_v57 = vor.u32 %v4167_v11, %v3778_v63  ;;  %v3618_v34 = vld [vmem:[#allocation7 + $0x2b0] sm:$0xf]  ;;  %v4127_v35 = vld [vmem:[#allocation7 + $0x2b4] sm:$0xf0]  ;;  %v3555_v40 = vor.u32 %v4111_v31, %v3554_v29  ;;  %v3636_v29 = vld [vmem:[#allocation7 + $0x2d8] sm:$0xf0] }
 0x2a6   :  { %v4143_v36 = vld [vmem:[#allocation7 + $0x334] sm:$0xf0]  ;;  %v3602_v63 = vld [vmem:[#allocation7 + $0x290] sm:$0xf]  ;;  %v4137_v31 = vld [vmem:[#allocation7 + $0x304] sm:$0xf0] }
 0x2a7   :  { %v4704_v9 = vadd.f32 %v1386_v26, %v1383_v32  ;;  %v4706_v44 = vadd.f32 %v1387_v60, %v1384_v61  ;;  %v3546_v26 = vld [vmem:[#allocation7 + $0x220] sm:$0xf]  ;;  %v3619_v60 = vor.u32 %v4127_v35, %v3618_v34  ;;  %v4109_v32 = vld [vmem:[#allocation7 + $0x224] sm:$0xf0]  ;;  %v3683_v58 = vor.u32 %v4143_v36, %v3682_v39  ;;  %v4107_v0 = vld [vmem:[#allocation7 + $0x214] sm:$0xf0] }
 0x2a8   :  { %v3610_v61 = vld [vmem:[#allocation7 + $0x2a0] sm:$0xf]  ;;  %v3547_v8 = vor.u32 %v4109_v32, %v3546_v26  ;;  %v4123_v11 = vld [vmem:[#allocation7 + $0x294] sm:$0xf0]  ;;  %v3639_v34 = vor.u32 %v4130_v28, %v3636_v29  ;;  %v4150_v39 = vld [vmem:[#allocation7 + $0x374] sm:$0xf] }
 0x2a9   :  { %v4710_v45 = vpack.c.bf16 %v4704_v9, %v4704_v9  ;;  %v4714_v46 = vpack.c.bf16 %v4706_v44, %v4706_v44  ;;  %v3611_v62 = vor.u32 %v4125_v41, %v3610_v61  ;;  %v3603_v23 = vor.u32 %v4123_v11, %v3602_v63  ;;  %v3730_v26 = vld [vmem:[#allocation7 + $0x390] sm:$0xf]  ;;  %v4128_v41 = vld [vmem:[#allocation7 + $0x2c4] sm:$0xf]  ;;  %v3708_v63 = vld [vmem:[#allocation7 + $0x368] sm:$0xf0] }
 0x2aa   :  { %v4724_v52 = vld [vmem:[#allocation10 + $0x4] ss:$8 sm:$0xf] }
 0x2ab   :  { %1804 = vmatmul.bf16.vlgmr.msra.gmra.mxu0 %v4710_v45  ;;  %1817 = vmatmul.bf16.vlgmr.msra.gmra.mxu1 %v4714_v46  ;;  %v4126_v53 = vld [vmem:[#allocation7 + $0x2b4] sm:$0xf]  ;;  %v3532_v18 = vld [vmem:[#allocation7 + $0x208] sm:$0xf0]  ;;  %v3684_v29 = vld [vmem:[#allocation7 + $0x338] sm:$0xf0] }
 0x2ac   :  { %1830 = vmatmul.bf16.vlgmr.msra.gmra.mxu2 %v4710_v45  ;;  %1843 = vmatmul.bf16.vlgmr.msra.gmra.mxu3 %v4714_v46 }
 0x2ad   :  { %2298 = vmatpush.bf16.msra.mxu0 %v3587_v59  ;;  %2311 = vmatpush.bf16.msra.mxu1 %v3651_v49  ;;  %v3539_v59 = vor.u32 %v4107_v0, %v3538_v42  ;;  %v4105_v49 = vld [vmem:[#allocation7 + $0x204] sm:$0xf0]  ;;  %v4148_v0 = vld [vmem:[#allocation7 + $0x364] sm:$0xf] }
 0x2ae   :  { %2324 = vmatpush.bf16.msra.mxu2 %v3715_v54  ;;  %2337 = vmatpush.bf16.msra.mxu3 %v3779_v57  ;;  %v3588_v54 = vld [vmem:[#allocation7 + $0x278] sm:$0xf0] }
 0x2b1   :  { %2299 = vmatpush.bf16.msra.mxu0 %v3579_v6  ;;  %2312 = vmatpush.bf16.msra.mxu1 %v3643_v47  ;;  %v4134_v6 = vld [vmem:[#allocation7 + $0x2f4] sm:$0xf] }
 0x2b2   :  { %2325 = vmatpush.bf16.msra.mxu2 %v3707_v13  ;;  %2338 = vmatpush.bf16.msra.mxu3 %v3771_v14  ;;  %v3655_v47 = vor.u32 %v4134_v6, %v3652_v7  ;;  %v3572_v13 = vld [vmem:[#allocation7 + $0x258] sm:$0xf0]  ;;  %v4146_v6 = vld [vmem:[#allocation7 + $0x354] sm:$0xf] }
 0x2b3   :  { %v3575_v14 = vor.u32 %v4114_v12, %v3572_v13  ;;  %v3700_v7 = vld [vmem:[#allocation7 + $0x358] sm:$0xf0]  ;;  %v4164_v12 = vld [vmem:[#allocation7 + $0x3e4] sm:$0xf]  ;;  %v3772_v13 = vld [vmem:[#allocation7 + $0x3e8] sm:$0xf0] }
 0x2b5   :  { %2300 = vmatpush.bf16.msra.mxu0 %v3571_v50  ;;  %2313 = vmatpush.bf16.msra.mxu1 %v3635_v20  ;;  %v3747_v50 = vor.u32 %v4159_v17, %v3746_v15  ;;  %v4139_v20 = vld [vmem:[#allocation7 + $0x314] sm:$0xf0]  ;;  %v1468_v15 = vperm.slane %v4724_v52, 0  ;;  %v4104_v17 = vld [vmem:[#allocation7 + $0x204] sm:$0xf] }
 0x2b6   :  { %2326 = vmatpush.bf16.msra.mxu2 %v3699_v22  ;;  %2339 = vmatpush.bf16.msra.mxu3 %v3763_v24  ;;  %v3667_v51 = vor.u32 %v4139_v20, %v3666_v43  ;;  %v4112_v22 = vld [vmem:[#allocation7 + $0x244] sm:$0xf]  ;;  %v3535_v19 = vor.u32 %v4104_v17, %v3532_v18  ;;  %v3692_v43 = vld [vmem:[#allocation7 + $0x348] sm:$0xf0]  ;;  %v4122_v20 = vld [vmem:[#allocation7 + $0x294] sm:$0xf] }
 0x2b7   :  { %v3567_v24 = vor.u32 %v4112_v22, %v3564_v33  ;;  %v4162_v33 = vld [vmem:[#allocation7 + $0x3d4] sm:$0xf]  ;;  %v3724_v17 = vld [vmem:[#allocation7 + $0x388] sm:$0xf0] }
 0x2b9   :  { %2301 = vmatpush.bf16.msra.mxu0 %v3563_v56  ;;  %2314 = vmatpush.bf16.msra.mxu1 %v3627_v30  ;;  %v3739_v56 = vor.u32 %v4157_v27, %v3738_v25  ;;  %v3658_v30 = vld [vmem:[#allocation7 + $0x300] sm:$0xf]  ;;  %v4142_v25 = vld [vmem:[#allocation7 + $0x334] sm:$0xf] }
 0x2ba   :  { %2327 = vmatpush.bf16.msra.mxu2 %v3691_v37  ;;  %2340 = vmatpush.bf16.msra.mxu3 %v3755_v38  ;;  %v3659_v35 = vor.u32 %v4137_v31, %v3658_v30  ;;  %v4110_v37 = vld [vmem:[#allocation7 + $0x234] sm:$0xf]  ;;  %v3556_v38 = vld [vmem:[#allocation7 + $0x238] sm:$0xf0]  ;;  %v4120_v30 = vld [vmem:[#allocation7 + $0x284] sm:$0xf] }
 0x2bb   :  { %1856 = vmatmul.bf16.vlgmr.msrb.gmra.mxu0 %v4710_v45  ;;  %1869 = vmatmul.bf16.vlgmr.msrb.gmra.mxu1 %v4714_v46  ;;  %v3559_v36 = vor.u32 %v4110_v37, %v3556_v38  ;;  %v3596_v31 = vld [vmem:[#allocation7 + $0x288] sm:$0xf0]  ;;  %v4160_v37 = vld [vmem:[#allocation7 + $0x3c4] sm:$0xf] }
 0x2bc   :  { %1882 = vmatmul.bf16.vlgmr.msrb.gmra.mxu2 %v4710_v45  ;;  %1895 = vmatmul.bf16.vlgmr.msrb.gmra.mxu3 %v4714_v46  ;;  %v4118_v45 = vld [vmem:[#allocation7 + $0x274] sm:$0xf]  ;;  %v3531_v46 = vor.u32 %v4105_v49, %v3530_v48  ;;  %v3722_v48 = vld [vmem:[#allocation7 + $0x380] sm:$0xf]  ;;  %v3756_v38 = vld [vmem:[#allocation7 + $0x3c8] sm:$0xf0] }
 0x2bd   :  { %2302 = vmatpush.bf16.msra.mxu0 %v3555_v40  ;;  %2315 = vmatpush.bf16.msra.mxu1 %v3619_v60  ;;  %v3591_v57 = vor.u32 %v4118_v45, %v3588_v54  ;;  %v3716_v40 = vld [vmem:[#allocation7 + $0x378] sm:$0xf0]  ;;  %v4155_v60 = vld [vmem:[#allocation7 + $0x394] sm:$0xf0]  ;;  %v4166_v54 = vld [vmem:[#allocation7 + $0x3f4] sm:$0xf] }
 0x2be   :  { %2328 = vmatpush.bf16.msra.mxu2 %v3683_v58  ;;  %2341 = vmatpush.bf16.msra.mxu3 %v3747_v50  ;;  %v3719_v32 = vor.u32 %v4150_v39, %v3716_v40  ;;  %v3731_v61 = vor.u32 %v4155_v60, %v3730_v26  ;;  %v3628_v58 = vld [vmem:[#allocation7 + $0x2c8] sm:$0xf0]  ;;  %v3620_v45 = vld [vmem:[#allocation7 + $0x2b8] sm:$0xf0]  ;;  %v4144_v50 = vld [vmem:[#allocation7 + $0x344] sm:$0xf]  ;;  %v3599_v39 = vor.u32 %v4120_v30, %v3596_v31 }
 0x2bf   :  { %v3631_v42 = vor.u32 %v4128_v41, %v3628_v58  ;;  %v3676_v40 = vld [vmem:[#allocation7 + $0x328] sm:$0xf0]  ;;  %v3759_v60 = vor.u32 %v4160_v37, %v3756_v38  ;;  %v3748_v41 = vld [vmem:[#allocation7 + $0x3b8] sm:$0xf0] }
 0x2c1   :  { %2303 = vmatpush.bf16.msra.mxu0 %v3547_v8  ;;  %2316 = vmatpush.bf16.msra.mxu1 %v3611_v62  ;;  %v4108_v8 = vld [vmem:[#allocation7 + $0x224] sm:$0xf]  ;;  %v3548_v62 = vld [vmem:[#allocation7 + $0x228] sm:$0xf0] }
 0x2c2   :  { %2329 = vmatpush.bf16.msra.mxu2 %v3675_v3  ;;  %2342 = vmatpush.bf16.msra.mxu3 %v3739_v56  ;;  %v3551_v11 = vor.u32 %v4108_v8, %v3548_v62  ;;  %v3615_v3 = vor.u32 %v4124_v16, %v3612_v55  ;;  %v3668_v62 = vld [vmem:[#allocation7 + $0x318] sm:$0xf0] }
 0x2c5   :  { %2304 = vmatpush.bf16.msra.mxu0 %v3539_v59  ;;  %2317 = vmatpush.bf16.msra.mxu1 %v3603_v23  ;;  %v3711_v59 = vor.u32 %v4148_v0, %v3708_v63  ;;  %v4153_v23 = vld [vmem:[#allocation7 + $0x384] sm:$0xf0] }
 0x2c6   :  { %2330 = vmatpush.bf16.msra.mxu2 %v3667_v51  ;;  %2343 = vmatpush.bf16.msra.mxu3 %v3731_v61  ;;  %v3723_v49 = vor.u32 %v4153_v23, %v3722_v48  ;;  %v3695_v51 = vor.u32 %v4144_v50, %v3692_v43  ;;  %v4158_v61 = vld [vmem:[#allocation7 + $0x3b4] sm:$0xf]  ;;  %v1471_v43 = vperm.slane %v4724_v52, 3 }
 0x2c9   :  { %2305 = vmatpush.bf16.msra.mxu0 %v3531_v46  ;;  %2318 = vmatpush.bf16.msra.mxu1 %v3595_v1  ;;  %v3623_v46 = vor.u32 %v4126_v53, %v3620_v45  ;;  %v3780_v1 = vld [vmem:[#allocation7 + $0x3f8] sm:$0xf0]  ;;  %v4156_v53 = vld [vmem:[#allocation7 + $0x3a4] sm:$0xf]  ;;  %v3740_v45 = vld [vmem:[#allocation7 + $0x3a8] sm:$0xf0] }
 0x2ca   :  { %2331 = vmatpush.bf16.msra.mxu2 %v3659_v35  ;;  %2344 = vmatpush.bf16.msra.mxu3 %v3723_v49  ;;  %v3783_v5 = vor.u32 %v4166_v54, %v3780_v1  ;;  %v3687_v35 = vor.u32 %v4142_v25, %v3684_v29  ;;  %v4136_v1 = vld [vmem:[#allocation7 + $0x304] sm:$0xf] }
 0x2cd   :  { %2350 = vmatpush.bf16.msrb.mxu0 %v3591_v57  ;;  %2363 = vmatpush.bf16.msrb.mxu1 %v3655_v47  ;;  %v4106_v57 = vld [vmem:[#allocation7 + $0x214] sm:$0xf]  ;;  %v3703_v47 = vor.u32 %v4146_v6, %v3700_v7  ;;  %v3732_v6 = vld [vmem:[#allocation7 + $0x398] sm:$0xf0]  ;;  %v1470_v7 = vperm.slane %v4724_v52, 2 }
 0x2ce   :  { %2376 = vmatpush.bf16.msrb.mxu2 %v3719_v32  ;;  %2389 = vmatpush.bf16.msrb.mxu3 %v3783_v5  ;;  %v1469_v32 = vperm.slane %v4724_v52, 1 }
 0x2d1   :  { %2351 = vmatpush.bf16.msrb.mxu0 %v3583_v2  ;;  %2364 = vmatpush.bf16.msrb.mxu1 %v3647_v21  ;;  %v3543_v2 = vor.u32 %v4106_v57, %v3540_v4  ;;  %v3604_v21 = vld [vmem:[#allocation7 + $0x298] sm:$0xf0]  ;;  %v3660_v57 = vld [vmem:[#allocation7 + $0x308] sm:$0xf0]  ;;  %v3743_v4 = vor.u32 %v4156_v53, %v3740_v45 }
 0x2d2   :  { %2377 = vmatpush.bf16.msrb.mxu2 %v3711_v59  ;;  %v3607_v22 = vor.u32 %v4122_v20, %v3604_v21  ;;  %v3751_v59 = vor.u32 %v4158_v61, %v3748_v41  ;;  %v3663_v16 = vor.u32 %v4136_v1, %v3660_v57  ;;  %v3842_v57 = vld [vmem:[#allocation8 + $0x70] sm:$0xf] }
 0x2d5   :  { %2352 = vmatpush.bf16.msrb.mxu0 %v3575_v14  ;;  %2365 = vmatpush.bf16.msrb.mxu1 %v3639_v34  ;;  %v3775_v14 = vor.u32 %v4164_v12, %v3772_v13 }
 0x2d6   :  { %2378 = vmatpush.bf16.msrb.mxu2 %v3703_v47 }
 0x2d7   :  { %2390 = vmatpush.bf16.msrb.mxu3 %v3775_v14 }
 0x2d9   :  { %2353 = vmatpush.bf16.msrb.mxu0 %v3567_v24  ;;  %2366 = vmatpush.bf16.msrb.mxu1 %v3631_v42  ;;  %v3764_v24 = vld [vmem:[#allocation7 + $0x3d8] sm:$0xf0]  ;;  %v4138_v42 = vld [vmem:[#allocation7 + $0x314] sm:$0xf] }
 0x2da   :  { %v3767_v56 = vor.u32 %v4162_v33, %v3764_v24  ;;  %2379 = vmatpush.bf16.msrb.mxu2 %v3695_v51  ;;  %v3671_v54 = vor.u32 %v4138_v42, %v3668_v62 }
 0x2dc   :  { %2391 = vmatpush.bf16.msrb.mxu3 %v3767_v56 }
 0x2dd   :  { %2354 = vmatpush.bf16.msrb.mxu0 %v3559_v36  ;;  %2367 = vmatpush.bf16.msrb.mxu1 %v3623_v46  ;;  %v4140_v36 = vld [vmem:[#allocation7 + $0x324] sm:$0xf] }
 0x2de   :  { %2380 = vmatpush.bf16.msrb.mxu2 %v3687_v35  ;;  %v3679_v8 = vor.u32 %v4140_v36, %v3676_v40 }
 0x2e0   :  { %2392 = vmatpush.bf16.msrb.mxu3 %v3759_v60  ;;  %v1395_v60 = vld [vmem:[#allocation10 + $0x5] ss:$8 sm:$0x3] }
 0x2e1   :  { %2355 = vmatpush.bf16.msrb.mxu0 %v3551_v11  ;;  %2368 = vmatpush.bf16.msrb.mxu1 %v3615_v3  ;;  %v1974_v61 = vperm.slane %v1395_v60, 0  ;;  %v1975_v41 = vperm.slane %v1395_v60, 1  ;;  %v3818_v60 = vld [vmem:[#allocation8 + $0x40] sm:$0xf] }
 0x2e2   :  { %2381 = vmatpush.bf16.msrb.mxu2 %v3679_v8 }
 0x2e4   :  { %2393 = vmatpush.bf16.msrb.mxu3 %v3751_v59 }
 0x2e5   :  { %2356 = vmatpush.bf16.msrb.mxu0 %v3543_v2  ;;  %2369 = vmatpush.bf16.msrb.mxu1 %v3607_v22  ;;  %v4154_v2 = vld [vmem:[#allocation7 + $0x394] sm:$0xf] }
 0x2e6   :  { %2382 = vmatpush.bf16.msrb.mxu2 %v3671_v54  ;;  %v3735_v13 = vor.u32 %v4154_v2, %v3732_v6  ;;  %v4199_v6 = vld [vmem:[#allocation8 + $0xf4] sm:$0xf0] }
 0x2e8   :  { %2394 = vmatpush.bf16.msrb.mxu3 %v3743_v4  ;;  %v4183_v4 = vld [vmem:[#allocation8 + $0x74] sm:$0xf0] }
 0x2e9   :  { %2357 = vmatpush.bf16.msrb.mxu0 %v3535_v19  ;;  %2370 = vmatpush.bf16.msrb.mxu1 %v3599_v39  ;;  %v3843_v2 = vor.u32 %v4183_v4, %v3842_v57  ;;  %v4190_v4 = vld [vmem:[#allocation8 + $0xb4] sm:$0xf] }
 0x2ea   :  { %2383 = vmatpush.bf16.msrb.mxu2 %v3663_v16  ;;  %v3844_v16 = vld [vmem:[#allocation8 + $0x78] sm:$0xf0] }
 0x2ec   :  { %2395 = vmatpush.bf16.msrb.mxu3 %v3735_v13  ;;  %v3908_v13 = vld [vmem:[#allocation8 + $0xf8] sm:$0xf0] }
 0x328   :  { %v1805_v27 = vpop.f32.mrf.mxu0  ;;  %v1818_v28 = vpop.f32.mrf.mxu1 }
 0x329   :  { %v1806_v34 = vadd.f32 %v1805_v27, %v1468_v15  ;;  %v4152_v15 = vld [vmem:[#allocation7 + $0x384] sm:$0xf] }
 0x32a   :  { %v3727_v19 = vor.u32 %v4152_v15, %v3724_v17 }
 0x32b   :  { %v1819_v26 = vadd.f32 %v1818_v28, %v1806_v34 }
 0x32c   :  { %2396 = vmatpush.bf16.msrb.mxu3 %v3727_v19  ;;  %v3834_v19 = vld [vmem:[#allocation8 + $0x60] sm:$0xf] }
 0x32d   :  { %v1900_v58 = vmax.f32 %v1819_v26, 0.0 }
 0x32f   :  { %v1904_v0 = vpack.c.bf16 %v1900_v58, %v1900_v58  ;;  %v1831_v63 = vpop.f32.mrf.mxu2  ;;  %v1844_v11 = vpop.f32.mrf.mxu3 }
 0x330   :  { %v1832_v48 = vadd.f32 %v1831_v63, %v1469_v32  ;;  %v1807_v23 = vpop.f32.mrf.mxu0  ;;  %v1820_v49 = vpop.f32.mrf.mxu1 }
 0x331   :  { %2306 = vmatmul.bf16.vlgmr.msra.gmra.mxu0 %v1904_v0 }
 0x332   :  { %v1845_v46 = vadd.f32 %v1844_v11, %v1832_v48  ;;  %2648 = vmatpush.bf16.msra.mxu0 %v3843_v2  ;;  %v3802_v2 = vld [vmem:[#allocation8 + $0x20] sm:$0xf] }
 0x334   :  { %v1901_v5 = vmax.f32 %v1845_v46, 0.0 }
 0x336   :  { %v1905_v47 = vpack.c.bf16 %v1901_v5, %v1901_v5  ;;  %v3906_v5 = vld [vmem:[#allocation8 + $0xf0] sm:$0xf] }
 0x337   :  { %v1833_v55 = vpop.f32.mrf.mxu2  ;;  %v1846_v12 = vpop.f32.mrf.mxu3 }
 0x338   :  { %2319 = vmatmul.bf16.vlgmr.msra.gmra.mxu1 %v1905_v47  ;;  %v1857_v3 = vpop.f32.mrf.mxu0  ;;  %v1870_v14 = vpop.f32.mrf.mxu1  ;;  %v4198_v12 = vld [vmem:[#allocation8 + $0xf4] sm:$0xf] }
 0x339   :  { %v1858_v18 = vadd.f32 %v1857_v3, %v1470_v7  ;;  %v4182_v7 = vld [vmem:[#allocation8 + $0x74] sm:$0xf]  ;;  %v3911_v3 = vor.u32 %v4198_v12, %v3908_v13  ;;  %v4172_v13 = vld [vmem:[#allocation8 + $0x24] sm:$0xf] }
 0x33a   :  { %v3847_v55 = vor.u32 %v4182_v7, %v3844_v16  ;;  %v4173_v7 = vld [vmem:[#allocation8 + $0x24] sm:$0xf0]  ;;  %v3866_v16 = vld [vmem:[#allocation8 + $0xa0] sm:$0xf] }
 0x33b   :  { %v1871_v50 = vadd.f32 %v1870_v14, %v1858_v18 }
 0x33d   :  { %v1902_v20 = vmax.f32 %v1871_v50, 0.0 }
 0x33f   :  { %v1906_v21 = vpack.c.bf16 %v1902_v20, %v1902_v20  ;;  %v1883_v51 = vpop.f32.mrf.mxu2  ;;  %v1896_v22 = vpop.f32.mrf.mxu3  ;;  %v3898_v20 = vld [vmem:[#allocation8 + $0xe0] sm:$0xf] }
 0x340   :  { %v1884_v33 = vadd.f32 %v1883_v51, %v1471_v43  ;;  %v1859_v24 = vpop.f32.mrf.mxu0  ;;  %v1872_v25 = vpop.f32.mrf.mxu1  ;;  %v4181_v43 = vld [vmem:[#allocation8 + $0x64] sm:$0xf0] }
 0x341   :  { %2332 = vmatmul.bf16.vlgmr.msra.gmra.mxu2 %v1906_v21  ;;  %2358 = vmatmul.bf16.vlgmr.msrb.gmra.mxu0 %v1904_v0  ;;  %v4197_v51 = vld [vmem:[#allocation8 + $0xe4] sm:$0xf0] }
 0x342   :  { %v1897_v27 = vadd.f32 %v1896_v22, %v1884_v33  ;;  %2674 = vmatpush.bf16.msra.mxu2 %v3847_v55  ;;  %v4180_v22 = vld [vmem:[#allocation8 + $0x64] sm:$0xf]  ;;  %v3836_v33 = vld [vmem:[#allocation8 + $0x68] sm:$0xf0]  ;;  %v3899_v24 = vor.u32 %v4197_v51, %v3898_v20  ;;  %v3803_v55 = vor.u32 %v4173_v7, %v3802_v2  ;;  %v4187_v20 = vld [vmem:[#allocation8 + $0x94] sm:$0xf0] }
 0x343   :  { %v3839_v25 = vor.u32 %v4180_v22, %v3836_v33  ;;  %v3796_v22 = vld [vmem:[#allocation8 + $0x18] sm:$0xf0]  ;;  %v4186_v33 = vld [vmem:[#allocation8 + $0x94] sm:$0xf] }
 0x344   :  { %v1903_v28 = vmax.f32 %v1897_v27, 0.0  ;;  %v4196_v27 = vld [vmem:[#allocation8 + $0xe4] sm:$0xf]  ;;  %v2444_v2 = vld [vmem:[#allocation10 + $0x20] ss:$8 sm:$0x3] }
 0x346   :  { %v1907_v56 = vpack.c.bf16 %v1903_v28, %v1903_v28  ;;  %v3900_v28 = vld [vmem:[#allocation8 + $0xe8] sm:$0xf0]  ;;  %2675 = vmatpush.bf16.msra.mxu2 %v3839_v25 }
 0x347   :  { %v1885_v29 = vpop.f32.mrf.mxu2  ;;  %v1898_v30 = vpop.f32.mrf.mxu3 }
 0x348   :  { %2345 = vmatmul.bf16.vlgmr.msra.gmra.mxu3 %v1907_v56  ;;  %2371 = vmatmul.bf16.vlgmr.msrb.gmra.mxu1 %v1905_v47  ;;  %v3907_v47 = vor.u32 %v4199_v6, %v3906_v5  ;;  %v3826_v29 = vld [vmem:[#allocation8 + $0x50] sm:$0xf]  ;;  %v4179_v30 = vld [vmem:[#allocation8 + $0x54] sm:$0xf0]  ;;  %v3876_v5 = vld [vmem:[#allocation8 + $0xb8] sm:$0xf0] }
 0x349   :  { %2687 = vmatpush.bf16.msra.mxu3 %v3911_v3  ;;  %v3879_v6 = vor.u32 %v4190_v4, %v3876_v5  ;;  %v3804_v3 = vld [vmem:[#allocation8 + $0x28] sm:$0xf0] }
 0x34a   :  { %2661 = vmatpush.bf16.msra.mxu1 %v3907_v47  ;;  %v4189_v47 = vld [vmem:[#allocation8 + $0xa4] sm:$0xf0] }
 0x34b   :  { %v3867_v12 = vor.u32 %v4189_v47, %v3866_v16  ;;  %v2484_v16 = vperm.slane %v2444_v2, 0  ;;  %v2485_v47 = vperm.slane %v2444_v2, 1 }
 0x34e   :  { %2662 = vmatpush.bf16.msra.mxu1 %v3899_v24  ;;  %v3860_v24 = vld [vmem:[#allocation8 + $0x98] sm:$0xf0] }
 0x351   :  { %2384 = vmatmul.bf16.vlgmr.msrb.gmra.mxu2 %v1906_v21  ;;  %v3835_v21 = vor.u32 %v4181_v43, %v3834_v19  ;;  %v3858_v43 = vld [vmem:[#allocation8 + $0x90] sm:$0xf] }
 0x352   :  { %v3859_v25 = vor.u32 %v4187_v20, %v3858_v43 }
 0x353   :  { %2649 = vmatpush.bf16.msra.mxu0 %v3835_v21  ;;  %v4170_v21 = vld [vmem:[#allocation8 + $0x14] sm:$0xf] }
 0x358   :  { %2397 = vmatmul.bf16.vlgmr.msrb.gmra.mxu3 %v1907_v56  ;;  %v3903_v56 = vor.u32 %v4196_v27, %v3900_v28  ;;  %v3799_v27 = vor.u32 %v4170_v21, %v3796_v22  ;;  %v3786_v28 = vld [vmem:[#allocation8] sm:$0xf] }
 0x35a   :  { %2688 = vmatpush.bf16.msra.mxu3 %v3903_v56  ;;  %v4169_v56 = vld [vmem:[#allocation8 + $0x4] sm:$0xf0] }
 0x3ae   :  { %v2307_v52 = vpop.f32.mrf.mxu0 }
 0x3af   :  { %v2308_v8 = vadd.f32 %v2307_v52, %v1974_v61  ;;  %v3890_v52 = vld [vmem:[#allocation8 + $0xd0] sm:$0xf]  ;;  %v3882_v61 = vld [vmem:[#allocation8 + $0xc0] sm:$0xf] }
 0x3b5   :  { %v2320_v31 = vpop.f32.mrf.mxu1 }
 0x3b6   :  { %v2309_v34 = vpop.f32.mrf.mxu0  ;;  %v2321_v62 = vadd.f32 %v2320_v31, %v2308_v8  ;;  %v3827_v31 = vor.u32 %v4179_v30, %v3826_v29  ;;  %v4176_v8 = vld [vmem:[#allocation8 + $0x44] sm:$0xf]  ;;  %v3850_v29 = vld [vmem:[#allocation8 + $0x80] sm:$0xf]  ;;  %v3863_v30 = vor.u32 %v4186_v33, %v3860_v24 }
 0x3b7   :  { %v4195_v34 = vld [vmem:[#allocation8 + $0xd4] sm:$0xf0] }
 0x3b8   :  { %2650 = vmatpush.bf16.msra.mxu0 %v3827_v31  ;;  %v4168_v31 = vld [vmem:[#allocation8 + $0x4] sm:$0xf] }
 0x3bd   :  { %v2322_v35 = vpop.f32.mrf.mxu1 }
 0x3be   :  { %v2359_v37 = vpop.f32.mrf.mxu0  ;;  %v4178_v35 = vld [vmem:[#allocation8 + $0x54] sm:$0xf] }
 0x3bf   :  { %v2360_v0 = vadd.f32 %v2359_v37, %v1975_v41  ;;  %v3828_v37 = vld [vmem:[#allocation8 + $0x58] sm:$0xf0] }
 0x3c4   :  { %v2333_v38 = vpop.f32.mrf.mxu2 }
 0x3c5   :  { %v2372_v39 = vpop.f32.mrf.mxu1  ;;  %v2334_v63 = vadd.f32 %v2333_v38, %v2321_v62  ;;  %v3891_v38 = vor.u32 %v4195_v34, %v3890_v52  ;;  %v4185_v52 = vld [vmem:[#allocation8 + $0x84] sm:$0xf0]  ;;  %v3788_v34 = vld [vmem:[#allocation8 + $0x8] sm:$0xf0] }
 0x3c6   :  { %v2361_v36 = vpop.f32.mrf.mxu0  ;;  %v2373_v11 = vadd.f32 %v2372_v39, %v2360_v0  ;;  %v3831_v39 = vor.u32 %v4178_v35, %v3828_v37  ;;  %v4184_v37 = vld [vmem:[#allocation8 + $0x84] sm:$0xf] }
 0x3c7   :  { %v4194_v36 = vld [vmem:[#allocation8 + $0xd4] sm:$0xf]  ;;  %2663 = vmatpush.bf16.msra.mxu1 %v3891_v38  ;;  %v3852_v38 = vld [vmem:[#allocation8 + $0x88] sm:$0xf0] }
 0x3c8   :  { %2676 = vmatpush.bf16.msra.mxu2 %v3831_v39 }
 0x3cb   :  { %v2346_v40 = vpop.f32.mrf.mxu3 }
 0x3cc   :  { %v2335_v26 = vpop.f32.mrf.mxu2  ;;  %v2347_v59 = vadd.f32 %v2346_v40, %v2334_v63  ;;  %v3892_v40 = vld [vmem:[#allocation8 + $0xd8] sm:$0xf0]  ;;  %v4192_v63 = vld [vmem:[#allocation8 + $0xc4] sm:$0xf] }
 0x3cd   :  { %v2374_v32 = vpop.f32.mrf.mxu1  ;;  %v3895_v26 = vor.u32 %v4194_v36, %v3892_v40  ;;  %v3787_v36 = vor.u32 %v4169_v56, %v3786_v28  ;;  %v3851_v40 = vor.u32 %v4185_v52, %v3850_v29 }
 0x3ce   :  { %v2402_v45 = vadd.f32 %v2347_v59, %v4704_v9  ;;  %v4177_v32 = vld [vmem:[#allocation8 + $0x44] sm:$0xf0] }
 0x3cf   :  { %2689 = vmatpush.bf16.msra.mxu3 %v3895_v26  ;;  %v3819_v41 = vor.u32 %v4177_v32, %v3818_v60  ;;  %v3791_v26 = vor.u32 %v4168_v31, %v3788_v34  ;;  %v3855_v32 = vor.u32 %v4184_v37, %v3852_v38  ;;  %v2446_v31 = vld [vmem:[#allocation10 + $0x21] ss:$8 sm:$0x3] }
 0x3d0   :  { %v2726_v37 = vperm.slane %v2446_v31, 0  ;;  %v2727_v38 = vperm.slane %v2446_v31, 1 }
 0x3d1   :  { %2651 = vmatpush.bf16.msra.mxu0 %v3819_v41 }
 0x3d3   :  { %v2348_v58 = vpop.f32.mrf.mxu3 }
 0x3d4   :  { %v2385_v42 = vpop.f32.mrf.mxu2  ;;  %v4193_v58 = vld [vmem:[#allocation8 + $0xc4] sm:$0xf0] }
 0x3d5   :  { %v2386_v48 = vadd.f32 %v2385_v42, %v2373_v11  ;;  %v3820_v42 = vld [vmem:[#allocation8 + $0x48] sm:$0xf0]  ;;  %v3883_v62 = vor.u32 %v4193_v58, %v3882_v61 }
 0x3d6   :  { %v3823_v0 = vor.u32 %v4176_v8, %v3820_v42  ;;  %v3884_v11 = vld [vmem:[#allocation8 + $0xc8] sm:$0xf0] }
 0x3d7   :  { %v3887_v59 = vor.u32 %v4192_v63, %v3884_v11  ;;  %2664 = vmatpush.bf16.msra.mxu1 %v3883_v62  ;;  %v1397_v62 = vld [vmem:[#allocation10 + $0x6] ss:$8 sm:$0x3]  ;;  %v1399_v63 = vld [vmem:[#allocation10 + $0x7] ss:$8 sm:$0x3] }
 0x3d8   :  { %2677 = vmatpush.bf16.msra.mxu2 %v3823_v0  ;;  %v2430_v11 = vperm.slane %v1397_v62, 0 }
 0x3d9   :  { %2690 = vmatpush.bf16.msra.mxu3 %v3887_v59  ;;  %v2431_v59 = vperm.slane %v1397_v62, 1 }
 0x3db   :  { %v2398_v23 = vpop.f32.mrf.mxu3 }
 0x3dc   :  { %v2399_v49 = vadd.f32 %v2398_v23, %v2386_v48  ;;  %v2387_v53 = vpop.f32.mrf.mxu2  ;;  %v3810_v48 = vld [vmem:[#allocation8 + $0x30] sm:$0xf]  ;;  %v4175_v23 = vld [vmem:[#allocation8 + $0x34] sm:$0xf0] }
 0x3dd   :  { %v3811_v53 = vor.u32 %v4175_v23, %v3810_v48  ;;  %2691 = vmatpush.bf16.msra.mxu3 %v3879_v6 }
 0x3de   :  { %v2403_v54 = vadd.f32 %v2399_v49, %v4706_v44  ;;  %v3874_v49 = vld [vmem:[#allocation8 + $0xb0] sm:$0xf] }
 0x3df   :  { %2652 = vmatpush.bf16.msra.mxu0 %v3811_v53  ;;  %v2437_v53 = vperm.slane %v1399_v63, 0 }
 0x3e0   :  { %v2404_v46 = vadd.f32 %v2403_v54, %v2402_v45 }
 0x3e2   :  { %2405 = vadd.xlane.f32.xlu1 %v2404_v46  ;;  %v3812_v46 = vld [vmem:[#allocation8 + $0x38] sm:$0xf0] }
 0x3e3   :  { %v2400_v1 = vpop.f32.mrf.mxu3  ;;  %2653 = vmatpush.bf16.msra.mxu0 %v3803_v55 }
 0x455   :  { %v2406_v9 = vpop.xlane.xlu1 %2405 }
 0x456   :  { %v2407_v44 = vmul.f32 %v2406_v9, %v4683_v10  ;;  %v4188_v9 = vld [vmem:[#allocation8 + $0xa4] sm:$0xf] }
 0x458   :  { %v4733_v14 = vsub.f32 %v2402_v45, %v2407_v44  ;;  %v4735_v15 = vsub.f32 %v2403_v54, %v2407_v44  ;;  %v4191_v45 = vld [vmem:[#allocation8 + $0xb4] sm:$0xf0]  ;;  %v4174_v54 = vld [vmem:[#allocation8 + $0x34] sm:$0xf]  ;;  %v3807_v44 = vor.u32 %v4172_v13, %v3804_v3 }
 0x459   :  { %v3875_v1 = vor.u32 %v4191_v45, %v3874_v49  ;;  %v3815_v57 = vor.u32 %v4174_v54, %v3812_v46  ;;  %v2438_v45 = vperm.slane %v1399_v63, 1 }
 0x45a   :  { %v2410_v17 = vmul.f32 %v4733_v14, %v4733_v14  ;;  %v2411_v18 = vmul.f32 %v4735_v15, %v4735_v15 }
 0x45b   :  { %2665 = vmatpush.bf16.msra.mxu1 %v3875_v1  ;;  %2678 = vmatpush.bf16.msra.mxu2 %v3815_v57 }
 0x45c   :  { %v2412_v50 = vadd.f32 %v2411_v18, %v2410_v17  ;;  %v3868_v17 = vld [vmem:[#allocation8 + $0xa8] sm:$0xf0]  ;;  %v3794_v18 = vld [vmem:[#allocation8 + $0x10] sm:$0xf] }
 0x45d   :  { %v3871_v19 = vor.u32 %v4188_v9, %v3868_v17 }
 0x45e   :  { %2413 = vadd.xlane.f32.xlu1 %v2412_v50  ;;  %v4171_v50 = vld [vmem:[#allocation8 + $0x14] sm:$0xf0] }
 0x45f   :  { %v3795_v51 = vor.u32 %v4171_v50, %v3794_v18  ;;  %2666 = vmatpush.bf16.msra.mxu1 %v3867_v12  ;;  %2679 = vmatpush.bf16.msra.mxu2 %v3807_v44 }
 0x460   :  { %2692 = vmatpush.bf16.msra.mxu3 %v3871_v19 }
 0x461   :  { %2654 = vmatpush.bf16.msra.mxu0 %v3795_v51 }
 0x463   :  { %2667 = vmatpush.bf16.msra.mxu1 %v3859_v25  ;;  %2680 = vmatpush.bf16.msra.mxu2 %v3799_v27 }
 0x464   :  { %2693 = vmatpush.bf16.msra.mxu3 %v3863_v30 }
 0x465   :  { %2655 = vmatpush.bf16.msra.mxu0 %v3787_v36 }
 0x467   :  { %2668 = vmatpush.bf16.msra.mxu1 %v3851_v40  ;;  %2681 = vmatpush.bf16.msra.mxu2 %v3791_v26 }
 0x468   :  { %2694 = vmatpush.bf16.msra.mxu3 %v3855_v32 }
 0x4d1   :  { %v2414_v35 = vpop.xlane.xlu1 %2413 }
 0x4d2   :  { %v2415_v39 = vmul.f32 %v2414_v35, %v4683_v10  ;;  %v2448_v35 = vld [vmem:[#allocation10 + $0x22] ss:$8 sm:$0x3] }
 0x4d3   :  { %v2733_v26 = vperm.slane %v2448_v35, 0 }
 0x4d4   :  { %v2416_v60 = vadd.f32 1e-05, %v2415_v39 }
 0x4d6   :  { %4220 = vrsqrt.f32 %v2416_v60  ;;  %vm2423_vm13 = vweird.f32 %v2416_v60 }
 0x4dc   :  { %v4221_v61 = vpop.eup %4220 }
 0x4dd   :  { %v2418_v41 = vmul.f32 %v4221_v61, %v2416_v60  ;;  %vm2424_vm12 = vweird.f32 %v4221_v61 }
 0x4de   :  { %vm2425_vm14 = vmor %vm2423_vm13, %vm2424_vm12 }
 0x4df   :  { %v2419_v58 = vmul.f32 %v4221_v61, %v2418_v41 }
 0x4e1   :  { %v2420_v8 = vmul.f32 0.5, %v2419_v58 }
 0x4e3   :  { %v2421_v42 = vsub.f32 1.5, %v2420_v8 }
 0x4e5   :  { %v2422_v0 = vmul.f32 %v4221_v61, %v2421_v42 }
 0x4e7   :  { %v2426_v48 = vsel %vm2425_vm14, %v4221_v61, %v2422_v0 }
 0x4e8   :  { %v2427_v23 = vmul.f32 %v2426_v48, %v4733_v14  ;;  %v2428_v49 = vmul.f32 %v2426_v48, %v4735_v15 }
 0x4ea   :  { %v2434_v54 = vmul.f32 %v2430_v11, %v2427_v23  ;;  %v2435_v46 = vmul.f32 %v2431_v59, %v2428_v49 }
 0x4ec   :  { %v2441_v1 = vadd.f32 %v2437_v53, %v2434_v54  ;;  %v2442_v57 = vadd.f32 %v2438_v45, %v2435_v46 }
 0x4ee   :  { %v2449_v4 = vpack.c.bf16 %v2441_v1, %v2441_v1  ;;  %v2450_v5 = vpack.c.bf16 %v2442_v57, %v2442_v57 }
 0x4f0   :  { %2656 = vmatmul.bf16.vlgmr.msra.gmra.mxu0 %v2449_v4  ;;  %2669 = vmatmul.bf16.vlgmr.msra.gmra.mxu1 %v2450_v5 }
 0x4f1   :  { %2682 = vmatmul.bf16.vlgmr.msra.gmra.mxu2 %v2449_v4  ;;  %2695 = vmatmul.bf16.vlgmr.msra.gmra.mxu3 %v2450_v5 }
 0x56d   :  { %v2657_v6 = vpop.f32.mrf.mxu0  ;;  %v2670_v7 = vpop.f32.mrf.mxu1 }
 0x56e   :  { %v2658_v14 = vadd.f32 %v2657_v6, %v2484_v16 }
 0x570   :  { %v2671_v9 = vadd.f32 %v2670_v7, %v2658_v14 }
 0x574   :  { %v2683_v55 = vpop.f32.mrf.mxu2  ;;  %v2696_v15 = vpop.f32.mrf.mxu3 }
 0x575   :  { %v2684_v12 = vadd.f32 %v2683_v55, %v2485_v47  ;;  %v2659_v13 = vpop.f32.mrf.mxu0  ;;  %v2672_v3 = vpop.f32.mrf.mxu1 }
 0x577   :  { %v2697_v44 = vadd.f32 %v2696_v15, %v2684_v12 }
 0x579   :  { %v2700_v17 = vadd.f32 %v2697_v44, %v2671_v9 }
 0x57b   :  { %2701 = vadd.xlane.f32.xlu2 %v2700_v17 }
 0x57c   :  { %v2685_v18 = vpop.f32.mrf.mxu2  ;;  %v2698_v50 = vpop.f32.mrf.mxu3 }
 0x5ee   :  { %v2702_v19 = vpop.xlane.xlu2 %2701 }
 0x5ef   :  { %v2703_v43 = vmul.f32 %v2702_v19, %v4683_v10 }
 0x5f1   :  { %v2704_v20 = vsub.f32 %v2671_v9, %v2703_v43  ;;  %v2705_v21 = vsub.f32 %v2697_v44, %v2703_v43 }
 0x5f3   :  { %v2706_v51 = vmul.f32 %v2704_v20, %v2704_v20  ;;  %v2707_v22 = vmul.f32 %v2705_v21, %v2705_v21 }
 0x5f5   :  { %v2708_v33 = vadd.f32 %v2707_v22, %v2706_v51 }
 0x5f7   :  { %2709 = vadd.xlane.f32.xlu2 %v2708_v33 }
 0x66a   :  { %v2710_v24 = vpop.xlane.xlu2 %2709 }
 0x66b   :  { %v2711_v25 = vmul.f32 %v2710_v24, %v4683_v10  ;;  %v2734_v10 = vperm.slane %v2448_v35, 1 }
 0x66d   :  { %v2712_v27 = vadd.f32 1e-05, %v2711_v25 }
 0x66f   :  { %4222 = vrsqrt.f32 %v2712_v27  ;;  %vm2719_vm0 = vweird.f32 %v2712_v27 }
 0x675   :  { %v4223_v28 = vpop.eup %4222 }
 0x676   :  { %v2714_v56 = vmul.f32 %v4223_v28, %v2712_v27  ;;  %vm2720_vm15 = vweird.f32 %v4223_v28 }
 0x677   :  { %vm2721_vm1 = vmor %vm2719_vm0, %vm2720_vm15 }
 0x678   :  { %v2715_v29 = vmul.f32 %v4223_v28, %v2714_v56 }
 0x67a   :  { %v2716_v30 = vmul.f32 0.5, %v2715_v29 }
 0x67c   :  { %v2717_v52 = vsub.f32 1.5, %v2716_v30 }
 0x67e   :  { %v2718_v34 = vmul.f32 %v4223_v28, %v2717_v52 }
 0x680   :  { %v2722_v39 = vsel %vm2721_vm1, %v4223_v28, %v2718_v34 }
 0x681   :  { %v2723_v36 = vmul.f32 %v2722_v39, %v2704_v20  ;;  %v2724_v40 = vmul.f32 %v2722_v39, %v2705_v21 }
 0x683   :  { %v2730_v60 = vmul.f32 %v2726_v37, %v2723_v36  ;;  %v2731_v32 = vmul.f32 %v2727_v38, %v2724_v40 }
 0x685   :  { %v2737_v61 = vadd.f32 %v2733_v26, %v2730_v60  ;;  %v2738_v41 = vadd.f32 %v2734_v10, %v2731_v32 }
 0x687   :  { %2739 = vst [vmem:[#allocation11] sm:$0xff] %v2737_v61 }
 0x688   :  { %2740 = vst [vmem:[#allocation11 + $0x8] sm:$0xff] %v2738_v41 }
 0x689   :  { %2751 = dma.vmem_to_hbm [thread:$0]  %s2747_s4, 256, %s2749_s23, [#allocation4]  }
 0x68a   :  { %4374 = dma.done.wait [#allocation4], 256  }
 0x68b   :  { %4375 = vsyncadd [#allocation4], 4294967040 }
 0x68c   :  { %2756 = vsyncpa [#allocation3], 1 }
 0x68d   :  { %2757 = vsyncpa [#allocation6], 1 }
 0x68e   :  { %2758 = vsyncpa [#allocation9], 1 }
 0x68f   :  { %2759 = vsyncpa [#allocation4], 1 }

</bundles_post_ra>
